<compile_context>
chip_gen: v7x
topology: tpu7x:2x2x1
jax: 0.10.0
libtpu: 0.0.40
codegen_flags: <defaults>
</compile_context>

<pallas_src>
import functools

import jax
import jax.numpy as jnp
from jax import lax
from jax.experimental import pallas as pl
from jax.experimental.pallas import tpu as pltpu

LANE = 128


def _round_up(n, m):
    return ((n + m - 1) // m) * m


def _pad_axis(a, axis, new_size):
    pad = new_size - a.shape[axis]
    if pad == 0:
        return a
    widths = [(0, 0)] * a.ndim
    widths[axis] = (0, pad)
    return jnp.pad(a, widths)


def _nbytes(shape, dtype):
    n = 1
    for s in shape:
        n *= int(s)
    return n * jnp.dtype(dtype).itemsize


def _vmem_limit(block_bytes, temp_bytes):
    est = int((block_bytes + temp_bytes) * 1.25)
    return int(min(max(est, 16 * 2**20), 96 * 2**20))


def _weight_spec(arr):
    # Constant index_map -> DMA'd into VMEM once and revisited across the whole grid.
    # For production-scale weights, keep a single buffer (default double-buffering
    # would waste VMEM with zero pipelining benefit).
    shape = arr.shape
    idx = lambda b, q: (0,) * len(shape)
    if arr.size * arr.dtype.itemsize >= (1 << 20):
        return pl.BlockSpec(shape, idx, pipeline_mode=pl.Buffered(1))
    return pl.BlockSpec(shape, idx)


def _gelu_tanh(z):
    # BERT-style tanh-approximation GELU, computed in f32.
    c = 0.7978845608028654
    return 0.5 * z * (1.0 + jnp.tanh(c * (z + 0.044715 * z * z * z)))


# ----------------------------------------------------------------------------
# Kernel 1: latent graph (masked softmax) + logits-form entropy + GCN layer 1
# ----------------------------------------------------------------------------
def _latent_gcn1_kernel(x_ref, wqk_ref, w1_ref, b1_ref, kmask_ref, qmask_ref,
                        lat_ref, ent_ref, h1_ref,
                        k_scr, xw1_scr, *, scale, tq):
    qi = pl.program_id(1)
    row0 = pl.multiple_of(qi * tq, tq)

    # K = X @ Wk and X @ W1 computed once per batch element (q axis is "arbitrary",
    # scratch persists across the q steps of this batch element).
    @pl.when(qi == 0)
    def _():
        x_all = x_ref[0]                                             # (T, D) bf16
        k_scr[...] = jnp.dot(x_all, wqk_ref[1],
                             preferred_element_type=jnp.float32).astype(jnp.bfloat16)
        xw1_scr[...] = jnp.dot(x_all, w1_ref[...],
                               preferred_element_type=jnp.float32).astype(jnp.bfloat16)

    # ---- latent graph for this q-tile (bf16 MXU operands, f32 accumulation) ----
    xq = x_ref[0, pl.ds(row0, tq), :]                                # (tq, D) bf16
    q = jnp.dot(xq, wqk_ref[0], preferred_element_type=jnp.float32)  # (tq, H) f32
    s = lax.dot_general(q.astype(jnp.bfloat16), k_scr[...],
                        (((1,), (1,)), ((), ())),
                        preferred_element_type=jnp.float32) * scale  # (tq, T)

    kmask = kmask_ref[0]                                             # (1, T)
    qmask = qmask_ref[0]                                             # (tq, 1)
    s = s + (kmask - 1.0) * 1e9
    m = jnp.max(s, axis=-1, keepdims=True)
    p = jnp.exp(s - m)
    denom = jnp.sum(p, axis=-1, keepdims=True)
    inv_denom = 1.0 / denom                     # exact: emitted rows sum to 1
    a = p * inv_denom * qmask                                        # (tq, T)
    # NOTE: lat kept f32 for module-output fidelity (bf16 would halve writeback).
    lat_ref[0] = a.astype(lat_ref.dtype)

    # per-row entropy in logits form: O(tq) logs instead of O(tq*T)
    ent_ref[0] = (jnp.log(denom)
                  - jnp.sum(p * (s - m), axis=-1, keepdims=True) * inv_denom) * qmask

    # ---- GCN layer 1: gelu( D^-1 (A+I) X W1 + b1 ) * qmask ----
    # reassociated as D^-1 (A @ (X W1) + (X W1)[tile]); no eye, no (T,T) divide.
    inv_deg = pl.reciprocal(jnp.sum(a, axis=-1, keepdims=True) + 1.0, approx=True)
    a_bf = a.astype(jnp.bfloat16)
    agg1 = jnp.dot(a_bf, xw1_scr[...], preferred_element_type=jnp.float32)  # (tq, G)
    self1 = xw1_scr[pl.ds(row0, tq), :].astype(jnp.float32)
    h1 = _gelu_tanh((agg1 + self1) * inv_deg + b1_ref[...]) * qmask
    h1_ref[0] = h1.astype(h1_ref.dtype)                              # bf16 hand-off


def _latent_gcn1(x, wqk, w1, b1, kmask, qmask, *, latent_h, tq):
    B, Tp, Dp = x.shape
    Hp = wqk.shape[2]
    Gp = w1.shape[1]
    nq = Tp // tq
    scale = 1.0 / float(latent_h) ** 0.5
    kernel = functools.partial(_latent_gcn1_kernel, scale=scale, tq=tq)

    block_bytes = (
        2 * _nbytes((1, Tp, Dp), jnp.bfloat16)               # x (double-buffered over b)
        + 2 * _nbytes((2, Dp, Hp), jnp.bfloat16)              # wqk
        + 2 * _nbytes((Dp, Gp), jnp.bfloat16)                 # w1
        + 2 * _nbytes((1, Gp), jnp.float32)                   # b1
        + 2 * (_nbytes((1, 1, Tp), jnp.float32) + _nbytes((1, tq, 1), jnp.float32))
        + 2 * (_nbytes((1, tq, Tp), jnp.float32)              # lat out
               + _nbytes((1, tq, 1), jnp.float32)             # ent out
               + _nbytes((1, tq, Gp), jnp.bfloat16))          # h1 out
        + _nbytes((Tp, Hp), jnp.bfloat16) + _nbytes((Tp, Gp), jnp.bfloat16))  # scratch
    temp_bytes = 6 * tq * Tp * 4 + 4 * tq * Gp * 4 + 2 * tq * Hp * 4

    return pl.pallas_call(
        kernel,
        out_shape=(
            jax.ShapeDtypeStruct((B, Tp, Tp), jnp.float32),   # latent graph
            jax.ShapeDtypeStruct((B, Tp, 1), jnp.float32),    # per-row entropy
            jax.ShapeDtypeStruct((B, Tp, Gp), jnp.bfloat16),  # h1 (internal hand-off)
        ),
        grid=(B, nq),
        in_specs=[
            pl.BlockSpec((1, Tp, Dp), lambda b, q: (b, 0, 0)),   # x (full rows, revisit over q)
            _weight_spec(wqk),                                    # (2, Dp, Hp) lane-aligned split
            _weight_spec(w1),
            _weight_spec(b1),
            pl.BlockSpec((1, 1, Tp), lambda b, q: (b, 0, 0)),     # key mask
            pl.BlockSpec((1, tq, 1), lambda b, q: (b, q, 0)),     # query-mask tile
        ],
        out_specs=(
            pl.BlockSpec((1, tq, Tp), lambda b, q: (b, q, 0)),
            pl.BlockSpec((1, tq, 1), lambda b, q: (b, q, 0)),
            pl.BlockSpec((1, tq, Gp), lambda b, q: (b, q, 0)),
        ),
        scratch_shapes=[
            pltpu.VMEM((Tp, Hp), jnp.bfloat16),   # K, computed once per batch element
            pltpu.VMEM((Tp, Gp), jnp.bfloat16),   # X @ W1, computed once per batch element
        ],
        compiler_params=pltpu.CompilerParams(
            dimension_semantics=("parallel", "arbitrary"),
            vmem_limit_bytes=_vmem_limit(block_bytes, temp_bytes)),
    )(x, wqk, w1, b1, kmask, qmask)


# ----------------------------------------------------------------------------
# Kernel 2: GCN layer 2 + one-hot dependent graph (both per q-tile, independent)
# ----------------------------------------------------------------------------
def _gcn2_dep_kernel(lat_ref, h1_ref, w2_ref, b2_ref, qmask_ref, heads_ref,
                     out_ref, dep_ref, *, tq):
    qi = pl.program_id(1)
    row0 = pl.multiple_of(qi * tq, tq)

    a = lat_ref[0]                                                   # (tq, T) f32
    qmask = qmask_ref[0]                                             # (tq, 1)
    inv_deg = pl.reciprocal(jnp.sum(a, axis=-1, keepdims=True) + 1.0, approx=True)

    # GCN layer 2 reassociated as ((A_tile @ H1 + H1[tile]) * D^-1) @ W2:
    # only the full (T,G) bf16 H1 is needed, never a full H1@W2 per tile.
    agg2 = jnp.dot(a.astype(jnp.bfloat16), h1_ref[0],
                   preferred_element_type=jnp.float32)               # (tq, G)
    self2 = h1_ref[0, pl.ds(row0, tq), :].astype(jnp.float32)
    pre = ((agg2 + self2) * inv_deg).astype(jnp.bfloat16)
    out = _gelu_tanh(jnp.dot(pre, w2_ref[...], preferred_element_type=jnp.float32)
                     + b2_ref[...]) * qmask
    out_ref[0] = out.astype(out_ref.dtype)

    # explicit (dependent) graph: one-hot adjacency from dependency heads
    heads = heads_ref[0]                                             # (tq, 1) i32
    col = lax.broadcasted_iota(jnp.int32, (tq, a.shape[-1]), 1)
    dep_ref[0] = ((heads == col).astype(jnp.float32) * qmask).astype(dep_ref.dtype)


def _gcn2_dep(lat, h1, w2, b2, qmask, heads, *, tq):
    B, Tp, _ = lat.shape
    Gp = w2.shape[1]
    nq = Tp // tq
    kernel = functools.partial(_gcn2_dep_kernel, tq=tq)

    block_bytes = (
        2 * _nbytes((1, tq, Tp), jnp.float32)                 # lat tile
        + 2 * _nbytes((1, Tp, Gp), jnp.bfloat16)              # full h1 (revisit over q)
        + 2 * _nbytes((Gp, Gp), jnp.bfloat16)                 # w2
        + 2 * _nbytes((1, Gp), jnp.float32)                   # b2
        + 2 * (_nbytes((1, tq, 1), jnp.float32) + _nbytes((1, tq, 1), jnp.int32))
        + 2 * (_nbytes((1, tq, Gp), jnp.float32) + _nbytes((1, tq, Tp), jnp.float32)))
    temp_bytes = 4 * tq * Tp * 4 + 6 * tq * Gp * 4

    return pl.pallas_call(
        kernel,
        out_shape=(
            jax.ShapeDtypeStruct((B, Tp, Gp), jnp.float32),   # GCN output
            jax.ShapeDtypeStruct((B, Tp, Tp), jnp.float32),   # dependent graph
        ),
        grid=(B, nq),
        in_specs=[
            pl.BlockSpec((1, tq, Tp), lambda b, q: (b, q, 0)),
            pl.BlockSpec((1, Tp, Gp), lambda b, q: (b, 0, 0)),
            _weight_spec(w2),
            _weight_spec(b2),
            pl.BlockSpec((1, tq, 1), lambda b, q: (b, q, 0)),
            pl.BlockSpec((1, tq, 1), lambda b, q: (b, q, 0)),
        ],
        out_specs=(
            pl.BlockSpec((1, tq, Gp), lambda b, q: (b, q, 0)),
            pl.BlockSpec((1, tq, Tp), lambda b, q: (b, q, 0)),
        ),
        compiler_params=pltpu.CompilerParams(
            dimension_semantics=("parallel", "parallel"),
            vmem_limit_bytes=_vmem_limit(block_bytes, temp_bytes)),
    )(lat, h1, w2, b2, qmask, heads)


# ----------------------------------------------------------------------------
# GraphEncoder forward (graph_type = 'latent')
# ----------------------------------------------------------------------------
def graph_encoder_forward(params, input_seq, mask, dep_heads, *, tq=128):
    """input_seq: [B,T,D] f32; mask: [B,T] f32 (1 valid / 0 pad); dep_heads: [B,T] i32.

    tq must be a multiple of 128; 128 works everywhere, 256 can help on v6e (128 MiB VMEM).
    """
    B, T, D = input_seq.shape
    H = params["wq"].shape[1]
    G = params["w_gcn1"].shape[1]

    # Pad seq / feature dims to lane-dense multiples of 128 (zero padding is exact:
    # padded keys are masked out of the softmax and padded feature columns stay zero).
    Tp = _round_up(T, tq)
    Dp = _round_up(D, LANE)
    Hp = _round_up(H, LANE)
    Gp = _round_up(G, LANE)

    maskf = mask.astype(jnp.float32)
    x_p = _pad_axis(_pad_axis(input_seq, 1, Tp), 2, Dp).astype(jnp.bfloat16)
    mask_p = _pad_axis(maskf, 1, Tp)
    kmask = mask_p.reshape(B, 1, Tp)
    qmask = mask_p.reshape(B, Tp, 1)
    heads_p = _pad_axis(dep_heads.astype(jnp.int32), 1, Tp).reshape(B, Tp, 1)

    wq = _pad_axis(_pad_axis(params["wq"], 0, Dp), 1, Hp)
    wk = _pad_axis(_pad_axis(params["wk"], 0, Dp), 1, Hp)
    wqk = jnp.stack([wq, wk], axis=0).astype(jnp.bfloat16)          # (2, Dp, Hp)
    w1 = _pad_axis(_pad_axis(params["w_gcn1"], 0, Dp), 1, Gp).astype(jnp.bfloat16)
    b1 = _pad_axis(params["b_gcn1"], 1, Gp).astype(jnp.float32)
    w2 = _pad_axis(_pad_axis(params["w_gcn2"], 0, Gp), 1, Gp).astype(jnp.bfloat16)
    b2 = _pad_axis(params["b_gcn2"], 1, Gp).astype(jnp.float32)

    lat_p, ent_p, h1_p = _latent_gcn1(x_p, wqk, w1, b1, kmask, qmask,
                                      latent_h=H, tq=tq)
    out_p, dep_p = _gcn2_dep(lat_p, h1_p, w2, b2, qmask, heads_p, tq=tq)

    # selection loss: masked mean of the per-row entropy emitted by kernel 1
    ent = ent_p[:, :T, 0]                                            # [B, T]
    selection_loss = jnp.sum(ent * maskf) / jnp.maximum(jnp.sum(maskf), 1.0)

    return (out_p[:, :T, :G], lat_p[:, :T, :T], dep_p[:, :T, :T], selection_loss)


def init_params(key, inp_dim, latent_hidden, gcn_hidden):
    ks = jax.random.split(key, 4)
    s = 0.02
    return {
        "wq": (jax.random.normal(ks[0], (inp_dim, latent_hidden)) * s).astype(jnp.float32),
        "wk": (jax.random.normal(ks[1], (inp_dim, latent_hidden)) * s).astype(jnp.float32),
        "w_gcn1": (jax.random.normal(ks[2], (inp_dim, gcn_hidden)) * s).astype(jnp.float32),
        "b_gcn1": jnp.zeros((1, gcn_hidden), jnp.float32),
        "w_gcn2": (jax.random.normal(ks[3], (gcn_hidden, gcn_hidden)) * s).astype(jnp.float32),
        "b_gcn2": jnp.zeros((1, gcn_hidden), jnp.float32),
    }


if __name__ == "__main__":
    B, T, D = 2, 8, 32           # batch, seq, input_size
    LATENT_H, GCN_H = 32, 32     # latent_encoder hidden, gcn_hidden

    root = jax.random.PRNGKey(0)
    kx, km, kh, kp = jax.random.split(root, 4)

    input_seq = jax.random.normal(kx, (B, T, D), dtype=jnp.float32)
    lengths = jnp.array([T, 5], dtype=jnp.int32)
    mask = (jnp.arange(T)[None, :] < lengths[:, None]).astype(jnp.float32)   # [B, T]
    dep_heads = jax.random.randint(kh, (B, T), 0, T, dtype=jnp.int32)        # [B, T]

    params = init_params(kp, D, LATENT_H, GCN_H)

    fwd = jax.jit(functools.partial(graph_encoder_forward, params))
    output, latent_g, dependent_g, sel_loss = fwd(input_seq, mask, dep_heads)
    jax.block_until_ready((output, latent_g, dependent_g, sel_loss))

    assert output.shape == (B, T, GCN_H)
    assert latent_g.shape == (B, T, T)
    assert dependent_g.shape == (B, T, T)
    assert bool(jnp.all(jnp.isfinite(output)))
    assert bool(jnp.all(jnp.isfinite(latent_g)))
    assert bool(jnp.all(jnp.isfinite(dependent_g)))
    assert bool(jnp.isfinite(sel_loss))
    # valid rows of the latent graph should be (near-exact) probability rows
    row_sums = jnp.sum(latent_g, axis=-1)
    assert bool(jnp.all(jnp.abs(row_sums * mask - mask) < 1e-3))
    print("KERNEL_OK")
</pallas_src>

<mosaic_0001>
module attributes {stable_mosaic.version = 11 : i64} {
  func.func @_latent_gcn1_kernel(%arg0: i32, %arg1: i32, %arg2: memref<1x128x128xbf16, #tpu.memory_space<vmem>>, %arg3: memref<2x128x128xbf16, #tpu.memory_space<vmem>>, %arg4: memref<128x128xbf16, #tpu.memory_space<vmem>>, %arg5: memref<1x128xf32, #tpu.memory_space<vmem>>, %arg6: memref<1x1x128xf32, #tpu.memory_space<vmem>>, %arg7: memref<1x128x1xf32, #tpu.memory_space<vmem>>, %arg8: memref<1x128x128xf32, #tpu.memory_space<vmem>>, %arg9: memref<1x128x1xf32, #tpu.memory_space<vmem>>, %arg10: memref<1x128x128xbf16, #tpu.memory_space<vmem>>, %arg11: memref<128x128xbf16, #tpu.memory_space<vmem>>, %arg12: memref<128x128xbf16, #tpu.memory_space<vmem>>) attributes {dimension_semantics = [#tpu.dimension_semantics<parallel>, #tpu.dimension_semantics<arbitrary>], iteration_bounds = array<i64: 2, 1>, scalar_prefetch = 0 : i64, scratch_operands = 2 : i64, tpu.core_type = #tpu.core_type<tc>, window_params = [{transform_indices = @transform_0, window_bounds = array<i64: 1, 128, 128>}, {pipeline_mode = #tpu.pipeline_mode<synchronous>, transform_indices = @transform_1, window_bounds = array<i64: 2, 128, 128>}, {pipeline_mode = #tpu.pipeline_mode<synchronous>, transform_indices = @transform_2, window_bounds = array<i64: 128, 128>}, {pipeline_mode = #tpu.pipeline_mode<synchronous>, transform_indices = @transform_3, window_bounds = array<i64: 1, 128>}, {transform_indices = @transform_4, window_bounds = array<i64: 1, 1, 128>}, {transform_indices = @transform_5, window_bounds = array<i64: 1, 128, 1>}, {transform_indices = @transform_6, window_bounds = array<i64: 1, 128, 128>}, {transform_indices = @transform_7, window_bounds = array<i64: 1, 128, 1>}, {transform_indices = @transform_8, window_bounds = array<i64: 1, 128, 128>}]} {
    %c128_i32 = arith.constant 128 : i32
    %0 = arith.muli %arg1, %c128_i32 : i32
    %1 = tpu.assume_multiple %0, 128 : i32
    %c0_i32 = arith.constant 0 : i32
    %2 = arith.cmpi eq, %arg1, %c0_i32 : i32
    %3 = arith.extui %2 : i1 to i32
    %c0_i32_0 = arith.constant 0 : i32
    %4 = arith.cmpi ne, %3, %c0_i32_0 : i32
    scf.if %4 {
      %c0_42 = arith.constant 0 : index
      %c0_43 = arith.constant 0 : index
      %c0_44 = arith.constant 0 : index
      %90 = vector.load %arg2[%c0_42, %c0_43, %c0_44] : memref<1x128x128xbf16, #tpu.memory_space<vmem>>, vector<1x128x128xbf16>
      %91 = vector.shape_cast %90 : vector<1x128x128xbf16> to vector<128x128xbf16>
      %c1 = arith.constant 1 : index
      %c0_45 = arith.constant 0 : index
      %c0_46 = arith.constant 0 : index
      %92 = vector.load %arg3[%c1, %c0_45, %c0_46] : memref<2x128x128xbf16, #tpu.memory_space<vmem>>, vector<1x128x128xbf16>
      %93 = vector.shape_cast %92 : vector<1x128x128xbf16> to vector<128x128xbf16>
      %cst_47 = arith.constant dense<0.000000e+00> : vector<128x128xf32>
      %94 = tpu.matmul %91, %93, %cst_47 {dimension_numbers = #tpu.dot_dimension_numbers<[1], [0], [0], [1], [0, 0, 1, 1], [], []>} : vector<128x128xbf16>, vector<128x128xbf16>, vector<128x128xf32> -> vector<128x128xf32>
      %95 = arith.truncf %94 : vector<128x128xf32> to vector<128x128xbf16>
      %c0_48 = arith.constant 0 : index
      %c0_49 = arith.constant 0 : index
      %96 = vector.load %arg11[%c0_48, %c0_49] : memref<128x128xbf16, #tpu.memory_space<vmem>>, vector<128x128xbf16>
      tpu.vector_store %arg11[%c0_48, %c0_49], %95 {strides = array<i32>} : memref<128x128xbf16, #tpu.memory_space<vmem>>, vector<128x128xbf16>,
      %c0_50 = arith.constant 0 : index
      %c0_51 = arith.constant 0 : index
      %97 = vector.load %arg4[%c0_50, %c0_51] : memref<128x128xbf16, #tpu.memory_space<vmem>>, vector<128x128xbf16>
      %cst_52 = arith.constant dense<0.000000e+00> : vector<128x128xf32>
      %98 = tpu.matmul %91, %97, %cst_52 {dimension_numbers = #tpu.dot_dimension_numbers<[1], [0], [0], [1], [0, 0, 1, 1], [], []>} : vector<128x128xbf16>, vector<128x128xbf16>, vector<128x128xf32> -> vector<128x128xf32>
      %99 = arith.truncf %98 : vector<128x128xf32> to vector<128x128xbf16>
      %c0_53 = arith.constant 0 : index
      %c0_54 = arith.constant 0 : index
      %100 = vector.load %arg12[%c0_53, %c0_54] : memref<128x128xbf16, #tpu.memory_space<vmem>>, vector<128x128xbf16>
      tpu.vector_store %arg12[%c0_53, %c0_54], %99 {strides = array<i32>} : memref<128x128xbf16, #tpu.memory_space<vmem>>, vector<128x128xbf16>,
    } else {
    }
    %c0 = arith.constant 0 : index
    %5 = arith.index_cast %1 : i32 to index
    %c0_1 = arith.constant 0 : index
    %6 = vector.load %arg2[%c0, %5, %c0_1] : memref<1x128x128xbf16, #tpu.memory_space<vmem>>, vector<1x128x128xbf16>
    %7 = vector.shape_cast %6 : vector<1x128x128xbf16> to vector<128x128xbf16>
    %c0_2 = arith.constant 0 : index
    %c0_3 = arith.constant 0 : index
    %c0_4 = arith.constant 0 : index
    %8 = vector.load %arg3[%c0_2, %c0_3, %c0_4] : memref<2x128x128xbf16, #tpu.memory_space<vmem>>, vector<1x128x128xbf16>
    %9 = vector.shape_cast %8 : vector<1x128x128xbf16> to vector<128x128xbf16>
    %cst = arith.constant dense<0.000000e+00> : vector<128x128xf32>
    %10 = tpu.matmul %7, %9, %cst {dimension_numbers = #tpu.dot_dimension_numbers<[1], [0], [0], [1], [0, 0, 1, 1], [], []>} : vector<128x128xbf16>, vector<128x128xbf16>, vector<128x128xf32> -> vector<128x128xf32>
    %11 = arith.truncf %10 : vector<128x128xf32> to vector<128x128xbf16>
    %c0_5 = arith.constant 0 : index
    %c0_6 = arith.constant 0 : index
    %12 = vector.load %arg11[%c0_5, %c0_6] : memref<128x128xbf16, #tpu.memory_space<vmem>>, vector<128x128xbf16>
    %cst_7 = arith.constant dense<0.000000e+00> : vector<128x128xf32>
    %13 = tpu.matmul %11, %12, %cst_7 {dimension_numbers = #tpu.dot_dimension_numbers<[1], [1], [0], [0], [0, 0, 1, 0], [], []>} : vector<128x128xbf16>, vector<128x128xbf16>, vector<128x128xf32> -> vector<128x128xf32>
    %cst_8 = arith.constant 0.176776692 : f32
    %14 = vector.broadcast %cst_8 : f32 to vector<128x128xf32>
    %15 = arith.mulf %13, %14 : vector<128x128xf32>
    %c0_9 = arith.constant 0 : index
    %c0_10 = arith.constant 0 : index
    %c0_11 = arith.constant 0 : index
    %16 = vector.load %arg6[%c0_9, %c0_10, %c0_11] : memref<1x1x128xf32, #tpu.memory_space<vmem>>, vector<1x1x128xf32>
    %17 = vector.shape_cast %16 : vector<1x1x128xf32> to vector<1x128xf32>
    %c0_12 = arith.constant 0 : index
    %c0_13 = arith.constant 0 : index
    %c0_14 = arith.constant 0 : index
    %18 = vector.load %arg7[%c0_12, %c0_13, %c0_14] : memref<1x128x1xf32, #tpu.memory_space<vmem>>, vector<1x128x1xf32>
    %19 = vector.shape_cast %18 : vector<1x128x1xf32> to vector<128x1xf32>
    %cst_15 = arith.constant 1.000000e+00 : f32
    %20 = vector.broadcast %cst_15 : f32 to vector<1x128xf32>
    %21 = arith.subf %17, %20 : vector<1x128xf32>
    %cst_16 = arith.constant 1.000000e+09 : f32
    %22 = vector.broadcast %cst_16 : f32 to vector<1x128xf32>
    %23 = arith.mulf %21, %22 : vector<1x128xf32>
    %24 = vector.broadcast %23 : vector<1x128xf32> to vector<128x128xf32>
    %25 = arith.addf %15, %24 : vector<128x128xf32>
    %cst_17 = arith.constant dense<0xFF800000> : vector<128xf32>
    %26 = vector.multi_reduction <maximumf>, %25, %cst_17 [1] : vector<128x128xf32> to vector<128xf32>
    %27 = vector.shape_cast %26 : vector<128xf32> to vector<128x1xf32>
    %28 = vector.broadcast %27 : vector<128x1xf32> to vector<128x128xf32>
    %29 = arith.subf %25, %28 : vector<128x128xf32>
    %30 = math.exp %29 : vector<128x128xf32>
    %cst_18 = arith.constant dense<0.000000e+00> : vector<128xf32>
    %31 = vector.multi_reduction <add>, %30, %cst_18 [1] : vector<128x128xf32> to vector<128xf32>
    %32 = vector.shape_cast %31 : vector<128xf32> to vector<128x1xf32>
    %cst_19 = arith.constant 1.000000e+00 : f32
    %33 = vector.broadcast %cst_19 : f32 to vector<128x1xf32>
    %34 = arith.divf %33, %32 : vector<128x1xf32>
    %35 = vector.broadcast %34 : vector<128x1xf32> to vector<128x128xf32>
    %36 = arith.mulf %30, %35 : vector<128x128xf32>
    %37 = vector.broadcast %19 : vector<128x1xf32> to vector<128x128xf32>
    %38 = arith.mulf %36, %37 : vector<128x128xf32>
    %c0_20 = arith.constant 0 : index
    %c0_21 = arith.constant 0 : index
    %c0_22 = arith.constant 0 : index
    %39 = vector.load %arg8[%c0_20, %c0_21, %c0_22] : memref<1x128x128xf32, #tpu.memory_space<vmem>>, vector<1x128x128xf32>
    %40 = vector.shape_cast %39 : vector<1x128x128xf32> to vector<128x128xf32>
    %41 = vector.shape_cast %38 : vector<128x128xf32> to vector<1x128x128xf32>
    tpu.vector_store %arg8[%c0_20, %c0_21, %c0_22], %41 {strides = array<i32>} : memref<1x128x128xf32, #tpu.memory_space<vmem>>, vector<1x128x128xf32>,
    %42 = math.log %32 : vector<128x1xf32>
    %43 = vector.broadcast %27 : vector<128x1xf32> to vector<128x128xf32>
    %44 = arith.subf %25, %43 : vector<128x128xf32>
    %45 = arith.mulf %30, %44 : vector<128x128xf32>
    %cst_23 = arith.constant dense<0.000000e+00> : vector<128xf32>
    %46 = vector.multi_reduction <add>, %45, %cst_23 [1] : vector<128x128xf32> to vector<128xf32>
    %47 = vector.shape_cast %46 : vector<128xf32> to vector<128x1xf32>
    %48 = arith.mulf %47, %34 : vector<128x1xf32>
    %49 = arith.subf %42, %48 : vector<128x1xf32>
    %50 = arith.mulf %49, %19 : vector<128x1xf32>
    %c0_24 = arith.constant 0 : index
    %c0_25 = arith.constant 0 : index
    %c0_26 = arith.constant 0 : index
    %51 = vector.load %arg9[%c0_24, %c0_25, %c0_26] : memref<1x128x1xf32, #tpu.memory_space<vmem>>, vector<1x128x1xf32>
    %52 = vector.shape_cast %51 : vector<1x128x1xf32> to vector<128x1xf32>
    %53 = vector.shape_cast %50 : vector<128x1xf32> to vector<1x128x1xf32>
    tpu.vector_store %arg9[%c0_24, %c0_25, %c0_26], %53 {strides = array<i32>} : memref<1x128x1xf32, #tpu.memory_space<vmem>>, vector<1x128x1xf32>,
    %cst_27 = arith.constant dense<0.000000e+00> : vector<128xf32>
    %54 = vector.multi_reduction <add>, %38, %cst_27 [1] : vector<128x128xf32> to vector<128xf32>
    %55 = vector.shape_cast %54 : vector<128xf32> to vector<128x1xf32>
    %cst_28 = arith.constant 1.000000e+00 : f32
    %56 = vector.broadcast %cst_28 : f32 to vector<128x1xf32>
    %57 = arith.addf %55, %56 : vector<128x1xf32>
    %58 = tpu.reciprocal %57 {approx = true} : vector<128x1xf32> -> vector<128x1xf32>
    %59 = arith.truncf %38 : vector<128x128xf32> to vector<128x128xbf16>
    %c0_29 = arith.constant 0 : index
    %c0_30 = arith.constant 0 : index
    %60 = vector.load %arg12[%c0_29, %c0_30] : memref<128x128xbf16, #tpu.memory_space<vmem>>, vector<128x128xbf16>
    %cst_31 = arith.constant dense<0.000000e+00> : vector<128x128xf32>
    %61 = tpu.matmul %59, %60, %cst_31 {dimension_numbers = #tpu.dot_dimension_numbers<[1], [0], [0], [1], [0, 0, 1, 1], [], []>} : vector<128x128xbf16>, vector<128x128xbf16>, vector<128x128xf32> -> vector<128x128xf32>
    %62 = arith.index_cast %1 : i32 to index
    %c0_32 = arith.constant 0 : index
    %63 = vector.load %arg12[%62, %c0_32] : memref<128x128xbf16, #tpu.memory_space<vmem>>, vector<128x128xbf16>
    %64 = arith.extf %63 : vector<128x128xbf16> to vector<128x128xf32>
    %65 = arith.addf %61, %64 : vector<128x128xf32>
    %66 = vector.broadcast %58 : vector<128x1xf32> to vector<128x128xf32>
    %67 = arith.mulf %65, %66 : vector<128x128xf32>
    %c0_33 = arith.constant 0 : index
    %c0_34 = arith.constant 0 : index
    %68 = vector.load %arg5[%c0_33, %c0_34] : memref<1x128xf32, #tpu.memory_space<vmem>>, vector<1x128xf32>
    %69 = vector.broadcast %68 : vector<1x128xf32> to vector<128x128xf32>
    %70 = arith.addf %67, %69 : vector<128x128xf32>
    %cst_35 = arith.constant 5.000000e-01 : f32
    %71 = vector.broadcast %cst_35 : f32 to vector<128x128xf32>
    %72 = arith.mulf %71, %70 : vector<128x128xf32>
    %cst_36 = arith.constant 4.471500e-02 : f32
    %73 = vector.broadcast %cst_36 : f32 to vector<128x128xf32>
    %74 = arith.mulf %73, %70 : vector<128x128xf32>
    %75 = arith.mulf %74, %70 : vector<128x128xf32>
    %76 = arith.mulf %75, %70 : vector<128x128xf32>
    %77 = arith.addf %70, %76 : vector<128x128xf32>
    %cst_37 = arith.constant 0.797884583 : f32
    %78 = vector.broadcast %cst_37 : f32 to vector<128x128xf32>
    %79 = arith.mulf %78, %77 : vector<128x128xf32>
    %80 = math.tanh %79 : vector<128x128xf32>
    %cst_38 = arith.constant 1.000000e+00 : f32
    %81 = vector.broadcast %cst_38 : f32 to vector<128x128xf32>
    %82 = arith.addf %81, %80 : vector<128x128xf32>
    %83 = arith.mulf %72, %82 : vector<128x128xf32>
    %84 = vector.broadcast %19 : vector<128x1xf32> to vector<128x128xf32>
    %85 = arith.mulf %83, %84 : vector<128x128xf32>
    %86 = arith.truncf %85 : vector<128x128xf32> to vector<128x128xbf16>
    %c0_39 = arith.constant 0 : index
    %c0_40 = arith.constant 0 : index
    %c0_41 = arith.constant 0 : index
    %87 = vector.load %arg10[%c0_39, %c0_40, %c0_41] : memref<1x128x128xbf16, #tpu.memory_space<vmem>>, vector<1x128x128xbf16>
    %88 = vector.shape_cast %87 : vector<1x128x128xbf16> to vector<128x128xbf16>
    %89 = vector.shape_cast %86 : vector<128x128xbf16> to vector<1x128x128xbf16>
    tpu.vector_store %arg10[%c0_39, %c0_40, %c0_41], %89 {strides = array<i32>} : memref<1x128x128xbf16, #tpu.memory_space<vmem>>, vector<1x128x128xbf16>,
    return
  }
  func.func @transform_0(%arg0: i32, %arg1: i32) -> (i32, i32, i32) {
    %c0_i32 = arith.constant 0 : i32
    %c0_i32_0 = arith.constant 0 : i32
    %c0_i32_1 = arith.constant 0 : i32
    return %arg0, %c0_i32, %c0_i32_0 : i32, i32, i32
  }
  func.func @transform_1(%arg0: i32, %arg1: i32) -> (i32, i32, i32) {
    %c0_i32 = arith.constant 0 : i32
    %c0_i32_0 = arith.constant 0 : i32
    %c0_i32_1 = arith.constant 0 : i32
    %c0_i32_2 = arith.constant 0 : i32
    return %c0_i32, %c0_i32_0, %c0_i32_1 : i32, i32, i32
  }
  func.func @transform_2(%arg0: i32, %arg1: i32) -> (i32, i32) {
    %c0_i32 = arith.constant 0 : i32
    %c0_i32_0 = arith.constant 0 : i32
    %c0_i32_1 = arith.constant 0 : i32
    return %c0_i32, %c0_i32_0 : i32, i32
  }
  func.func @transform_3(%arg0: i32, %arg1: i32) -> (i32, i32) {
    %c0_i32 = arith.constant 0 : i32
    %c0_i32_0 = arith.constant 0 : i32
    %c0_i32_1 = arith.constant 0 : i32
    return %c0_i32, %c0_i32_0 : i32, i32
  }
  func.func @transform_4(%arg0: i32, %arg1: i32) -> (i32, i32, i32) {
    %c0_i32 = arith.constant 0 : i32
    %c0_i32_0 = arith.constant 0 : i32
    %c0_i32_1 = arith.constant 0 : i32
    return %arg0, %c0_i32, %c0_i32_0 : i32, i32, i32
  }
  func.func @transform_5(%arg0: i32, %arg1: i32) -> (i32, i32, i32) {
    %c0_i32 = arith.constant 0 : i32
    %c0_i32_0 = arith.constant 0 : i32
    return %arg0, %arg1, %c0_i32 : i32, i32, i32
  }
  func.func @transform_6(%arg0: i32, %arg1: i32) -> (i32, i32, i32) {
    %c0_i32 = arith.constant 0 : i32
    %c0_i32_0 = arith.constant 0 : i32
    return %arg0, %arg1, %c0_i32 : i32, i32, i32
  }
  func.func @transform_7(%arg0: i32, %arg1: i32) -> (i32, i32, i32) {
    %c0_i32 = arith.constant 0 : i32
    %c0_i32_0 = arith.constant 0 : i32
    return %arg0, %arg1, %c0_i32 : i32, i32, i32
  }
  func.func @transform_8(%arg0: i32, %arg1: i32) -> (i32, i32, i32) {
    %c0_i32 = arith.constant 0 : i32
    %c0_i32_0 = arith.constant 0 : i32
    return %arg0, %arg1, %c0_i32 : i32, i32, i32
  }
}

module attributes {stable_mosaic.version = 11 : i64} {
  func.func @_gcn2_dep_kernel(%arg0: i32, %arg1: i32, %arg2: memref<1x128x128xf32, #tpu.memory_space<vmem>>, %arg3: memref<1x128x128xbf16, #tpu.memory_space<vmem>>, %arg4: memref<128x128xbf16, #tpu.memory_space<vmem>>, %arg5: memref<1x128xf32, #tpu.memory_space<vmem>>, %arg6: memref<1x128x1xf32, #tpu.memory_space<vmem>>, %arg7: memref<1x128x1xi32, #tpu.memory_space<vmem>>, %arg8: memref<1x128x128xf32, #tpu.memory_space<vmem>>, %arg9: memref<1x128x128xf32, #tpu.memory_space<vmem>>) attributes {dimension_semantics = [#tpu.dimension_semantics<parallel>, #tpu.dimension_semantics<parallel>], iteration_bounds = array<i64: 2, 1>, scalar_prefetch = 0 : i64, scratch_operands = 0 : i64, tpu.core_type = #tpu.core_type<tc>, window_params = [{transform_indices = @transform_0, window_bounds = array<i64: 1, 128, 128>}, {transform_indices = @transform_1, window_bounds = array<i64: 1, 128, 128>}, {pipeline_mode = #tpu.pipeline_mode<synchronous>, transform_indices = @transform_2, window_bounds = array<i64: 128, 128>}, {pipeline_mode = #tpu.pipeline_mode<synchronous>, transform_indices = @transform_3, window_bounds = array<i64: 1, 128>}, {transform_indices = @transform_4, window_bounds = array<i64: 1, 128, 1>}, {transform_indices = @transform_5, window_bounds = array<i64: 1, 128, 1>}, {transform_indices = @transform_6, window_bounds = array<i64: 1, 128, 128>}, {transform_indices = @transform_7, window_bounds = array<i64: 1, 128, 128>}]} {
    %c128_i32 = arith.constant 128 : i32
    %0 = arith.muli %arg1, %c128_i32 : i32
    %1 = tpu.assume_multiple %0, 128 : i32
    %c0 = arith.constant 0 : index
    %c0_0 = arith.constant 0 : index
    %c0_1 = arith.constant 0 : index
    %2 = vector.load %arg2[%c0, %c0_0, %c0_1] : memref<1x128x128xf32, #tpu.memory_space<vmem>>, vector<1x128x128xf32>
    %3 = vector.shape_cast %2 : vector<1x128x128xf32> to vector<128x128xf32>
    %c0_2 = arith.constant 0 : index
    %c0_3 = arith.constant 0 : index
    %c0_4 = arith.constant 0 : index
    %4 = vector.load %arg6[%c0_2, %c0_3, %c0_4] : memref<1x128x1xf32, #tpu.memory_space<vmem>>, vector<1x128x1xf32>
    %5 = vector.shape_cast %4 : vector<1x128x1xf32> to vector<128x1xf32>
    %cst = arith.constant dense<0.000000e+00> : vector<128xf32>
    %6 = vector.multi_reduction <add>, %3, %cst [1] : vector<128x128xf32> to vector<128xf32>
    %7 = vector.shape_cast %6 : vector<128xf32> to vector<128x1xf32>
    %cst_5 = arith.constant 1.000000e+00 : f32
    %8 = vector.broadcast %cst_5 : f32 to vector<128x1xf32>
    %9 = arith.addf %7, %8 : vector<128x1xf32>
    %10 = tpu.reciprocal %9 {approx = true} : vector<128x1xf32> -> vector<128x1xf32>
    %11 = arith.truncf %3 : vector<128x128xf32> to vector<128x128xbf16>
    %c0_6 = arith.constant 0 : index
    %c0_7 = arith.constant 0 : index
    %c0_8 = arith.constant 0 : index
    %12 = vector.load %arg3[%c0_6, %c0_7, %c0_8] : memref<1x128x128xbf16, #tpu.memory_space<vmem>>, vector<1x128x128xbf16>
    %13 = vector.shape_cast %12 : vector<1x128x128xbf16> to vector<128x128xbf16>
    %cst_9 = arith.constant dense<0.000000e+00> : vector<128x128xf32>
    %14 = tpu.matmul %11, %13, %cst_9 {dimension_numbers = #tpu.dot_dimension_numbers<[1], [0], [0], [1], [0, 0, 1, 1], [], []>} : vector<128x128xbf16>, vector<128x128xbf16>, vector<128x128xf32> -> vector<128x128xf32>
    %c0_10 = arith.constant 0 : index
    %15 = arith.index_cast %1 : i32 to index
    %c0_11 = arith.constant 0 : index
    %16 = vector.load %arg3[%c0_10, %15, %c0_11] : memref<1x128x128xbf16, #tpu.memory_space<vmem>>, vector<1x128x128xbf16>
    %17 = vector.shape_cast %16 : vector<1x128x128xbf16> to vector<128x128xbf16>
    %18 = arith.extf %17 : vector<128x128xbf16> to vector<128x128xf32>
    %19 = arith.addf %14, %18 : vector<128x128xf32>
    %20 = vector.broadcast %10 : vector<128x1xf32> to vector<128x128xf32>
    %21 = arith.mulf %19, %20 : vector<128x128xf32>
    %22 = arith.truncf %21 : vector<128x128xf32> to vector<128x128xbf16>
    %c0_12 = arith.constant 0 : index
    %c0_13 = arith.constant 0 : index
    %23 = vector.load %arg4[%c0_12, %c0_13] : memref<128x128xbf16, #tpu.memory_space<vmem>>, vector<128x128xbf16>
    %cst_14 = arith.constant dense<0.000000e+00> : vector<128x128xf32>
    %24 = tpu.matmul %22, %23, %cst_14 {dimension_numbers = #tpu.dot_dimension_numbers<[1], [0], [0], [1], [0, 0, 1, 1], [], []>} : vector<128x128xbf16>, vector<128x128xbf16>, vector<128x128xf32> -> vector<128x128xf32>
    %c0_15 = arith.constant 0 : index
    %c0_16 = arith.constant 0 : index
    %25 = vector.load %arg5[%c0_15, %c0_16] : memref<1x128xf32, #tpu.memory_space<vmem>>, vector<1x128xf32>
    %26 = vector.broadcast %25 : vector<1x128xf32> to vector<128x128xf32>
    %27 = arith.addf %24, %26 : vector<128x128xf32>
    %cst_17 = arith.constant 5.000000e-01 : f32
    %28 = vector.broadcast %cst_17 : f32 to vector<128x128xf32>
    %29 = arith.mulf %28, %27 : vector<128x128xf32>
    %cst_18 = arith.constant 4.471500e-02 : f32
    %30 = vector.broadcast %cst_18 : f32 to vector<128x128xf32>
    %31 = arith.mulf %30, %27 : vector<128x128xf32>
    %32 = arith.mulf %31, %27 : vector<128x128xf32>
    %33 = arith.mulf %32, %27 : vector<128x128xf32>
    %34 = arith.addf %27, %33 : vector<128x128xf32>
    %cst_19 = arith.constant 0.797884583 : f32
    %35 = vector.broadcast %cst_19 : f32 to vector<128x128xf32>
    %36 = arith.mulf %35, %34 : vector<128x128xf32>
    %37 = math.tanh %36 : vector<128x128xf32>
    %cst_20 = arith.constant 1.000000e+00 : f32
    %38 = vector.broadcast %cst_20 : f32 to vector<128x128xf32>
    %39 = arith.addf %38, %37 : vector<128x128xf32>
    %40 = arith.mulf %29, %39 : vector<128x128xf32>
    %41 = vector.broadcast %5 : vector<128x1xf32> to vector<128x128xf32>
    %42 = arith.mulf %40, %41 : vector<128x128xf32>
    %c0_21 = arith.constant 0 : index
    %c0_22 = arith.constant 0 : index
    %c0_23 = arith.constant 0 : index
    %43 = vector.load %arg8[%c0_21, %c0_22, %c0_23] : memref<1x128x128xf32, #tpu.memory_space<vmem>>, vector<1x128x128xf32>
    %44 = vector.shape_cast %43 : vector<1x128x128xf32> to vector<128x128xf32>
    %45 = vector.shape_cast %42 : vector<128x128xf32> to vector<1x128x128xf32>
    tpu.vector_store %arg8[%c0_21, %c0_22, %c0_23], %45 {strides = array<i32>} : memref<1x128x128xf32, #tpu.memory_space<vmem>>, vector<1x128x128xf32>,
    %c0_24 = arith.constant 0 : index
    %c0_25 = arith.constant 0 : index
    %c0_26 = arith.constant 0 : index
    %46 = vector.load %arg7[%c0_24, %c0_25, %c0_26] : memref<1x128x1xi32, #tpu.memory_space<vmem>>, vector<1x128x1xi32>
    %47 = vector.shape_cast %46 : vector<1x128x1xi32> to vector<128x1xi32>
    %48 = tpu.iota {dimensions = array<i32: 1>} : vector<128x128xi32>
    %49 = vector.broadcast %47 : vector<128x1xi32> to vector<128x128xi32>
    %50 = arith.cmpi eq, %49, %48 : vector<128x128xi32>
    %51 = arith.extui %50 : vector<128x128xi1> to vector<128x128xi32>
    %52 = arith.sitofp %51 : vector<128x128xi32> to vector<128x128xf32>
    %53 = vector.broadcast %5 : vector<128x1xf32> to vector<128x128xf32>
    %54 = arith.mulf %52, %53 : vector<128x128xf32>
    %c0_27 = arith.constant 0 : index
    %c0_28 = arith.constant 0 : index
    %c0_29 = arith.constant 0 : index
    %55 = vector.load %arg9[%c0_27, %c0_28, %c0_29] : memref<1x128x128xf32, #tpu.memory_space<vmem>>, vector<1x128x128xf32>
    %56 = vector.shape_cast %55 : vector<1x128x128xf32> to vector<128x128xf32>
    %57 = vector.shape_cast %54 : vector<128x128xf32> to vector<1x128x128xf32>
    tpu.vector_store %arg9[%c0_27, %c0_28, %c0_29], %57 {strides = array<i32>} : memref<1x128x128xf32, #tpu.memory_space<vmem>>, vector<1x128x128xf32>,
    return
  }
  func.func @transform_0(%arg0: i32, %arg1: i32) -> (i32, i32, i32) {
    %c0_i32 = arith.constant 0 : i32
    %c0_i32_0 = arith.constant 0 : i32
    return %arg0, %arg1, %c0_i32 : i32, i32, i32
  }
  func.func @transform_1(%arg0: i32, %arg1: i32) -> (i32, i32, i32) {
    %c0_i32 = arith.constant 0 : i32
    %c0_i32_0 = arith.constant 0 : i32
    %c0_i32_1 = arith.constant 0 : i32
    return %arg0, %c0_i32, %c0_i32_0 : i32, i32, i32
  }
  func.func @transform_2(%arg0: i32, %arg1: i32) -> (i32, i32) {
    %c0_i32 = arith.constant 0 : i32
    %c0_i32_0 = arith.constant 0 : i32
    %c0_i32_1 = arith.constant 0 : i32
    return %c0_i32, %c0_i32_0 : i32, i32
  }
  func.func @transform_3(%arg0: i32, %arg1: i32) -> (i32, i32) {
    %c0_i32 = arith.constant 0 : i32
    %c0_i32_0 = arith.constant 0 : i32
    %c0_i32_1 = arith.constant 0 : i32
    return %c0_i32, %c0_i32_0 : i32, i32
  }
  func.func @transform_4(%arg0: i32, %arg1: i32) -> (i32, i32, i32) {
    %c0_i32 = arith.constant 0 : i32
    %c0_i32_0 = arith.constant 0 : i32
    return %arg0, %arg1, %c0_i32 : i32, i32, i32
  }
  func.func @transform_5(%arg0: i32, %arg1: i32) -> (i32, i32, i32) {
    %c0_i32 = arith.constant 0 : i32
    %c0_i32_0 = arith.constant 0 : i32
    return %arg0, %arg1, %c0_i32 : i32, i32, i32
  }
  func.func @transform_6(%arg0: i32, %arg1: i32) -> (i32, i32, i32) {
    %c0_i32 = arith.constant 0 : i32
    %c0_i32_0 = arith.constant 0 : i32
    return %arg0, %arg1, %c0_i32 : i32, i32, i32
  }
  func.func @transform_7(%arg0: i32, %arg1: i32) -> (i32, i32, i32) {
    %c0_i32 = arith.constant 0 : i32
    %c0_i32_0 = arith.constant 0 : i32
    return %arg0, %arg1, %c0_i32 : i32, i32, i32
  }
}

</mosaic_0001>

<bundles_post_ra>
// kernel: graph_encoder_forward.3
= control target key start
LH: loop header
LB: loop body
LE: loop exit
PB: predicated region body
PF: predicated region fallthrough
CT: control target
= control target key end

     0   :  { %s1885_s24 = smov 0   ;;  %s1887_s25 = smov 0   ;;  %s2268_s0 = inlined_call_operand.vmem [shape: f32[2,128,128], index: 0, kind: input, shape index: {}]   ;;  %s2269_s1 = inlined_call_operand.vmem [shape: bf16[2,128,128], index: 1, kind: input, shape index: {}]   ;;  %s2270_s2 = inlined_call_operand.vmem [shape: bf16[128,128], index: 2, kind: input, shape index: {}]   ;;  %s2271_s3 = inlined_call_operand.vmem [shape: f32[1,128], index: 3, kind: input, shape index: {}]   ;;  %s2272_s4 = inlined_call_operand.vmem [shape: f32[2,128,1], index: 4, kind: input, shape index: {}]   ;;  %s2273_s5 = inlined_call_operand.vmem [shape: s32[2,128,1], index: 5, kind: input, shape index: {}]   ;;  %s2274_s6 = inlined_call_operand.vmem [shape: f32[2,128,128], index: 6, kind: output, shape index: {0}]   ;;  %s2275_s7 = inlined_call_operand.vmem [shape: f32[2,128,128], index: 7, kind: output, shape index: {1}]  }
   0x1   :  { %s1889_s26 = smov 0  }
   0x2 LB: > { %s30_s27 = sadd.s32 1, %s1837_s25  ;;  %p1522_p0 = scmp.ge.s32.totalorder %s1841_s26, 1  ;;  %s1841_s26 = sphi %s1889_s26, %s18_s26   ;;  %s1837_s25 = sphi %s1887_s25, %s2277_s25   ;;  %s1833_s24 = sphi %s1885_s24, %s2276_s24  }
   0x3   : > { %p32_p1 = scmp.ge.s32.totalorder %s30_s27, 2  ;;  %p307_p2 = scmp.lt.s32.totalorder %s1841_s26, 3 }
   0x5   : > { %s2279_s27 = smov (%p32_p1, %s30_s27), 0  ;;  %p308_p3 = pnand %p1522_p0, %p307_p2 }
   0x6   : > { %p380_p4 = scmp.lt.s32.totalorder (!%p308_p3), %s1833_s24, 1  ;;  %v1747_v0 = vld [vmem:[%s2270_s2] sm:$0xff] (!%p308_p3)   ;;  %v1748_v1 = vld [vmem:[%s2270_s2 + $0x8] sm:$0xff] (!%p308_p3)   ;;  %v1749_v21 = vld [vmem:[%s2270_s2 + $0x10] sm:$0xff] (!%p308_p3)   ;;  %v1843_v39 = vmov (!%p308_p3), 0  }
   0x7   : > { %311 = sbr.rel (%p308_p3) target bundleno = 550 (0x226), region = 44  ;;  %1679 = vmatprep.subr.bf16.mxu1 (!%p308_p3), %v1747_v0  ;;  %v1750_v24 = vld [vmem:[%s2270_s2 + $0x18] sm:$0xff] (!%p308_p3)   ;;  %v1751_v29 = vld [vmem:[%s2270_s2 + $0x20] sm:$0xff] (!%p308_p3)   ;;  %v1752_v32 = vld [vmem:[%s2270_s2 + $0x28] sm:$0xff] (!%p308_p3)   ;;  %1738 = vset.pattern.permute.xlu1 (!%p308_p3), %v1843_v39 }
   0x8   : > { %1680 = vmatpush3.bf16.msra.mxu1 (!%p308_p3), %v1747_v0  ;;  %v1753_v38 = vld [vmem:[%s2270_s2 + $0x30] sm:$0xff] (!%p308_p3)   ;;  %1737 = vset.pattern.permute.xlu0 (!%p308_p3), %v1843_v39  ;;  %v1754_v41 = vld [vmem:[%s2270_s2 + $0x38] sm:$0xff] (!%p308_p3)  }
   0x9   : > { %1681 = vmatprep.subr.bf16.mxu1 (!%p308_p3), %v1748_v1 }
   0xc   : > { %1682 = vmatpush3.bf16.msra.mxu1 (!%p308_p3), %v1748_v1 }
   0xd   : > { %1683 = vmatprep.subr.bf16.mxu1 (!%p308_p3), %v1749_v21 }
   0xe   : > { %s2281_s24 = smov (!%p380_p4, %s1833_s24), 1 }
   0xf   : > { %s1571_s9 = sshll.u32 %s2281_s24, 6  ;;  %s1916_s13 = sshll.u32 %s2281_s24, 7 }
  0x10   : > { %s1912_s12 = scalar_lea.vmem %s2269_s1, %s1571_s9  ;;  %s1923_s16 = scalar_lea.vmem %s2268_s0, %s1916_s13  ;;  %1684 = vmatpush3.bf16.msra.mxu1 %v1749_v21 }
  0x11   : > { %v1739_v2 = vld [vmem:[%s1912_s12] sm:$0xff]   ;;  %v1740_v3 = vld [vmem:[%s1912_s12 + $0x8] sm:$0xff]   ;;  %v1741_v4 = vld [vmem:[%s1912_s12 + $0x10] sm:$0xff]   ;;  %1685 = vmatprep.subr.bf16.mxu1 %v1750_v24  ;;  %s1965_s9 = scalar_lea.vmem %s2272_s4, %s1916_s13  ;;  %s2059_s18 = scalar_lea.vmem %s2275_s7, %s1916_s13 }
  0x12   : > { %1647 = vmatprep.subr.bf16.mxu0 %v1739_v2  ;;  %v1742_v5 = vld [vmem:[%s1912_s12 + $0x18] sm:$0xff]   ;;  %v436_v6 = vld [vmem:[%s1923_s16] sm:$0xff]  ;;  %v437_v7 = vld [vmem:[%s1923_s16 + $0x8] sm:$0xff]  ;;  %s2180_s23 = scalar_lea.vmem %s2274_s6, %s1916_s13 }
  0x13   : > { %1648 = vmatpush3.bf16.msra.mxu0 %v1739_v2  ;;  %v438_v8 = vld [vmem:[%s1923_s16 + $0x10] sm:$0xff]  ;;  %v532_v9 = vpack.c.bf16 %v437_v7, %v436_v6  ;;  %468 = vadd.xlane.f32.xlu0 %v436_v6  ;;  %v1743_v10 = vld [vmem:[%s1912_s12 + $0x20] sm:$0xff]   ;;  %v439_v11 = vld [vmem:[%s1923_s16 + $0x18] sm:$0xff] }
  0x14   : > { %1649 = vmatprep.subr.bf16.mxu0 %v1740_v3  ;;  %472 = vadd.xlane.f32.xlu1 %v438_v8  ;;  %v1744_v12 = vld [vmem:[%s1912_s12 + $0x28] sm:$0xff]   ;;  %v440_v13 = vld [vmem:[%s1923_s16 + $0x20] sm:$0xff]  ;;  %v1745_v15 = vld [vmem:[%s1912_s12 + $0x30] sm:$0xff]   ;;  %v533_v25 = vpack.c.bf16 %v439_v11, %v438_v8 }
  0x15   : > { %1663 = vmatprep.mubr.bf16.mxu0 %v532_v9  ;;  %v441_v14 = vld [vmem:[%s1923_s16 + $0x28] sm:$0xff]  ;;  %v442_v16 = vld [vmem:[%s1923_s16 + $0x30] sm:$0xff]  ;;  %v443_v17 = vld [vmem:[%s1923_s16 + $0x38] sm:$0xff]  ;;  %1686 = vmatpush3.bf16.msra.mxu1 %v1750_v24 }
  0x16   : > { %v1746_v18 = vld [vmem:[%s1912_s12 + $0x38] sm:$0xff]   ;;  %v444_v19 = vld [vmem:[%s1923_s16 + $0x40] sm:$0xff]  ;;  %v445_v20 = vld [vmem:[%s1923_s16 + $0x48] sm:$0xff]  ;;  %v534_v26 = vpack.c.bf16 %v441_v14, %v440_v13  ;;  %1687 = vmatprep.subr.bf16.mxu1 %v1751_v29  ;;  %v535_v33 = vpack.c.bf16 %v443_v17, %v442_v16 }
  0x17   : > { %1650 = vmatpush3.bf16.msra.mxu0 %v1740_v3  ;;  %470 = vadd.xlane.f32.xlu0 %v437_v7  ;;  %v446_v22 = vld [vmem:[%s1923_s16 + $0x50] sm:$0xff]  ;;  %v447_v23 = vld [vmem:[%s1923_s16 + $0x58] sm:$0xff]  ;;  %v448_v27 = vld [vmem:[%s1923_s16 + $0x60] sm:$0xff]  ;;  %v536_v34 = vpack.c.bf16 %v445_v20, %v444_v19 }
  0x18   : > { %1651 = vmatprep.subr.bf16.mxu0 %v1741_v4  ;;  %474 = vadd.xlane.f32.xlu1 %v439_v11  ;;  %v449_v28 = vld [vmem:[%s1923_s16 + $0x68] sm:$0xff]  ;;  %v450_v30 = vld [vmem:[%s1923_s16 + $0x70] sm:$0xff]  ;;  %v451_v31 = vld [vmem:[%s1923_s16 + $0x78] sm:$0xff]  ;;  %v537_v35 = vpack.c.bf16 %v447_v23, %v446_v22  ;;  %s1988_s16 = scalar_lea.vmem %s2273_s5, %s1916_s13 }
  0x19   : > { %1688 = vmatpush3.bf16.msra.mxu1 %v1751_v29  ;;  %v538_v36 = vpack.c.bf16 %v449_v28, %v448_v27  ;;  %v539_v37 = vpack.c.bf16 %v451_v31, %v450_v30  ;;  %v453_v40 = vld [vmem:[%s1965_s9 + $0x8] sm:$0xff]  ;;  %v454_v42 = vld [vmem:[%s1965_s9 + $0x10] sm:$0xff]  ;;  %v455_v43 = vld [vmem:[%s1965_s9 + $0x18] sm:$0xff] }
  0x1a   : > { %1689 = vmatprep.subr.bf16.mxu1 %v1752_v32  ;;  %v456_v44 = vld [vmem:[%s1965_s9 + $0x20] sm:$0xff]  ;;  %v457_v45 = vld [vmem:[%s1965_s9 + $0x28] sm:$0xff]  ;;  %v458_v46 = vld [vmem:[%s1965_s9 + $0x30] sm:$0xff] }
  0x1b   : > { %1652 = vmatpush3.bf16.msra.mxu0 %v1741_v4  ;;  %476 = vadd.xlane.f32.xlu0 %v440_v13  ;;  %v459_v47 = vld [vmem:[%s1965_s9 + $0x38] sm:$0xff]  ;;  %v452_v48 = vld [vmem:[%s1965_s9] sm:$0xff]  ;;  %v461_v50 = vld [vmem:[%s1965_s9 + $0x48] sm:$0xff] }
  0x1c   : > { %1653 = vmatprep.subr.bf16.mxu0 %v1742_v5  ;;  %478 = vadd.xlane.f32.xlu1 %v441_v14  ;;  %v460_v49 = vld [vmem:[%s1965_s9 + $0x40] sm:$0xff]  ;;  %v462_v51 = vld [vmem:[%s1965_s9 + $0x50] sm:$0xff]  ;;  %v463_v52 = vld [vmem:[%s1965_s9 + $0x58] sm:$0xff] }
  0x1d   : > { %1690 = vmatpush3.bf16.msra.mxu1 %v1752_v32  ;;  %v464_v53 = vld [vmem:[%s1965_s9 + $0x60] sm:$0xff]  ;;  %v465_v54 = vld [vmem:[%s1965_s9 + $0x68] sm:$0xff]  ;;  %v466_v55 = vld [vmem:[%s1965_s9 + $0x70] sm:$0xff] }
  0x1e   : > { %1691 = vmatprep.subr.bf16.mxu1 %v1753_v38  ;;  %v1185_v56 = vld [vmem:[%s1988_s16] sm:$0xff]  ;;  %v1186_v57 = vld [vmem:[%s1988_s16 + $0x8] sm:$0xff]  ;;  %v1187_v58 = vld [vmem:[%s1988_s16 + $0x10] sm:$0xff] }
  0x1f   : > { %1654 = vmatpush3.bf16.msra.mxu0 %v1742_v5  ;;  %480 = vadd.xlane.f32.xlu0 %v442_v16  ;;  %v1188_v59 = vld [vmem:[%s1988_s16 + $0x18] sm:$0xff]  ;;  %v1189_v60 = vld [vmem:[%s1988_s16 + $0x20] sm:$0xff]  ;;  %v1190_v61 = vld [vmem:[%s1988_s16 + $0x28] sm:$0xff] }
  0x20   : > { %1655 = vmatprep.subr.bf16.mxu0 %v1743_v10  ;;  %482 = vadd.xlane.f32.xlu1 %v443_v17  ;;  %v1191_v62 = vld [vmem:[%s1988_s16 + $0x30] sm:$0xff]  ;;  %v1192_v63 = vld [vmem:[%s1988_s16 + $0x38] sm:$0xff]  ;;  %v1193_v0 = vld [vmem:[%s1988_s16 + $0x40] sm:$0xff] }
  0x21   : > { %1692 = vmatpush3.bf16.msra.mxu1 %v1753_v38  ;;  %v1194_v1 = vld [vmem:[%s1988_s16 + $0x48] sm:$0xff]  ;;  %v1195_v2 = vld [vmem:[%s1988_s16 + $0x50] sm:$0xff]  ;;  %v1196_v3 = vld [vmem:[%s1988_s16 + $0x58] sm:$0xff] }
  0x22   : > { %1693 = vmatprep.subr.bf16.mxu1 %v1754_v41  ;;  %v1197_v4 = vld [vmem:[%s1988_s16 + $0x60] sm:$0xff]  ;;  %v1198_v5 = vld [vmem:[%s1988_s16 + $0x68] sm:$0xff]  ;;  %v1199_v6 = vld [vmem:[%s1988_s16 + $0x70] sm:$0xff] }
  0x23   : > { %1656 = vmatpush3.bf16.msra.mxu0 %v1743_v10  ;;  %484 = vadd.xlane.f32.xlu0 %v444_v19  ;;  %v1200_v7 = vld [vmem:[%s1988_s16 + $0x78] sm:$0xff] }
  0x24   : > { %1657 = vmatprep.subr.bf16.mxu0 %v1744_v12  ;;  %486 = vadd.xlane.f32.xlu1 %v445_v20  ;;  %v467_v8 = vld [vmem:[%s1965_s9 + $0x78] sm:$0xff] }
  0x25   : > { %1694 = vmatpush3.bf16.msra.mxu1 %v1754_v41 }
  0x27   : > { %1658 = vmatpush3.bf16.msra.mxu0 %v1744_v12  ;;  %488 = vadd.xlane.f32.xlu0 %v446_v22 }
  0x28   : > { %1659 = vmatprep.subr.bf16.mxu0 %v1745_v15  ;;  %490 = vadd.xlane.f32.xlu1 %v447_v23 }
  0x2b   : > { %1660 = vmatpush3.bf16.msra.mxu0 %v1745_v15  ;;  %492 = vadd.xlane.f32.xlu0 %v448_v27  ;;  %v1577_v27 = vld [vmem:[%s1912_s12] sm:$0xff]  }
  0x2c   : > { %1661 = vmatprep.subr.bf16.mxu0 %v1746_v18  ;;  %494 = vadd.xlane.f32.xlu1 %v449_v28  ;;  %v1578_v32 = vunpack.c.l.bf16 %v1577_v27 }
  0x2f   : > { %1662 = vmatpush3.bf16.msra.mxu0 %v1746_v18  ;;  %496 = vadd.xlane.f32.xlu0 %v450_v30 }
  0x30   : > { %498 = vadd.xlane.f32.xlu1 %v451_v31 }
  0x32   : > { %1664 = vmatmul.mubr.bf16.vlgmr.msra.gmra.mrb[0].mxu0 %v533_v25  ;;  %v1608_v25 = vld [vmem:[%s1912_s12 + $0x8] sm:$0xff]  }
  0x33   : > { %1667 = vmatprep.mubr.bf16.mxu0 %v534_v26  ;;  %v1582_v31 = vunpack.c.l.bf16 %v1608_v25 }
  0x3a   : > { %1668 = vmatmul.mubr.bf16.gmra.mrb[4].mxu0 %v535_v33 }
  0x3b   : > { %1671 = vmatprep.mubr.bf16.mxu0 %v536_v34 }
  0x41   : > { %1080 = vperm.xlu1 %1738, %v453_v40  }
  0x42   : > { %1672 = vmatmul.mubr.bf16.gmra.mrb[8].mxu0 %v537_v35  ;;  %v1583_v35 = vunpack.c.h.bf16 %v1608_v25 }
  0x43   : > { %1675 = vmatprep.mubr.bf16.mxu0 %v538_v36 }
  0x45   : > { %1085 = vperm.xlu1 %1738, %v454_v42   ;;  %1075 = vperm.xlu0 %1737, %v452_v48  }
  0x49   : > { %1090 = vperm.xlu1 %1738, %v455_v43   ;;  %1120 = vperm.xlu0 %1737, %v461_v50  }
  0x4a   : > { %1676 = vmatmul.mubr.bf16.gmra.mrb[12].mxu0 %v539_v37  ;;  %v1579_v37 = vunpack.c.h.bf16 %v1577_v27 }
  0x4d   : > { %1095 = vperm.xlu1 %1738, %v456_v44   ;;  %1130 = vperm.xlu0 %1737, %v463_v52  }
  0x51   : > { %1100 = vperm.xlu1 %1738, %v457_v45   ;;  %1140 = vperm.xlu0 %1737, %v465_v54   ;;  %v1610_v45 = vld [vmem:[%s1912_s12 + $0x18] sm:$0xff]  }
  0x55   : > { %1105 = vperm.xlu1 %1738, %v458_v46   ;;  %1204 = vperm.xlu0 %1737, %v1185_v56  }
  0x59   : > { %1110 = vperm.xlu1 %1738, %v459_v47   ;;  %1210 = vperm.xlu0 %1737, %v1187_v58   ;;  %v1590_v58 = vunpack.c.l.bf16 %v1610_v45 }
  0x5d   : > { %1115 = vperm.xlu1 %1738, %v460_v49   ;;  %1216 = vperm.xlu0 %1737, %v1189_v60  }
  0x61   : > { %1125 = vperm.xlu1 %1738, %v462_v51   ;;  %1222 = vperm.xlu0 %1737, %v1191_v62   ;;  %v1609_v51 = vld [vmem:[%s1912_s12 + $0x10] sm:$0xff]  }
  0x65   : > { %1135 = vperm.xlu1 %1738, %v464_v53   ;;  %1228 = vperm.xlu0 %1737, %v1193_v0   ;;  %v1591_v0 = vunpack.c.h.bf16 %v1610_v45 }
  0x69   : > { %1145 = vperm.xlu1 %1738, %v466_v55   ;;  %1234 = vperm.xlu0 %1737, %v1195_v2  }
  0x6d   : > { %1207 = vperm.xlu1 %1738, %v1186_v57   ;;  %1240 = vperm.xlu0 %1737, %v1197_v4   ;;  %v1587_v4 = vunpack.c.h.bf16 %v1609_v51 }
  0x71   : > { %1213 = vperm.xlu1 %1738, %v1188_v59   ;;  %1246 = vperm.xlu0 %1737, %v1199_v6   ;;  %v1586_v59 = vunpack.c.l.bf16 %v1609_v51 }
  0x75   : > { %1219 = vperm.xlu1 %1738, %v1190_v61   ;;  %1150 = vperm.xlu0 %1737, %v467_v8  }
  0x79   : > { %1225 = vperm.xlu1 %1738, %v1192_v63  }
  0x7d   : > { %1231 = vperm.xlu1 %1738, %v1194_v1  }
  0x81   : > { %1237 = vperm.xlu1 %1738, %v1196_v3  }
  0x85   : > { %1243 = vperm.xlu1 %1738, %v1198_v5  }
  0x89   : > { %1249 = vperm.xlu1 %1738, %v1200_v7  }
  0xa0   : > { %v469_v11 = vpop.xlane.xlu0 %468 }
  0xa1   : > { %v473_v9 = vpop.xlane.xlu1 %472  ;;  %v500_v23 = vadd.f32 1.0, %v469_v11 }
  0xa2   : > { %v502_v19 = vadd.f32 1.0, %v473_v9 }
  0xa4   : > { %v471_v13 = vpop.xlane.xlu0 %470  ;;  %1755 = vrcp.f32 %v502_v19 }
  0xa5   : > { %v475_v10 = vpop.xlane.xlu1 %474  ;;  %v501_v21 = vadd.f32 1.0, %v471_v13 }
  0xa6   : > { %v503_v20 = vadd.f32 1.0, %v475_v10 }
  0xa8   : > { %v477_v15 = vpop.xlane.xlu0 %476  ;;  %1757 = vrcp.f32 %v503_v20 }
  0xa9   : > { %v479_v12 = vpop.xlane.xlu1 %478  ;;  %1759 = vrcp.f32 %v501_v21  ;;  %v504_v30 = vadd.f32 1.0, %v477_v15 }
  0xaa   : > { %1761 = vrcp.f32 %v500_v23  ;;  %v505_v34 = vadd.f32 1.0, %v479_v12  ;;  %v1612_v12 = vld [vmem:[%s1912_s12 + $0x28] sm:$0xff]  }
  0xac   : > { %v481_v17 = vpop.xlane.xlu0 %480 }
  0xad   : > { %v483_v14 = vpop.xlane.xlu1 %482  ;;  %v506_v26 = vadd.f32 1.0, %v481_v17 }
  0xae   : > { %v507_v29 = vadd.f32 1.0, %v483_v14  ;;  %v1756_v38 = vpop.eup %1755 }
  0xaf   : > { %1763 = vrcp.f32 %v506_v26  ;;  %v1598_v26 = vunpack.c.l.bf16 %v1612_v12 }
  0xb0   : > { %v485_v22 = vpop.xlane.xlu0 %484  ;;  %1765 = vrcp.f32 %v507_v29 }
  0xb1   : > { %v487_v16 = vpop.xlane.xlu1 %486  ;;  %1767 = vrcp.f32 %v504_v30  ;;  %v508_v56 = vadd.f32 1.0, %v485_v22 }
  0xb2   : > { %v1758_v42 = vpop.eup %1757  ;;  %1769 = vrcp.f32 %v505_v34  ;;  %v509_v63 = vadd.f32 1.0, %v487_v16 }
  0xb3   : > { %v1760_v47 = vpop.eup %1759 }
  0xb4   : > { %v489_v28 = vpop.xlane.xlu0 %488  ;;  %v1762_v54 = vpop.eup %1761 }
  0xb5   : > { %v491_v18 = vpop.xlane.xlu1 %490  ;;  %v510_v50 = vadd.f32 1.0, %v489_v28 }
  0xb6   : > { %v511_v53 = vadd.f32 1.0, %v491_v18  ;;  %v1611_v18 = vld [vmem:[%s1912_s12 + $0x20] sm:$0xff]  }
  0xb7   : > { %1771 = vrcp.f32 %v510_v50  ;;  %v1594_v29 = vunpack.c.l.bf16 %v1611_v18 }
  0xb8   : > { %v493_v41 = vpop.xlane.xlu0 %492  ;;  %1773 = vrcp.f32 %v511_v53 }
  0xb9   : > { %v2008_v24 = vpop.xlane.xlu1 %494  ;;  %v1764_v6 = vpop.eup %1763  ;;  %1775 = vrcp.f32 %v508_v56  ;;  %v512_v23 = vadd.f32 1.0, %v493_v41 }
  0xba   : > { %v1766_v9 = vpop.eup %1765  ;;  %1777 = vrcp.f32 %v509_v63 }
  0xbb   : > { %v1768_v14 = vpop.eup %1767 }
  0xbc   : > { %v497_v5 = vpop.xlane.xlu0 %496  ;;  %v1770_v21 = vpop.eup %1769 }
  0xbd   : > { %v499_v33 = vpop.xlane.xlu1 %498  ;;  %v514_v17 = vadd.f32 1.0, %v497_v5 }
  0xbe   : > { %v515_v20 = vadd.f32 1.0, %v499_v33  ;;  %v1595_v33 = vunpack.c.h.bf16 %v1611_v18 }
  0xbf   : > { %1779 = vrcp.f32 %v514_v17 }
  0xc0   : > { %1781 = vrcp.f32 %v515_v20 }
  0xc1   : > { %v2013_v46 = vpop.permute.xlu1 %1080  ;;  %1783 = vrcp.f32 %v512_v23 }
  0xc5   : > { %v2016_v62 = vpop.permute.xlu1 %1085 }
  0xc9   : > { %v2019_v13 = vpop.permute.xlu1 %1090 }
  0xcd   : > { %v2022_v30 = vpop.permute.xlu1 %1095 }
 0x105   : > { %v1665_v36 = vpop.f32.mrb[0].mxu0 }
 0x106   : > { %v683_v39 = vadd.f32 %v1665_v36, %v1582_v31  ;;  %v674_v40 = vpop.f32.mrb[1].mxu0  ;;  %v513_v31 = vadd.f32 1.0, %v2008_v24 }
 0x107   : > { %v675_v43 = vadd.f32 %v1578_v32, %v674_v40  ;;  %v1666_v44 = vpop.f32.mrb[2].mxu0  ;;  %v1599_v32 = vunpack.c.h.bf16 %v1612_v12 }
 0x108   : > { %v686_v48 = vadd.f32 %v1666_v44, %v1583_v35  ;;  %v677_v49 = vpop.f32.mrb[3].mxu0  ;;  %v739_v55 = vmul.f32 %v1756_v38, %v683_v39  ;;  %v2026_v44 = vpop.permute.xlu1 %1100  ;;  %1785 = vrcp.f32 %v513_v31 }
 0x109   : > { %v678_v52 = vadd.f32 %v1579_v37, %v677_v49  ;;  %v737_v60 = vmul.f32 %v1762_v54, %v675_v43  ;;  %v1772_v37 = vpop.eup %1771  ;;  %v1614_v43 = vld [vmem:[%s1912_s12 + $0x38] sm:$0xff]  }
 0x10a   : > { %v740_v57 = vmul.f32 %v1758_v42, %v686_v48  ;;  %v1774_v40 = vpop.eup %1773  ;;  %v1613_v48 = vld [vmem:[%s1912_s12 + $0x30] sm:$0xff]   ;;  %v1606_v53 = vunpack.c.l.bf16 %v1614_v43 }
 0x10b   : > { %v738_v61 = vmul.f32 %v1760_v47, %v678_v52  ;;  %v1776_v24 = vpop.eup %1775  ;;  %v1602_v56 = vunpack.c.l.bf16 %v1613_v48  ;;  %v1603_v63 = vunpack.c.h.bf16 %v1613_v48 }
 0x10c   : > { %v754_v1 = vpack.c.bf16 %v740_v57, %v739_v55  ;;  %v1778_v50 = vpop.eup %1777  ;;  %v2029_v57 = vpop.permute.xlu1 %1105 }
 0x10d   : > { %v1669_v2 = vpop.f32.mrb[4].mxu0  ;;  %v753_v3 = vpack.c.bf16 %v738_v61, %v737_v60 }
 0x10e   : > { %v699_v7 = vadd.f32 %v1669_v2, %v1590_v58  ;;  %v690_v8 = vpop.f32.mrb[5].mxu0  ;;  %v1607_v58 = vunpack.c.h.bf16 %v1614_v43 }
 0x10f   : > { %v691_v10 = vadd.f32 %v1586_v59, %v690_v8  ;;  %v1670_v11 = vpop.f32.mrb[6].mxu0  ;;  %1695 = vmatprep.mubr.bf16.mxu1 %v753_v3 }
 0x110   : > { %v702_v15 = vadd.f32 %v1670_v11, %v1591_v0  ;;  %v693_v16 = vpop.f32.mrb[7].mxu0  ;;  %1696 = vmatmul.mubr.bf16.vlgmr.msra.gmra.mrb[0].mxu1 %v754_v1  ;;  %v743_v22 = vmul.f32 %v1764_v6, %v699_v7  ;;  %v1780_v0 = vpop.eup %1779 }
 0x111   : > { %v694_v19 = vadd.f32 %v1587_v4, %v693_v16  ;;  %v741_v27 = vmul.f32 %v1768_v14, %v691_v10  ;;  %v1782_v3 = vpop.eup %1781  ;;  %v2031_v6 = vpop.permute.xlu1 %1110 }
 0x112   : > { %v744_v25 = vmul.f32 %v1766_v9, %v702_v15  ;;  %v1784_v7 = vpop.eup %1783  ;;  %v2033_v11 = vpop.permute.xlu0 %1075 }
 0x113   : > { %v742_v28 = vmul.f32 %v1770_v21, %v694_v19  ;;  %v1786_v12 = vpop.eup %1785 }
 0x114   : > { %v756_v34 = vpack.c.bf16 %v744_v25, %v743_v22 }
 0x115   : > { %v1673_v35 = vpop.f32.mrb[8].mxu0  ;;  %v755_v36 = vpack.c.bf16 %v742_v28, %v741_v27  ;;  %v2035_v18 = vpop.permute.xlu1 %1115 }
 0x116   : > { %v715_v38 = vadd.f32 %v1673_v35, %v1598_v26  ;;  %v706_v39 = vpop.f32.mrb[9].mxu0  ;;  %v2037_v21 = vpop.permute.xlu0 %1120  ;;  %v1201_v26 = vlaneseq }
 0x117   : > { %v707_v41 = vadd.f32 %v1594_v29, %v706_v39  ;;  %v1674_v42 = vpop.f32.mrb[10].mxu0  ;;  %1699 = vmatprep.mubr.bf16.mxu1 %v755_v36 }
 0x118   : > { %v718_v45 = vadd.f32 %v1674_v42, %v1599_v32  ;;  %v709_v47 = vpop.f32.mrb[11].mxu0  ;;  %1700 = vmatmul.mubr.bf16.gmra.mrb[4].mxu1 %v756_v34  ;;  %v747_v51 = vmul.f32 %v1772_v37, %v715_v38  ;;  %v2049_v29 = vand.u32 127, %v1201_v26  ;;  %v1844_v32 = vmov 0.0  }
 0x119   : > { %v710_v49 = vadd.f32 %v1595_v33, %v709_v47  ;;  %v745_v54 = vmul.f32 %v1776_v24, %v707_v41  ;;  %v2039_v22 = vpop.permute.xlu1 %1125 }
 0x11a   : > { %v748_v52 = vmul.f32 %v1774_v40, %v718_v45  ;;  %v2041_v23 = vpop.permute.xlu0 %1130 }
 0x11b   : > { %v746_v55 = vmul.f32 %v1778_v50, %v710_v49 }
 0x11c   : > { %v758_v59 = vpack.c.bf16 %v748_v52, %v747_v51 }
 0x11d   : > { %v1677_v60 = vpop.f32.mrb[12].mxu0  ;;  %v757_v61 = vpack.c.bf16 %v746_v55, %v745_v54  ;;  %v2043_v25 = vpop.permute.xlu1 %1135 }
 0x11e   : > { %v731_v1 = vadd.f32 %v1677_v60, %v1606_v53  ;;  %v722_v2 = vpop.f32.mrb[13].mxu0  ;;  %v2045_v27 = vpop.permute.xlu0 %1140 }
 0x11f   : > { %v723_v4 = vadd.f32 %v1602_v56, %v722_v2  ;;  %v1678_v5 = vpop.f32.mrb[14].mxu0  ;;  %1703 = vmatprep.mubr.bf16.mxu1 %v757_v61 }
 0x120   : > { %v734_v8 = vadd.f32 %v1678_v5, %v1607_v58  ;;  %v725_v9 = vpop.f32.mrb[15].mxu0  ;;  %1704 = vmatmul.mubr.bf16.gmra.mrb[8].mxu1 %v758_v59  ;;  %v751_v14 = vmul.f32 %v1780_v0, %v731_v1 }
 0x121   : > { %v726_v10 = vadd.f32 %v1603_v63, %v725_v9  ;;  %v749_v16 = vmul.f32 %v1784_v7, %v723_v4  ;;  %v2047_v28 = vpop.permute.xlu1 %1145 }
 0x122   : > { %v752_v15 = vmul.f32 %v1782_v3, %v734_v8  ;;  %v1205_v31 = vpop.permute.xlu0 %1204 }
 0x123   : > { %v750_v17 = vmul.f32 %v1786_v12, %v726_v10  ;;  %vm1251_vm0 = vcmp.eq.s32.totalorder %v1205_v31, %v2049_v29 }
 0x124   : > { %v760_v19 = vpack.c.bf16 %v752_v15, %v751_v14  ;;  %v1552_v34 = vsel %vm1251_vm0, 1.0, %v1844_v32 }
 0x125   : > { %v759_v20 = vpack.c.bf16 %v750_v17, %v749_v16  ;;  %v1208_v35 = vpop.permute.xlu1 %1207  ;;  %v1299_v36 = vmul.f32 %v1552_v34, %v2033_v11 }
 0x126   : > { %vm1252_vm1 = vcmp.eq.s32.totalorder %v1208_v35, %v2049_v29  ;;  %v1211_v37 = vpop.permute.xlu0 %1210  ;;  %v2126_v35 = vld [vmem:[%s2271_s3] ss:$0 sm:$0xff] }
 0x127   : > { %1707 = vmatprep.mubr.bf16.mxu1 %v759_v20  ;;  %v1553_v33 = vsel %vm1252_vm1, 1.0, %v1844_v32  ;;  %1315 = vst [vmem:[%s2059_s18] sm:$0xff] %v1299_v36  ;;  %vm1253_vm2 = vcmp.eq.s32.totalorder %v1211_v37, %v2049_v29 }
 0x128   : > { %1708 = vmatmul.mubr.bf16.gmra.mrb[12].mxu1 %v760_v19  ;;  %v1300_v38 = vmul.f32 %v1553_v33, %v2013_v46  ;;  %v1554_v39 = vsel %vm1253_vm2, 1.0, %v1844_v32 }
 0x129   : > { %v1214_v40 = vpop.permute.xlu1 %1213  ;;  %v1301_v41 = vmul.f32 %v1554_v39, %v2016_v62 }
 0x12a   : > { %1316 = vst [vmem:[%s2059_s18 + $0x8] sm:$0xff] %v1300_v38  ;;  %vm1254_vm3 = vcmp.eq.s32.totalorder %v1214_v40, %v2049_v29  ;;  %v1217_v43 = vpop.permute.xlu0 %1216 }
 0x12b   : > { %v1555_v42 = vsel %vm1254_vm3, 1.0, %v1844_v32  ;;  %1317 = vst [vmem:[%s2059_s18 + $0x10] sm:$0xff] %v1301_v41  ;;  %vm1255_vm4 = vcmp.eq.s32.totalorder %v1217_v43, %v2049_v29 }
 0x12c   : > { %v1302_v24 = vmul.f32 %v1555_v42, %v2019_v13  ;;  %v1556_v45 = vsel %vm1255_vm4, 1.0, %v1844_v32 }
 0x12d   : > { %v1220_v47 = vpop.permute.xlu1 %1219  ;;  %v1303_v48 = vmul.f32 %v1556_v45, %v2022_v30 }
 0x12e   : > { %1318 = vst [vmem:[%s2059_s18 + $0x18] sm:$0xff] %v1302_v24  ;;  %vm1256_vm5 = vcmp.eq.s32.totalorder %v1220_v47, %v2049_v29  ;;  %v1223_v50 = vpop.permute.xlu0 %1222 }
 0x12f   : > { %v1557_v49 = vsel %vm1256_vm5, 1.0, %v1844_v32  ;;  %1319 = vst [vmem:[%s2059_s18 + $0x20] sm:$0xff] %v1303_v48  ;;  %vm1257_vm6 = vcmp.eq.s32.totalorder %v1223_v50, %v2049_v29 }
 0x130   : > { %v1304_v51 = vmul.f32 %v1557_v49, %v2026_v44  ;;  %v1558_v52 = vsel %vm1257_vm6, 1.0, %v1844_v32 }
 0x131   : > { %v1226_v53 = vpop.permute.xlu1 %1225  ;;  %v1305_v54 = vmul.f32 %v1558_v52, %v2029_v57 }
 0x132   : > { %1320 = vst [vmem:[%s2059_s18 + $0x28] sm:$0xff] %v1304_v51  ;;  %vm1258_vm7 = vcmp.eq.s32.totalorder %v1226_v53, %v2049_v29  ;;  %v1229_v56 = vpop.permute.xlu0 %1228 }
 0x133   : > { %v1559_v55 = vsel %vm1258_vm7, 1.0, %v1844_v32  ;;  %1321 = vst [vmem:[%s2059_s18 + $0x30] sm:$0xff] %v1305_v54  ;;  %vm1259_vm8 = vcmp.eq.s32.totalorder %v1229_v56, %v2049_v29 }
 0x134   : > { %v1306_v58 = vmul.f32 %v1559_v55, %v2031_v6  ;;  %v1560_v59 = vsel %vm1259_vm8, 1.0, %v1844_v32 }
 0x135   : > { %v1232_v60 = vpop.permute.xlu1 %1231  ;;  %v1307_v61 = vmul.f32 %v1560_v59, %v2035_v18 }
 0x136   : > { %1322 = vst [vmem:[%s2059_s18 + $0x38] sm:$0xff] %v1306_v58  ;;  %vm1260_vm9 = vcmp.eq.s32.totalorder %v1232_v60, %v2049_v29  ;;  %v1235_v0 = vpop.permute.xlu0 %1234 }
 0x137   : > { %v1561_v63 = vsel %vm1260_vm9, 1.0, %v1844_v32  ;;  %1323 = vst [vmem:[%s2059_s18 + $0x40] sm:$0xff] %v1307_v61  ;;  %vm1261_vm10 = vcmp.eq.s32.totalorder %v1235_v0, %v2049_v29 }
 0x138   : > { %v1308_v1 = vmul.f32 %v1561_v63, %v2037_v21  ;;  %v1562_v2 = vsel %vm1261_vm10, 1.0, %v1844_v32 }
 0x139   : > { %v1238_v3 = vpop.permute.xlu1 %1237  ;;  %v1309_v4 = vmul.f32 %v1562_v2, %v2039_v22 }
 0x13a   : > { %1324 = vst [vmem:[%s2059_s18 + $0x48] sm:$0xff] %v1308_v1  ;;  %vm1262_vm11 = vcmp.eq.s32.totalorder %v1238_v3, %v2049_v29  ;;  %v1241_v7 = vpop.permute.xlu0 %1240 }
 0x13b   : > { %v1563_v5 = vsel %vm1262_vm11, 1.0, %v1844_v32  ;;  %1325 = vst [vmem:[%s2059_s18 + $0x50] sm:$0xff] %v1309_v4  ;;  %vm1263_vm12 = vcmp.eq.s32.totalorder %v1241_v7, %v2049_v29 }
 0x13c   : > { %v1310_v8 = vmul.f32 %v1563_v5, %v2041_v23  ;;  %v1564_v9 = vsel %vm1263_vm12, 1.0, %v1844_v32 }
 0x13d   : > { %v1244_v10 = vpop.permute.xlu1 %1243  ;;  %v1311_v12 = vmul.f32 %v1564_v9, %v2043_v25 }
 0x13e   : > { %1326 = vst [vmem:[%s2059_s18 + $0x58] sm:$0xff] %v1310_v8  ;;  %vm1264_vm13 = vcmp.eq.s32.totalorder %v1244_v10, %v2049_v29  ;;  %v1247_v15 = vpop.permute.xlu0 %1246 }
 0x13f   : > { %v1565_v14 = vsel %vm1264_vm13, 1.0, %v1844_v32  ;;  %1327 = vst [vmem:[%s2059_s18 + $0x60] sm:$0xff] %v1311_v12  ;;  %vm1265_vm14 = vcmp.eq.s32.totalorder %v1247_v15, %v2049_v29 }
 0x140   : > { %v1312_v16 = vmul.f32 %v1565_v14, %v2045_v27  ;;  %v1566_v17 = vsel %vm1265_vm14, 1.0, %v1844_v32 }
 0x141   : > { %v1250_v19 = vpop.permute.xlu1 %1249  ;;  %v1313_v20 = vmul.f32 %v1566_v17, %v2047_v28 }
 0x142   : > { %1328 = vst [vmem:[%s2059_s18 + $0x68] sm:$0xff] %v1312_v16  ;;  %vm1266_vm15 = vcmp.eq.s32.totalorder %v1250_v19, %v2049_v29  ;;  %v2118_v31 = vpop.permute.xlu0 %1150 }
 0x143   : > { %v1567_v26 = vsel %vm1266_vm15, 1.0, %v1844_v32  ;;  %1329 = vst [vmem:[%s2059_s18 + $0x70] sm:$0xff] %v1313_v20 }
 0x144   : > { %v1314_v34 = vmul.f32 %v1567_v26, %v2118_v31 }
 0x146   : > { %1330 = vst [vmem:[%s2059_s18 + $0x78] sm:$0xff] %v1314_v34 }
 0x1e3   : > { %v1697_v36 = vpop.f32.mrb[0].mxu1 }
 0x1e4   : > { %v875_v33 = vadd.f32 %v1697_v36, %v2126_v35  ;;  %v866_v37 = vpop.f32.mrb[1].mxu1 }
 0x1e5   : > { %v867_v38 = vadd.f32 %v2126_v35, %v866_v37  ;;  %v1698_v29 = vpop.f32.mrb[2].mxu1 }
 0x1e6   : > { %v947_v39 = vmul.f32 0.044715, %v875_v33  ;;  %v878_v32 = vadd.f32 %v1698_v29, %v2126_v35  ;;  %v869_v40 = vpop.f32.mrb[3].mxu1  ;;  %v931_v29 = vmul.f32 0.5, %v875_v33 }
 0x1e7   : > { %v945_v41 = vmul.f32 0.044715, %v867_v38  ;;  %v870_v42 = vadd.f32 %v2126_v35, %v869_v40 }
 0x1e8   : > { %v963_v43 = vmul.f32 %v947_v39, %v875_v33  ;;  %v948_v24 = vmul.f32 0.044715, %v878_v32 }
 0x1e9   : > { %v961_v45 = vmul.f32 %v945_v41, %v867_v38  ;;  %v946_v47 = vmul.f32 0.044715, %v870_v42 }
 0x1ea   : > { %v979_v48 = vmul.f32 %v963_v43, %v875_v33  ;;  %v964_v49 = vmul.f32 %v948_v24, %v878_v32  ;;  %v929_v24 = vmul.f32 0.5, %v867_v38 }
 0x1eb   : > { %v977_v50 = vmul.f32 %v961_v45, %v867_v38  ;;  %v962_v51 = vmul.f32 %v946_v47, %v870_v42  ;;  %v1701_v52 = vpop.f32.mrb[4].mxu1 }
 0x1ec   : > { %v995_v53 = vadd.f32 %v979_v48, %v875_v33  ;;  %v980_v54 = vmul.f32 %v964_v49, %v878_v32  ;;  %v891_v55 = vadd.f32 %v1701_v52, %v2126_v35  ;;  %v882_v56 = vpop.f32.mrb[5].mxu1 }
 0x1ed   : > { %v993_v58 = vadd.f32 %v977_v50, %v867_v38  ;;  %v978_v59 = vmul.f32 %v962_v51, %v870_v42  ;;  %v2134_v60 = vadd.f32 %v2126_v35, %v882_v56  ;;  %v1702_v61 = vpop.f32.mrb[6].mxu1  ;;  %v932_v50 = vmul.f32 0.5, %v878_v32 }
 0x1ee   : > { %v1011_v63 = vmul.f32 0.7978846, %v995_v53  ;;  %v996_v0 = vadd.f32 %v980_v54, %v878_v32  ;;  %v951_v1 = vmul.f32 0.044715, %v891_v55  ;;  %v885_v2 = vpop.f32.mrb[7].mxu1  ;;  %v2138_v9 = vadd.f32 %v1702_v61, %v2126_v35 }
 0x1ef   : > { %v1009_v3 = vmul.f32 0.7978846, %v993_v58  ;;  %v994_v4 = vadd.f32 %v978_v59, %v870_v42  ;;  %v949_v5 = vmul.f32 0.044715, %v2134_v60  ;;  %v2142_v14 = vadd.f32 %v2126_v35, %v885_v2 }
 0x1f0   : > { %1787 = vtanh.f32 %v1011_v63  ;;  %v1012_v7 = vmul.f32 0.7978846, %v996_v0  ;;  %v967_v8 = vmul.f32 %v951_v1, %v891_v55  ;;  %v952_v16 = vmul.f32 0.044715, %v2138_v9 }
 0x1f1   : > { %1789 = vtanh.f32 %v1009_v3  ;;  %v1010_v10 = vmul.f32 0.7978846, %v994_v4  ;;  %v965_v12 = vmul.f32 %v949_v5, %v2134_v60  ;;  %v950_v19 = vmul.f32 0.044715, %v2142_v14 }
 0x1f2   : > { %1791 = vtanh.f32 %v1012_v7  ;;  %v983_v15 = vmul.f32 %v967_v8, %v891_v55  ;;  %v968_v34 = vmul.f32 %v952_v16, %v2138_v9  ;;  %v930_v38 = vmul.f32 0.5, %v870_v42 }
 0x1f3   : > { %1793 = vtanh.f32 %v1010_v10  ;;  %v981_v17 = vmul.f32 %v965_v12, %v2134_v60  ;;  %v1705_v20 = vpop.f32.mrb[8].mxu1  ;;  %v966_v40 = vmul.f32 %v950_v19, %v2142_v14  ;;  %v935_v61 = vmul.f32 0.5, %v891_v55 }
 0x1f4   : > { %v999_v26 = vadd.f32 %v983_v15, %v891_v55  ;;  %v2149_v36 = vadd.f32 %v1705_v20, %v2126_v35  ;;  %v898_v37 = vpop.f32.mrb[9].mxu1  ;;  %v984_v47 = vmul.f32 %v968_v34, %v2138_v9 }
 0x1f5   : > { %v997_v39 = vadd.f32 %v981_v17, %v2134_v60  ;;  %v2154_v41 = vadd.f32 %v2126_v35, %v898_v37  ;;  %v1706_v43 = vpop.f32.mrb[10].mxu1  ;;  %v982_v52 = vmul.f32 %v966_v40, %v2142_v14 }
 0x1f6   : > { %v1015_v45 = vmul.f32 0.7978846, %v999_v26  ;;  %v955_v48 = vmul.f32 0.044715, %v2149_v36  ;;  %v901_v49 = vpop.f32.mrb[11].mxu1  ;;  %v1000_v53 = vadd.f32 %v984_v47, %v2138_v9  ;;  %v2163_v56 = vadd.f32 %v1706_v43, %v2126_v35 }
 0x1f7   : > { %v1013_v51 = vmul.f32 0.7978846, %v997_v39  ;;  %v953_v33 = vmul.f32 0.044715, %v2154_v41  ;;  %v998_v58 = vadd.f32 %v982_v52, %v2142_v14  ;;  %v2171_v42 = vadd.f32 %v2126_v35, %v901_v49 }
 0x1f8   : > { %1795 = vtanh.f32 %v1015_v45  ;;  %v971_v54 = vmul.f32 %v955_v48, %v2149_v36  ;;  %v1016_v63 = vmul.f32 0.7978846, %v1000_v53  ;;  %v956_v1 = vmul.f32 0.044715, %v2163_v56 }
 0x1f9   : > { %1797 = vtanh.f32 %v1013_v51  ;;  %v969_v59 = vmul.f32 %v953_v33, %v2154_v41  ;;  %v1014_v4 = vmul.f32 0.7978846, %v998_v58  ;;  %v954_v48 = vmul.f32 0.044715, %v2171_v42 }
 0x1fa   : > { %v1788_v32 = vpop.eup %1787  ;;  %v987_v0 = vmul.f32 %v971_v54, %v2149_v36  ;;  %1799 = vtanh.f32 %v1016_v63  ;;  %v972_v12 = vmul.f32 %v956_v1, %v2163_v56 }
 0x1fb   : > { %v1790_v2 = vpop.eup %1789  ;;  %v1043_v3 = vadd.f32 1.0, %v1788_v32  ;;  %v985_v5 = vmul.f32 %v969_v59, %v2154_v41  ;;  %v1709_v7 = vpop.f32.mrb[12].mxu1  ;;  %1801 = vtanh.f32 %v1014_v4  ;;  %v970_v33 = vmul.f32 %v954_v48, %v2171_v42 }
 0x1fc   : > { %v1792_v8 = vpop.eup %1791  ;;  %v1041_v10 = vadd.f32 1.0, %v1790_v2  ;;  %v1003_v55 = vadd.f32 %v987_v0, %v2149_v36  ;;  %v914_v15 = vpop.f32.mrb[13].mxu1  ;;  %v988_v40 = vmul.f32 %v972_v12, %v2163_v56  ;;  %v933_v59 = vmul.f32 0.5, %v2134_v60 }
 0x1fd   : > { %v1794_v16 = vpop.eup %1793  ;;  %v1059_v17 = vmul.f32 %v1043_v3, %v931_v29  ;;  %v1044_v19 = vadd.f32 1.0, %v1792_v8  ;;  %v1001_v20 = vadd.f32 %v985_v5, %v2154_v41  ;;  %v1710_v26 = vpop.f32.mrb[14].mxu1  ;;  %v2196_v54 = vadd.f32 %v2126_v35, %v914_v15 }
 0x1fe   : > { %v1057_v34 = vmul.f32 %v1041_v10, %v929_v24  ;;  %v1042_v37 = vadd.f32 1.0, %v1794_v16  ;;  %v1019_v39 = vmul.f32 0.7978846, %v1003_v55  ;;  %v917_v43 = vpop.f32.mrb[15].mxu1  ;;  %v1004_v52 = vadd.f32 %v988_v40, %v2163_v56 }
 0x1ff   : > { %v1155_v29 = vmul.f32 %v2016_v62, %v1059_v17  ;;  %v1060_v45 = vmul.f32 %v1044_v19, %v932_v50  ;;  %v1017_v47 = vmul.f32 0.7978846, %v1001_v20  ;;  %v2191_v62 = vadd.f32 %v1709_v7, %v2126_v35 }
 0x200   : > { %v1153_v49 = vmul.f32 %v2033_v11, %v1057_v34  ;;  %v1058_v51 = vmul.f32 %v1042_v37, %v930_v38  ;;  %1803 = vtanh.f32 %v1019_v39  ;;  %v1020_v11 = vmul.f32 0.7978846, %v1004_v52 }
 0x201   : > { %1171 = vst [vmem:[%s2180_s23 + $0x10] sm:$0xff] %v1155_v29  ;;  %v1156_v24 = vmul.f32 %v2019_v13, %v1060_v45  ;;  %1805 = vtanh.f32 %v1017_v47  ;;  %v2199_v38 = vadd.f32 %v1710_v26, %v2126_v35  ;;  %v986_v32 = vmul.f32 %v970_v33, %v2171_v42 }
 0x202   : > { %v1796_v50 = vpop.eup %1795  ;;  %1169 = vst [vmem:[%s2180_s23] sm:$0xff] %v1153_v49  ;;  %v1154_v53 = vmul.f32 %v2013_v46, %v1058_v51  ;;  %v959_v63 = vmul.f32 0.044715, %v2191_v62  ;;  %v936_v46 = vmul.f32 0.5, %v2138_v9  ;;  %1807 = vtanh.f32 %v1020_v11 }
 0x203   : > { %v1798_v58 = vpop.eup %1797  ;;  %1172 = vst [vmem:[%s2180_s23 + $0x18] sm:$0xff] %v1156_v24  ;;  %v1047_v13 = vadd.f32 1.0, %v1796_v50  ;;  %v957_v1 = vmul.f32 0.044715, %v2196_v54  ;;  %v934_v3 = vmul.f32 0.5, %v2142_v14  ;;  %v1002_v4 = vadd.f32 %v986_v32, %v2171_v42 }
 0x204   : > { %1170 = vst [vmem:[%s2180_s23 + $0x8] sm:$0xff] %v1154_v53  ;;  %v1045_v0 = vadd.f32 1.0, %v1798_v58  ;;  %v975_v5 = vmul.f32 %v959_v63, %v2191_v62  ;;  %v1800_v60 = vpop.eup %1799  ;;  %v960_v10 = vmul.f32 0.044715, %v2199_v38  ;;  %v2214_v55 = vadd.f32 %v2126_v35, %v917_v43 }
 0x205   : > { %v1063_v2 = vmul.f32 %v1047_v13, %v935_v61  ;;  %v973_v8 = vmul.f32 %v957_v1, %v2196_v54  ;;  %v1802_v9 = vpop.eup %1801  ;;  %v1048_v12 = vadd.f32 1.0, %v1800_v60  ;;  %v1018_v14 = vmul.f32 0.7978846, %v1002_v4 }
 0x206   : > { %v1061_v7 = vmul.f32 %v1045_v0, %v933_v59  ;;  %v991_v15 = vmul.f32 %v975_v5, %v2191_v62  ;;  %v1046_v17 = vadd.f32 1.0, %v1802_v9  ;;  %v976_v20 = vmul.f32 %v960_v10, %v2199_v38 }
 0x207   : > { %v1159_v61 = vmul.f32 %v2029_v57, %v1063_v2  ;;  %v989_v19 = vmul.f32 %v973_v8, %v2196_v54  ;;  %v1064_v26 = vmul.f32 %v1048_v12, %v936_v46  ;;  %v939_v35 = vmul.f32 0.5, %v2149_v36 }
 0x208   : > { %v1157_v16 = vmul.f32 %v2022_v30, %v1061_v7  ;;  %1809 = vtanh.f32 %v1018_v14  ;;  %v1007_v34 = vadd.f32 %v991_v15, %v2191_v62  ;;  %v1062_v37 = vmul.f32 %v1046_v17, %v934_v3 }
 0x209   : > { %1175 = vst [vmem:[%s2180_s23 + $0x30] sm:$0xff] %v1159_v61  ;;  %v1005_v39 = vadd.f32 %v989_v19, %v2196_v54  ;;  %v992_v30 = vmul.f32 %v976_v20, %v2199_v38  ;;  %v958_v40 = vmul.f32 0.044715, %v2214_v55  ;;  %v1160_v29 = vmul.f32 %v2031_v6, %v1064_v26 }
 0x20a   : > { %v1804_v57 = vpop.eup %1803  ;;  %1173 = vst [vmem:[%s2180_s23 + $0x20] sm:$0xff] %v1157_v16  ;;  %v937_v36 = vmul.f32 0.5, %v2154_v41  ;;  %v1023_v47 = vmul.f32 0.7978846, %v1007_v34  ;;  %v1158_v48 = vmul.f32 %v2026_v44, %v1062_v37  ;;  %v940_v44 = vmul.f32 0.5, %v2163_v56 }
 0x20b   : > { %v1806_v43 = vpop.eup %1805  ;;  %v1051_v45 = vadd.f32 1.0, %v1804_v57  ;;  %v1021_v51 = vmul.f32 0.7978846, %v1005_v39  ;;  %v1008_v52 = vadd.f32 %v992_v30, %v2199_v38  ;;  %1176 = vst [vmem:[%s2180_s23 + $0x38] sm:$0xff] %v1160_v29  ;;  %v974_v33 = vmul.f32 %v958_v40, %v2214_v55 }
 0x20c   : > { %v1049_v49 = vadd.f32 1.0, %v1806_v43  ;;  %1811 = vtanh.f32 %v1023_v47  ;;  %v1808_v50 = vpop.eup %1807  ;;  %1174 = vst [vmem:[%s2180_s23 + $0x28] sm:$0xff] %v1158_v48  ;;  %v943_v4 = vmul.f32 0.5, %v2191_v62  ;;  %v941_v60 = vmul.f32 0.5, %v2196_v54 }
 0x20d   : > { %v1067_v24 = vmul.f32 %v1051_v45, %v939_v35  ;;  %1813 = vtanh.f32 %v1021_v51  ;;  %v1024_v53 = vmul.f32 0.7978846, %v1008_v52  ;;  %v1052_v11 = vadd.f32 1.0, %v1808_v50 }
 0x20e   : > { %v1065_v6 = vmul.f32 %v1049_v49, %v937_v36  ;;  %v990_v58 = vmul.f32 %v974_v33, %v2214_v55  ;;  %v944_v10 = vmul.f32 0.5, %v2199_v38  ;;  %v942_v14 = vmul.f32 0.5, %v2214_v55 }
 0x20f   : > { %v1163_v41 = vmul.f32 %v2039_v22, %v1067_v24  ;;  %1815 = vtanh.f32 %v1024_v53  ;;  %v1068_v59 = vmul.f32 %v1052_v11, %v940_v44  ;;  %v938_v22 = vmul.f32 0.5, %v2171_v42 }
 0x210   : > { %v1161_v13 = vmul.f32 %v2035_v18, %v1065_v6  ;;  %v1006_v32 = vadd.f32 %v990_v58, %v2214_v55 }
 0x211   : > { %1179 = vst [vmem:[%s2180_s23 + $0x50] sm:$0xff] %v1163_v41  ;;  %v1164_v0 = vmul.f32 %v2041_v23, %v1068_v59 }
 0x212   : > { %1177 = vst [vmem:[%s2180_s23 + $0x40] sm:$0xff] %v1161_v13  ;;  %v1810_v63 = vpop.eup %1809  ;;  %v1022_v46 = vmul.f32 0.7978846, %v1006_v32 }
 0x213   : > { %v1050_v1 = vadd.f32 1.0, %v1810_v63  ;;  %1180 = vst [vmem:[%s2180_s23 + $0x58] sm:$0xff] %v1164_v0 }
 0x214   : > { %1817 = vtanh.f32 %v1022_v46 }
 0x215   : > { %v1066_v56 = vmul.f32 %v1050_v1, %v938_v22 }
 0x216   : > { %v1812_v2 = vpop.eup %1811 }
 0x217   : > { %v1814_v18 = vpop.eup %1813  ;;  %v1162_v3 = vmul.f32 %v2037_v21, %v1066_v56  ;;  %v1055_v5 = vadd.f32 1.0, %v1812_v2 }
 0x218   : > { %v1053_v7 = vadd.f32 1.0, %v1814_v18 }
 0x219   : > { %v1816_v23 = vpop.eup %1815  ;;  %1178 = vst [vmem:[%s2180_s23 + $0x48] sm:$0xff] %v1162_v3  ;;  %v1071_v42 = vmul.f32 %v1055_v5, %v943_v4 }
 0x21a   : > { %v1069_v8 = vmul.f32 %v1053_v7, %v941_v60  ;;  %v1056_v9 = vadd.f32 1.0, %v1816_v23 }
 0x21b   : > { %v1167_v61 = vmul.f32 %v2047_v28, %v1071_v42 }
 0x21c   : > { %v1165_v21 = vmul.f32 %v2043_v25, %v1069_v8  ;;  %v1072_v12 = vmul.f32 %v1056_v9, %v944_v10 }
 0x21d   : > { %1183 = vst [vmem:[%s2180_s23 + $0x70] sm:$0xff] %v1167_v61 }
 0x21e   : > { %v1818_v62 = vpop.eup %1817  ;;  %1181 = vst [vmem:[%s2180_s23 + $0x60] sm:$0xff] %v1165_v21  ;;  %v1168_v54 = vmul.f32 %v2118_v31, %v1072_v12 }
 0x21f   : > { %v1054_v15 = vadd.f32 1.0, %v1818_v62 }
 0x220   : > { %1184 = vst [vmem:[%s2180_s23 + $0x78] sm:$0xff] %v1168_v54 }
 0x221   : > { %v1070_v16 = vmul.f32 %v1054_v15, %v942_v14 }
 0x223   : > { %v1166_v17 = vmul.f32 %v2045_v27, %v1070_v16 }
 0x225   : > { %1182 = vst [vmem:[%s2180_s23 + $0x68] sm:$0xff] %v1166_v17 }
 0x226 PF: > { %s18_s26 = sadd.s32 1, %s1841_s26   ;;  %s2276_s24 = smov %s1837_s25 }
 0x227   : > { %p15_p5 = scmp.ge.s32.totalorder %s18_s26, 4   ;;  %s2277_s25 = smov %s2279_s27 }
 0x229   :  { %17 = sbr.rel (!%p15_p5) target bundleno = 2 (0x2), region = 96 }

// kernel: graph_encoder_forward.2
= control target key start
LH: loop header
LB: loop body
LE: loop exit
PB: predicated region body
PF: predicated region fallthrough
CT: control target
= control target key end

     0   :  { %s3071_s27 = smov 0   ;;  %s3073_s28 = smov 0   ;;  %s4001_s0 = inlined_call_operand.vmem [shape: bf16[2,128,128], index: 0, kind: input, shape index: {}]   ;;  %s4002_s1 = inlined_call_operand.vmem [shape: bf16[2,128,128], index: 1, kind: input, shape index: {}]   ;;  %s4003_s2 = inlined_call_operand.vmem [shape: bf16[128,128], index: 2, kind: input, shape index: {}]   ;;  %s4004_s3 = inlined_call_operand.vmem [shape: f32[1,128], index: 3, kind: input, shape index: {}]   ;;  %s4005_s4 = inlined_call_operand.vmem [shape: f32[2,1,128], index: 4, kind: input, shape index: {}]   ;;  %s4006_s5 = inlined_call_operand.vmem [shape: f32[2,128,1], index: 5, kind: input, shape index: {}]   ;;  %s4007_s6 = inlined_call_operand.vmem [shape: f32[2,128,128], index: 6, kind: output, shape index: {0}]   ;;  %s4008_s7 = inlined_call_operand.vmem [shape: f32[2,128,1], index: 7, kind: output, shape index: {1}]   ;;  %s4009_s8 = inlined_call_operand.vmem [shape: bf16[2,128,128], index: 8, kind: output, shape index: {2}]  }
   0x1   :  { %s3075_s29 = smov 0  }
   0x2 LB: > { %s31_s30 = sadd.s32 1, %s3019_s28  ;;  %p2367_p0 = scmp.ge.s32.totalorder %s3023_s29, 1  ;;  %s3023_s29 = sphi %s3075_s29, %s19_s29   ;;  %s3019_s28 = sphi %s3073_s28, %s4130_s28   ;;  %s3015_s27 = sphi %s3071_s27, %s4129_s27  }
   0x3   : > { %p33_p1 = scmp.ge.s32.totalorder %s31_s30, 2  ;;  %p310_p2 = scmp.lt.s32.totalorder %s3023_s29, 3 }
   0x5   : > { %s4132_s30 = smov (%p33_p1, %s31_s30), 0  ;;  %p311_p3 = pnand %p2367_p0, %p310_p2 }
   0x7   : > { %314 = sbr.rel (%p311_p3) target bundleno = 1159 (0x487), region = 44 }
   0xe   : > { %v2789_v0 = vld [vmem:[%s4002_s1 + $0x40] sm:$0xff]   ;;  %p378_p4 = scmp.lt.s32.totalorder %s3015_s27, 1  ;;  %v2790_v1 = vld [vmem:[%s4002_s1 + $0x48] sm:$0xff]   ;;  %v2791_v2 = vld [vmem:[%s4002_s1 + $0x50] sm:$0xff]   ;;  %v3025_v40 = vmov 0   ;;  %vm1650_vm0 = vcmask 7168  }
   0xf   : > { %2602 = vmatprep.subr.bf16.mxu0 %v2789_v0  ;;  %v2792_v3 = vld [vmem:[%s4002_s1 + $0x58] sm:$0xff]   ;;  %v2793_v5 = vld [vmem:[%s4002_s1 + $0x60] sm:$0xff]   ;;  %v2794_v6 = vld [vmem:[%s4002_s1 + $0x68] sm:$0xff]   ;;  %2788 = vset.pattern.permute.xlu1 %v3025_v40 }
  0x10   : > { %s4134_s27 = smov (!%p378_p4, %s3015_s27), 1  ;;  %2603 = vmatpush3.bf16.msra.mxu0 %v2789_v0  ;;  %v2795_v7 = vld [vmem:[%s4002_s1 + $0x70] sm:$0xff]   ;;  %v2796_v8 = vld [vmem:[%s4002_s1 + $0x78] sm:$0xff]   ;;  %v2802_v9 = vld [vmem:[%s4002_s1] sm:$0xff]   ;;  %2787 = vset.pattern.permute.xlu0 %v3025_v40 }
  0x11   : > { %2604 = vmatprep.subr.bf16.mxu0 %v2790_v1  ;;  %s2454_s15 = sshll.u32 %s4134_s27, 6  ;;  %v2804_v12 = vld [vmem:[%s4002_s1 + $0x8] sm:$0xff]   ;;  %v2821_v13 = vld [vmem:[%s4003_s2] sm:$0xff]   ;;  %v2805_v15 = vld [vmem:[%s4002_s1 + $0x10] sm:$0xff]   ;;  %s3196_s11 = sshll.u32 %s4134_s27, 7 }
  0x12   : > { %s3106_s18 = scalar_lea.vmem %s4001_s0, %s2454_s15  ;;  %v2822_v14 = vld [vmem:[%s4003_s2 + $0x8] sm:$0xff]   ;;  %2634 = vmatprep.subr.bf16.mxu1 %v2821_v13  ;;  %v2823_v16 = vld [vmem:[%s4003_s2 + $0x10] sm:$0xff]   ;;  %v2806_v19 = vld [vmem:[%s4002_s1 + $0x18] sm:$0xff]   ;;  %s3202_s14 = scalar_lea.vmem %s4006_s5, %s3196_s11 }
  0x13   : > { %v2797_v4 = vld [vmem:[%s3106_s18] sm:$0xff]   ;;  %v3128_v10 = vld [vmem:[%s3106_s18 + $0x8] sm:$0xff]   ;;  %v3131_v11 = vld [vmem:[%s3106_s18 + $0x10] sm:$0xff]   ;;  %2635 = vmatpush3.bf16.msra.mxu1 %v2821_v13  ;;  %s385_s17 = scalar_lea.vmem %s4005_s4, %s4134_s27  ;;  %s3494_s21 = scalar_lea.vmem %s4007_s6, %s3196_s11 }
  0x14   : > { %2605 = vmatpush3.bf16.msra.mxu0 %v2790_v1  ;;  %2618 = vmatprep.mubr.bf16.mxu0 %v2797_v4  ;;  %v2800_v17 = vld [vmem:[%s3106_s18 + $0x18] sm:$0xff]   ;;  %v2801_v18 = vld [vmem:[%s3106_s18 + $0x20] sm:$0xff]   ;;  %v2803_v23 = vld [vmem:[%s3106_s18 + $0x28] sm:$0xff]   ;;  %s3703_s24 = scalar_lea.vmem %s4008_s7, %s3196_s11  ;;  %s3925_s11 = scalar_lea.vmem %s4009_s8, %s2454_s15 }
  0x15   : > { %2606 = vmatprep.subr.bf16.mxu0 %v2791_v2  ;;  %2650 = vmatprep.mubr.bf16.mxu1 %v2797_v4  ;;  %v2824_v20 = vld [vmem:[%s4003_s2 + $0x18] sm:$0xff]   ;;  %v2808_v21 = vld [vmem:[%s4002_s1 + $0x20] sm:$0xff]   ;;  %v2807_v24 = vld [vmem:[%s3106_s18 + $0x30] sm:$0xff]  }
  0x16   : > { %2636 = vmatprep.subr.bf16.mxu1 %v2822_v14  ;;  %v2825_v22 = vld [vmem:[%s4003_s2 + $0x20] sm:$0xff]   ;;  %v2810_v25 = vld [vmem:[%s4002_s1 + $0x28] sm:$0xff]   ;;  %v2811_v27 = vld [vmem:[%s4002_s1 + $0x30] sm:$0xff]  }
  0x17   : > { %2637 = vmatpush3.bf16.msra.mxu1 %v2822_v14  ;;  %v2826_v26 = vld [vmem:[%s4003_s2 + $0x28] sm:$0xff]   ;;  %v2827_v28 = vld [vmem:[%s4003_s2 + $0x30] sm:$0xff]   ;;  %v2809_v29 = vld [vmem:[%s3106_s18 + $0x38] sm:$0xff]  }
  0x18   : > { %2607 = vmatpush3.bf16.msra.mxu0 %v2791_v2  ;;  %2638 = vmatprep.subr.bf16.mxu1 %v2823_v16  ;;  %v2813_v30 = vld [vmem:[%s3106_s18] sm:$0xff]   ;;  %v2812_v31 = vld [vmem:[%s4002_s1 + $0x38] sm:$0xff]   ;;  %v2814_v33 = vld [vmem:[%s3106_s18 + $0x8] sm:$0xff]  }
  0x19   : > { %2608 = vmatprep.subr.bf16.mxu0 %v2792_v3  ;;  %v2828_v32 = vld [vmem:[%s4003_s2 + $0x38] sm:$0xff]   ;;  %v2815_v34 = vld [vmem:[%s3106_s18 + $0x10] sm:$0xff]   ;;  %v2817_v36 = vld [vmem:[%s3106_s18 + $0x20] sm:$0xff]  }
  0x1a   : > { %v2816_v35 = vld [vmem:[%s3106_s18 + $0x18] sm:$0xff]   ;;  %v2818_v37 = vld [vmem:[%s3106_s18 + $0x28] sm:$0xff]   ;;  %v2819_v38 = vld [vmem:[%s3106_s18 + $0x30] sm:$0xff]  }
  0x1b   : > { %2639 = vmatpush3.bf16.msra.mxu1 %v2823_v16  ;;  %v2820_v39 = vld [vmem:[%s3106_s18 + $0x38] sm:$0xff]   ;;  %v1211_v41 = vld [vmem:[%s3202_s14 + $0x8] sm:$0xff]  ;;  %v1212_v42 = vld [vmem:[%s3202_s14 + $0x10] sm:$0xff] }
  0x1c   : > { %2609 = vmatpush3.bf16.msra.mxu0 %v2792_v3  ;;  %2640 = vmatprep.subr.bf16.mxu1 %v2824_v20  ;;  %v1210_v43 = vld [vmem:[%s3202_s14] sm:$0xff]  ;;  %v1215_v44 = vld [vmem:[%s3202_s14 + $0x28] sm:$0xff]  ;;  %v1213_v45 = vld [vmem:[%s3202_s14 + $0x18] sm:$0xff] }
  0x1d   : > { %2610 = vmatprep.subr.bf16.mxu0 %v2793_v5  ;;  %1417 = vperm.xlu1 %2788, %v1211_v41   ;;  %v1219_v46 = vld [vmem:[%s3202_s14 + $0x48] sm:$0xff]  ;;  %v1214_v47 = vld [vmem:[%s3202_s14 + $0x20] sm:$0xff]  ;;  %v1221_v48 = vld [vmem:[%s3202_s14 + $0x58] sm:$0xff] }
  0x1e   : > { %1412 = vperm.xlu0 %2787, %v1210_v43   ;;  %v1216_v49 = vld [vmem:[%s3202_s14 + $0x30] sm:$0xff]  ;;  %v1217_v50 = vld [vmem:[%s3202_s14 + $0x38] sm:$0xff]  ;;  %v1218_v51 = vld [vmem:[%s3202_s14 + $0x40] sm:$0xff] }
  0x1f   : > { %2641 = vmatpush3.bf16.msra.mxu1 %v2824_v20  ;;  %v1220_v52 = vld [vmem:[%s3202_s14 + $0x50] sm:$0xff] }
  0x20   : > { %2611 = vmatpush3.bf16.msra.mxu0 %v2793_v5  ;;  %2642 = vmatprep.subr.bf16.mxu1 %v2825_v22 }
  0x21   : > { %2612 = vmatprep.subr.bf16.mxu0 %v2794_v6  ;;  %1422 = vperm.xlu1 %2788, %v1212_v42  }
  0x22   : > { %1437 = vperm.xlu0 %2787, %v1215_v44  }
  0x23   : > { %2643 = vmatpush3.bf16.msra.mxu1 %v2825_v22 }
  0x24   : > { %2613 = vmatpush3.bf16.msra.mxu0 %v2794_v6  ;;  %2644 = vmatprep.subr.bf16.mxu1 %v2826_v26 }
  0x25   : > { %2614 = vmatprep.subr.bf16.mxu0 %v2795_v7  ;;  %1427 = vperm.xlu1 %2788, %v1213_v45  }
  0x26   : > { %1457 = vperm.xlu0 %2787, %v1219_v46  }
  0x27   : > { %2645 = vmatpush3.bf16.msra.mxu1 %v2826_v26 }
  0x28   : > { %2615 = vmatpush3.bf16.msra.mxu0 %v2795_v7  ;;  %2646 = vmatprep.subr.bf16.mxu1 %v2827_v28 }
  0x29   : > { %2616 = vmatprep.subr.bf16.mxu0 %v2796_v8  ;;  %1432 = vperm.xlu1 %2788, %v1214_v47  }
  0x2a   : > { %1467 = vperm.xlu0 %2787, %v1221_v48  }
  0x2b   : > { %2647 = vmatpush3.bf16.msra.mxu1 %v2827_v28 }
  0x2c   : > { %2617 = vmatpush3.bf16.msra.mxu0 %v2796_v8  ;;  %2648 = vmatprep.subr.bf16.mxu1 %v2828_v32 }
  0x2d   : > { %2666 = vmatprep.subr.bf16.mxu0 %v2802_v9  ;;  %1442 = vperm.xlu1 %2788, %v1216_v49  }
  0x2f   : > { %2619 = vmatmul.mubr.bf16.vlgmr.msra.gmra.mrb[0].mxu0 %v3128_v10  ;;  %2649 = vmatpush3.bf16.msra.mxu1 %v2828_v32 }
  0x30   : > { %2622 = vmatprep.mubr.bf16.mxu0 %v3131_v11  ;;  %2667 = vmatpush3.bf16.msra.mxu0 %v2802_v9 }
  0x31   : > { %2668 = vmatprep.subr.bf16.mxu0 %v2804_v12  ;;  %1447 = vperm.xlu1 %2788, %v1217_v50  }
  0x32   : > { %2651 = vmatmul.mubr.bf16.vlgmr.msra.gmra.mrb[0].mxu1 %v3128_v10 }
  0x33   : > { %2654 = vmatprep.mubr.bf16.mxu1 %v3131_v11 }
  0x34   : > { %2669 = vmatpush3.bf16.msra.mxu0 %v2804_v12 }
  0x35   : > { %2670 = vmatprep.subr.bf16.mxu0 %v2805_v15  ;;  %1452 = vperm.xlu1 %2788, %v1218_v51  }
  0x37   : > { %2623 = vmatmul.mubr.bf16.gmra.mrb[4].mxu0 %v2800_v17 }
  0x38   : > { %2626 = vmatprep.mubr.bf16.mxu0 %v2801_v18  ;;  %2671 = vmatpush3.bf16.msra.mxu0 %v2805_v15 }
  0x39   : > { %2672 = vmatprep.subr.bf16.mxu0 %v2806_v19  ;;  %1462 = vperm.xlu1 %2788, %v1220_v52  }
  0x3a   : > { %2655 = vmatmul.mubr.bf16.gmra.mrb[4].mxu1 %v2800_v17 }
  0x3b   : > { %2658 = vmatprep.mubr.bf16.mxu1 %v2801_v18 }
  0x3c   : > { %2673 = vmatpush3.bf16.msra.mxu0 %v2806_v19 }
  0x3d   : > { %2674 = vmatprep.subr.bf16.mxu0 %v2808_v21 }
  0x3f   : > { %2627 = vmatmul.mubr.bf16.gmra.mrb[8].mxu0 %v2803_v23 }
  0x40   : > { %2630 = vmatprep.mubr.bf16.mxu0 %v2807_v24  ;;  %2675 = vmatpush3.bf16.msra.mxu0 %v2808_v21 }
  0x41   : > { %2676 = vmatprep.subr.bf16.mxu0 %v2810_v25 }
  0x42   : > { %2659 = vmatmul.mubr.bf16.gmra.mrb[8].mxu1 %v2803_v23 }
  0x43   : > { %2662 = vmatprep.mubr.bf16.mxu1 %v2807_v24 }
  0x44   : > { %2677 = vmatpush3.bf16.msra.mxu0 %v2810_v25 }
  0x45   : > { %2678 = vmatprep.subr.bf16.mxu0 %v2811_v27 }
  0x47   : > { %2631 = vmatmul.mubr.bf16.gmra.mrb[12].mxu0 %v2809_v29 }
  0x48   : > { %2679 = vmatpush3.bf16.msra.mxu0 %v2811_v27  ;;  %2682 = vmatprep.mubr.bf16.mxu0 %v2813_v30 }
  0x49   : > { %2680 = vmatprep.subr.bf16.mxu0 %v2812_v31 }
  0x4a   : > { %2663 = vmatmul.mubr.bf16.gmra.mrb[12].mxu1 %v2809_v29 }
  0x4c   : > { %2681 = vmatpush3.bf16.msra.mxu0 %v2812_v31 }
  0x4f   : > { %2683 = vmatmul.mubr.bf16.vlgmr.msra.gmra.mrb[16].mxu0 %v2814_v33 }
  0x50   : > { %2686 = vmatprep.mubr.bf16.mxu0 %v2815_v34 }
  0x57   : > { %2687 = vmatmul.mubr.bf16.gmra.mrb[20].mxu0 %v2816_v35 }
  0x58   : > { %2690 = vmatprep.mubr.bf16.mxu0 %v2817_v36 }
  0x5f   : > { %2691 = vmatmul.mubr.bf16.gmra.mrb[24].mxu0 %v2818_v37 }
  0x60   : > { %2694 = vmatprep.mubr.bf16.mxu0 %v2819_v38 }
  0x67   : > { %2695 = vmatmul.mubr.bf16.gmra.mrb[28].mxu0 %v2820_v39 }
 0x102   : > { %v2620_v53 = vpop.f32.mrb[0].mxu0 }
 0x103   : > { %v595_v54 = vpop.f32.mrb[1].mxu0 }
 0x104   : > { %v2621_v55 = vpop.f32.mrb[2].mxu0 }
 0x105   : > { %v659_v56 = vpack.c.bf16 %v2621_v55, %v2620_v53  ;;  %v598_v57 = vpop.f32.mrb[3].mxu0  ;;  %v2652_v15 = vpop.f32.mrb[0].mxu1 }
 0x106   : > { %v658_v58 = vpack.c.bf16 %v598_v57, %v595_v54  ;;  %v772_v17 = vpop.f32.mrb[1].mxu1 }
 0x107   : > { %v2653_v20 = vpop.f32.mrb[2].mxu1 }
 0x108   : > { %2698 = vmatprep.subr.bf16.mxu1 %v658_v58  ;;  %v3224_v22 = vpack.c.bf16 %v2653_v20, %v2652_v15  ;;  %v775_v23 = vpop.f32.mrb[3].mxu1 }
 0x109   : > { %2699 = vmatpush3.bf16.xpose.msra.mxu1 %v658_v58  ;;  %v3226_v24 = vpack.c.bf16 %v775_v23, %v772_v17 }
 0x10a   : > { %2700 = vmatprep.subr.bf16.mxu1 %v659_v56  ;;  %v2624_v59 = vpop.f32.mrb[4].mxu0  ;;  %4055 = vst [vmem:[#allocation4_spill] sm:$0xff] %v3224_v22 }
 0x10b   : > { %v611_v60 = vpop.f32.mrb[5].mxu0  ;;  %4056 = vst [vmem:[#allocation5_spill] sm:$0xff] %v3226_v24  ;;  %2730 = vmatprep.subr.bf16.mxu0 %v3226_v24 }
 0x10c   : > { %v2625_v61 = vpop.f32.mrb[6].mxu0  ;;  %2731 = vmatpush3.bf16.msra.mxu0 %v3226_v24 }
 0x10d   : > { %v661_v62 = vpack.c.bf16 %v2625_v61, %v2624_v59  ;;  %v614_v63 = vpop.f32.mrb[7].mxu0  ;;  %2732 = vmatprep.subr.bf16.mxu0 %v3224_v22  ;;  %v2656_v27 = vpop.f32.mrb[4].mxu1  ;;  %v1229_v61 = vlaneseq }
 0x10e   : > { %v660_v0 = vpack.c.bf16 %v614_v63, %v611_v60  ;;  %v788_v29 = vpop.f32.mrb[5].mxu1 }
 0x10f   : > { %v2657_v32 = vpop.f32.mrb[6].mxu1 }
 0x110   : > { %2733 = vmatpush3.bf16.msra.mxu0 %v3224_v22  ;;  %v3232_v34 = vpack.c.bf16 %v2657_v32, %v2656_v27  ;;  %v791_v35 = vpop.f32.mrb[7].mxu1 }
 0x111   : > { %2701 = vmatpush3.bf16.xpose.msra.mxu1 %v659_v56  ;;  %v3234_v36 = vpack.c.bf16 %v791_v35, %v788_v29 }
 0x112   : > { %2702 = vmatprep.subr.bf16.mxu1 %v660_v0  ;;  %v2628_v1 = vpop.f32.mrb[8].mxu0  ;;  %4057 = vst [vmem:[#allocation6_spill] sm:$0xff] %v3232_v34 }
 0x113   : > { %v627_v2 = vpop.f32.mrb[9].mxu0  ;;  %4058 = vst [vmem:[#allocation7_spill] sm:$0xff] %v3234_v36  ;;  %2734 = vmatprep.subr.bf16.mxu0 %v3234_v36 }
 0x114   : > { %v2629_v3 = vpop.f32.mrb[10].mxu0  ;;  %2735 = vmatpush3.bf16.msra.mxu0 %v3234_v36 }
 0x115   : > { %v663_v4 = vpack.c.bf16 %v2629_v3, %v2628_v1  ;;  %v630_v5 = vpop.f32.mrb[11].mxu0  ;;  %v2660_v39 = vpop.f32.mrb[8].mxu1  ;;  %2736 = vmatprep.subr.bf16.mxu0 %v3232_v34 }
 0x116   : > { %v662_v6 = vpack.c.bf16 %v630_v5, %v627_v2  ;;  %v804_v41 = vpop.f32.mrb[9].mxu1 }
 0x117   : > { %v2661_v44 = vpop.f32.mrb[10].mxu1 }
 0x118   : > { %v3239_v46 = vpack.c.bf16 %v2661_v44, %v2660_v39  ;;  %v807_v47 = vpop.f32.mrb[11].mxu1  ;;  %2737 = vmatpush3.bf16.msra.mxu0 %v3232_v34 }
 0x119   : > { %2703 = vmatpush3.bf16.xpose.msra.mxu1 %v660_v0  ;;  %v3242_v48 = vpack.c.bf16 %v807_v47, %v804_v41  ;;  %v1230_v0 = vshrl.u32 %v1229_v61, 7  ;;  %v3318_v61 = vld [vmem:[%s3202_s14 + $0x68] sm:$0xff] }
 0x11a   : > { %2704 = vmatprep.subr.bf16.mxu1 %v661_v62  ;;  %v2632_v7 = vpop.f32.mrb[12].mxu0  ;;  %4059 = vst [vmem:[#allocation8_spill] sm:$0xff] %v3239_v46  ;;  %4064 = vst [vmem:[#allocation13_spill] sm:$0xff] %v3318_v61 }
 0x11b   : > { %v643_v8 = vpop.f32.mrb[13].mxu0  ;;  %4060 = vst [vmem:[#allocation9_spill] sm:$0xff] %v3242_v48  ;;  %2738 = vmatprep.subr.bf16.mxu0 %v3242_v48  ;;  %v1231_v2 = vsub.s32 0, %v1230_v0 }
 0x11c   : > { %v2633_v9 = vpop.f32.mrb[14].mxu0  ;;  %2739 = vmatpush3.bf16.msra.mxu0 %v3242_v48 }
 0x11d   : > { %v3216_v10 = vpack.c.bf16 %v2633_v9, %v2632_v7  ;;  %v646_v11 = vpop.f32.mrb[15].mxu0  ;;  %v2664_v51 = vpop.f32.mrb[12].mxu1  ;;  %2740 = vmatprep.subr.bf16.mxu0 %v3239_v46 }
 0x11e   : > { %v664_v12 = vpack.c.bf16 %v646_v11, %v643_v8  ;;  %v820_v53 = vpop.f32.mrb[13].mxu1 }
 0x11f   : > { %v2665_v56 = vpop.f32.mrb[14].mxu1 }
 0x120   : > { %v3248_v58 = vpack.c.bf16 %v2665_v56, %v2664_v51  ;;  %v823_v59 = vpop.f32.mrb[15].mxu1  ;;  %2741 = vmatpush3.bf16.msra.mxu0 %v3239_v46 }
 0x121   : > { %2705 = vmatpush3.bf16.xpose.msra.mxu1 %v661_v62  ;;  %v3251_v60 = vpack.c.bf16 %v823_v59, %v820_v53  ;;  %v1209_v62 = vld [vmem:[%s385_s17] sm:$0x1] }
 0x122   : > { %2706 = vmatprep.subr.bf16.mxu1 %v662_v6  ;;  %v3218_v13 = vpop.f32.mrb[16].mxu0  ;;  %4061 = vst [vmem:[#allocation10_spill] sm:$0xff] %v3248_v58  ;;  %v2434_v63 = vadd.f32 -1.0, %v1209_v62  ;;  %v3314_v59 = vld [vmem:[%s3202_s14 + $0x60] sm:$0xff]  ;;  %v3321_v62 = vpop.permute.xlu1 %1417 }
 0x123   : > { %v1017_v14 = vpop.f32.mrb[17].mxu0  ;;  %4062 = vst [vmem:[#allocation11_spill] sm:$0xff] %v3251_v60  ;;  %2742 = vmatprep.subr.bf16.mxu0 %v3251_v60  ;;  %4063 = vst [vmem:[#allocation12_spill] sm:$0xff] %v3314_v59 }
 0x124   : > { %v3220_v16 = vpop.f32.mrb[18].mxu0  ;;  %2743 = vmatpush3.bf16.msra.mxu0 %v3251_v60  ;;  %v1227_v1 = vmul.f32 1e+09, %v2434_v63  ;;  %4065 = vst [vmem:[#allocation14_spill] sm:$0xff] %v3321_v62 }
 0x125   : > { %v1081_v18 = vpack.c.bf16 %v3220_v16, %v3218_v13  ;;  %v1020_v19 = vpop.f32.mrb[19].mxu0  ;;  %2744 = vmatprep.subr.bf16.mxu0 %v3248_v58 }
 0x126   : > { %v1080_v21 = vpack.c.bf16 %v1020_v19, %v1017_v14  ;;  %v1232_v3 = vrot.slane %v1227_v1, %v1231_v2  ;;  %v3323_v63 = vpop.permute.xlu1 %1422 }
 0x127   : > { %4066 = vst [vmem:[#allocation15_spill] sm:$0xff] %v3323_v63 }
 0x128   : > { %2714 = vmatprep.mubr.bf16.mxu1 %v1080_v21  ;;  %2745 = vmatpush3.bf16.msra.mxu0 %v3248_v58 }
 0x129   : > { %2707 = vmatpush3.bf16.xpose.msra.mxu1 %v662_v6 }
 0x12a   : > { %2708 = vmatprep.subr.bf16.mxu1 %v663_v4  ;;  %v2688_v25 = vpop.f32.mrb[20].mxu0  ;;  %v3325_v0 = vpop.permute.xlu1 %1427 }
 0x12b   : > { %v1033_v26 = vpop.f32.mrb[21].mxu0  ;;  %4067 = vst [vmem:[#allocation16_spill] sm:$0xff] %v3325_v0 }
 0x12c   : > { %v2689_v28 = vpop.f32.mrb[22].mxu0 }
 0x12d   : > { %v1083_v30 = vpack.c.bf16 %v2689_v28, %v2688_v25  ;;  %v1036_v31 = vpop.f32.mrb[23].mxu0 }
 0x12e   : > { %v1082_v33 = vpack.c.bf16 %v1036_v31, %v1033_v26  ;;  %v3327_v1 = vpop.permute.xlu1 %1432 }
 0x12f   : > { %4068 = vst [vmem:[#allocation17_spill] sm:$0xff] %v3327_v1 }
 0x131   : > { %2709 = vmatpush3.bf16.xpose.msra.mxu1 %v663_v4 }
 0x132   : > { %2710 = vmatprep.subr.bf16.mxu1 %v664_v12  ;;  %v2692_v37 = vpop.f32.mrb[24].mxu0  ;;  %v3329_v2 = vpop.permute.xlu1 %1442 }
 0x133   : > { %v1049_v38 = vpop.f32.mrb[25].mxu0  ;;  %4069 = vst [vmem:[#allocation18_spill] sm:$0xff] %v3329_v2 }
 0x134   : > { %v2693_v40 = vpop.f32.mrb[26].mxu0 }
 0x135   : > { %v1085_v42 = vpack.c.bf16 %v2693_v40, %v2692_v37  ;;  %v1052_v43 = vpop.f32.mrb[27].mxu0 }
 0x136   : > { %v1084_v45 = vpack.c.bf16 %v1052_v43, %v1049_v38 }
 0x139   : > { %2711 = vmatpush3.bf16.xpose.msra.mxu1 %v664_v12 }
 0x13a   : > { %2712 = vmatprep.subr.bf16.mxu1 %v3216_v10  ;;  %v2696_v49 = vpop.f32.mrb[28].mxu0 }
 0x13b   : > { %v1065_v50 = vpop.f32.mrb[29].mxu0 }
 0x13c   : > { %v2697_v52 = vpop.f32.mrb[30].mxu0 }
 0x13d   : > { %v1087_v54 = vpack.c.bf16 %v2697_v52, %v2696_v49  ;;  %v1068_v55 = vpop.f32.mrb[31].mxu0 }
 0x13e   : > { %v1086_v57 = vpack.c.bf16 %v1068_v55, %v1065_v50 }
 0x141   : > { %2713 = vmatpush3.bf16.xpose.msra.mxu1 %v3216_v10 }
 0x148   : > { %2715 = vmatmul.mubr.bf16.vlgmr.msra.gmra.mrb[16].mxu1 %v1081_v18 }
 0x149   : > { %2718 = vmatprep.mubr.bf16.mxu1 %v1082_v33 }
 0x150   : > { %2719 = vmatmul.mubr.bf16.gmra.mrb[20].mxu1 %v1083_v30 }
 0x151   : > { %2722 = vmatprep.mubr.bf16.mxu1 %v1084_v45 }
 0x158   : > { %2723 = vmatmul.mubr.bf16.gmra.mrb[24].mxu1 %v1085_v42 }
 0x159   : > { %2726 = vmatprep.mubr.bf16.mxu1 %v1086_v57 }
 0x160   : > { %2727 = vmatmul.mubr.bf16.gmra.mrb[28].mxu1 %v1087_v54 }
 0x21b   : > { %v2716_v4 = vpop.f32.mrb[16].mxu1 }
 0x21c   : > { %v1195_v5 = vmul.f32 0.17677669, %v2716_v4  ;;  %v1130_v6 = vpop.f32.mrb[17].mxu1  ;;  %v3333_v4 = vpop.permute.xlu1 %1447 }
 0x21d   : > { %v1193_v7 = vmul.f32 0.17677669, %v1130_v6  ;;  %v2717_v8 = vpop.f32.mrb[18].mxu1  ;;  %4071 = vst [vmem:[#allocation20_spill] sm:$0xff] %v3333_v4 }
 0x21e   : > { %v1196_v9 = vmul.f32 0.17677669, %v2717_v8  ;;  %v1133_v10 = vpop.f32.mrb[19].mxu1  ;;  %v3265_v11 = vadd.f32 %v1232_v3, %v1195_v5 }
 0x21f   : > { %v1194_v12 = vmul.f32 0.17677669, %v1133_v10  ;;  %v3267_v13 = vadd.f32 %v1232_v3, %v1193_v7 }
 0x220   : > { %1254 = vmax.xlane.f32.xlu1 %v3265_v11  ;;  %v3271_v14 = vadd.f32 %v1232_v3, %v1196_v9  ;;  %v3337_v6 = vpop.permute.xlu1 %1452 }
 0x221   : > { %1250 = vmax.xlane.f32.xlu0 %v3267_v13  ;;  %v3273_v16 = vadd.f32 %v1232_v3, %v1194_v12  ;;  %4073 = vst [vmem:[#allocation22_spill] sm:$0xff] %v3337_v6 }
 0x223   : > { %v2720_v15 = vpop.f32.mrb[20].mxu1 }
 0x224   : > { %v1199_v17 = vmul.f32 0.17677669, %v2720_v15  ;;  %1256 = vmax.xlane.f32.xlu1 %v3271_v14  ;;  %v1146_v18 = vpop.f32.mrb[21].mxu1  ;;  %v3341_v8 = vpop.permute.xlu1 %1462 }
 0x225   : > { %1252 = vmax.xlane.f32.xlu0 %v3273_v16  ;;  %v2721_v19 = vpop.f32.mrb[22].mxu1  ;;  %v1197_v25 = vmul.f32 0.17677669, %v1146_v18  ;;  %4075 = vst [vmem:[#allocation24_spill] sm:$0xff] %v3341_v8 }
 0x226   : > { %v1200_v20 = vmul.f32 0.17677669, %v2721_v19  ;;  %v1149_v21 = vpop.f32.mrb[23].mxu1  ;;  %v3277_v23 = vadd.f32 %v1232_v3, %v1199_v17 }
 0x227   : > { %v1198_v26 = vmul.f32 0.17677669, %v1149_v21  ;;  %v3283_v29 = vadd.f32 %v1232_v3, %v1197_v25 }
 0x228   : > { %v3279_v27 = vadd.f32 %v1232_v3, %v1200_v20 }
 0x229   : > { %1262 = vmax.xlane.f32.xlu0 %v3277_v23  ;;  %v3285_v32 = vadd.f32 %v1232_v3, %v1198_v26 }
 0x22a   : > { %1264 = vmax.xlane.f32.xlu1 %v3279_v27 }
 0x22b   : > { %v2724_v28 = vpop.f32.mrb[24].mxu1 }
 0x22c   : > { %v1203_v30 = vmul.f32 0.17677669, %v2724_v28  ;;  %v1162_v31 = vpop.f32.mrb[25].mxu1 }
 0x22d   : > { %1258 = vmax.xlane.f32.xlu0 %v3283_v29  ;;  %v2725_v33 = vpop.f32.mrb[26].mxu1  ;;  %v1201_v39 = vmul.f32 0.17677669, %v1162_v31 }
 0x22e   : > { %v1204_v35 = vmul.f32 0.17677669, %v2725_v33  ;;  %1260 = vmax.xlane.f32.xlu1 %v3285_v32  ;;  %v1165_v37 = vpop.f32.mrb[27].mxu1  ;;  %v3289_v38 = vadd.f32 %v1232_v3, %v1203_v30 }
 0x22f   : > { %v1202_v40 = vmul.f32 0.17677669, %v1165_v37  ;;  %v3295_v43 = vadd.f32 %v1232_v3, %v1201_v39 }
 0x230   : > { %v3291_v41 = vadd.f32 %v1232_v3, %v1204_v35 }
 0x231   : > { %1270 = vmax.xlane.f32.xlu0 %v3289_v38  ;;  %v3297_v47 = vadd.f32 %v1232_v3, %v1202_v40 }
 0x232   : > { %1272 = vmax.xlane.f32.xlu1 %v3291_v41 }
 0x233   : > { %v2728_v42 = vpop.f32.mrb[28].mxu1 }
 0x234   : > { %v1207_v44 = vmul.f32 0.17677669, %v2728_v42  ;;  %v1178_v45 = vpop.f32.mrb[29].mxu1 }
 0x235   : > { %1266 = vmax.xlane.f32.xlu0 %v3295_v43  ;;  %v2729_v49 = vpop.f32.mrb[30].mxu1  ;;  %v1205_v53 = vmul.f32 0.17677669, %v1178_v45 }
 0x236   : > { %v1208_v50 = vmul.f32 0.17677669, %v2729_v49  ;;  %1268 = vmax.xlane.f32.xlu1 %v3297_v47  ;;  %v1181_v51 = vpop.f32.mrb[31].mxu1  ;;  %v3301_v52 = vadd.f32 %v1232_v3, %v1207_v44 }
 0x237   : > { %v1206_v54 = vmul.f32 0.17677669, %v1181_v51  ;;  %v3307_v56 = vadd.f32 %v1232_v3, %v1205_v53 }
 0x238   : > { %v3303_v55 = vadd.f32 %v1232_v3, %v1208_v50 }
 0x239   : > { %1278 = vmax.xlane.f32.xlu0 %v3301_v52  ;;  %v3309_v57 = vadd.f32 %v1232_v3, %v1206_v54  ;;  %v3331_v3 = vpop.permute.xlu0 %1412 }
 0x23a   : > { %1280 = vmax.xlane.f32.xlu1 %v3303_v55  ;;  %4070 = vst [vmem:[#allocation19_spill] sm:$0xff] %v3331_v3 }
 0x23d   : > { %1274 = vmax.xlane.f32.xlu0 %v3307_v56  ;;  %v3335_v5 = vpop.permute.xlu0 %1437 }
 0x23e   : > { %1276 = vmax.xlane.f32.xlu1 %v3309_v57  ;;  %4072 = vst [vmem:[#allocation21_spill] sm:$0xff] %v3335_v5 }
 0x241   : > { %v3339_v7 = vpop.permute.xlu0 %1457 }
 0x242   : > { %4074 = vst [vmem:[#allocation23_spill] sm:$0xff] %v3339_v7 }
 0x245   : > { %v3343_v9 = vpop.permute.xlu0 %1467 }
 0x246   : > { %4076 = vst [vmem:[#allocation25_spill] sm:$0xff] %v3343_v9 }
 0x24f   : > { %1472 = vperm.xlu1 %2788, %v3314_v59  }
 0x253   : > { %1477 = vperm.xlu0 %2787, %v3318_v61  }
 0x2ad   : > { %v1255_v10 = vpop.xlane.xlu1 %1254 }
 0x2ae   : > { %v3346_v12 = vsub.f32 %v3265_v11, %v1255_v10  ;;  %v1251_v15 = vpop.xlane.xlu0 %1250 }
 0x2af   : > { %v3349_v17 = vsub.f32 %v3267_v13, %v1251_v15 }
 0x2b0   : > { %v1302_v18 = vmul.f32 1.442695, %v3346_v12 }
 0x2b1   : > { %v1298_v19 = vmul.f32 1.442695, %v3349_v17  ;;  %v1257_v20 = vpop.xlane.xlu1 %1256 }
 0x2b2   : > { %2829 = vpow2.f32 %v1302_v18  ;;  %v3354_v21 = vsub.f32 %v3271_v14, %v1257_v20  ;;  %v1253_v25 = vpop.xlane.xlu0 %1252 }
 0x2b3   : > { %v3357_v26 = vsub.f32 %v3273_v16, %v1253_v25  ;;  %2831 = vpow2.f32 %v1298_v19 }
 0x2b4   : > { %v1304_v11 = vmul.f32 1.442695, %v3354_v21 }
 0x2b5   : > { %v1300_v13 = vmul.f32 1.442695, %v3357_v26 }
 0x2b6   : > { %2833 = vpow2.f32 %v1304_v11  ;;  %v1263_v28 = vpop.xlane.xlu0 %1262 }
 0x2b7   : > { %v3362_v30 = vsub.f32 %v3277_v23, %v1263_v28  ;;  %v1265_v31 = vpop.xlane.xlu1 %1264  ;;  %2835 = vpow2.f32 %v1300_v13 }
 0x2b8   : > { %v3365_v33 = vsub.f32 %v3279_v27, %v1265_v31 }
 0x2b9   : > { %v1310_v14 = vmul.f32 1.442695, %v3362_v30 }
 0x2ba   : > { %v1312_v16 = vmul.f32 1.442695, %v3365_v33  ;;  %v1259_v35 = vpop.xlane.xlu0 %1258 }
 0x2bb   : > { %2837 = vpow2.f32 %v1310_v14  ;;  %v3370_v37 = vsub.f32 %v3283_v29, %v1259_v35  ;;  %v1261_v39 = vpop.xlane.xlu1 %1260 }
 0x2bc   : > { %v3372_v40 = vpop.eup %2829  ;;  %v3375_v23 = vsub.f32 %v3285_v32, %v1261_v39  ;;  %2839 = vpow2.f32 %v1312_v16 }
 0x2bd   : > { %v1306_v42 = vmul.f32 1.442695, %v3370_v37  ;;  %1334 = vadd.xlane.f32.xlu0 %v3372_v40  ;;  %v3380_v45 = vpop.eup %2831 }
 0x2be   : > { %v1308_v27 = vmul.f32 1.442695, %v3375_v23  ;;  %v1271_v44 = vpop.xlane.xlu0 %1270 }
 0x2bf   : > { %2841 = vpow2.f32 %v1306_v42  ;;  %v3383_v29 = vsub.f32 %v3289_v38, %v1271_v44  ;;  %v1273_v49 = vpop.xlane.xlu1 %1272 }
 0x2c0   : > { %v3385_v50 = vpop.eup %2833  ;;  %v3388_v32 = vsub.f32 %v3291_v41, %v1273_v49  ;;  %2843 = vpow2.f32 %v1308_v27 }
 0x2c1   : > { %v1318_v51 = vmul.f32 1.442695, %v3383_v29  ;;  %1330 = vadd.xlane.f32.xlu0 %v3380_v45  ;;  %1336 = vadd.xlane.f32.xlu1 %v3385_v50  ;;  %v3397_v15 = vpop.eup %2835 }
 0x2c2   : > { %v1320_v53 = vmul.f32 1.442695, %v3388_v32  ;;  %v1267_v54 = vpop.xlane.xlu0 %1266 }
 0x2c3   : > { %2845 = vpow2.f32 %v1318_v51  ;;  %v3395_v38 = vsub.f32 %v3295_v43, %v1267_v54  ;;  %v1269_v10 = vpop.xlane.xlu1 %1268 }
 0x2c4   : > { %v3400_v41 = vsub.f32 %v3297_v47, %v1269_v10  ;;  %2847 = vpow2.f32 %v1320_v53 }
 0x2c5   : > { %v3402_v18 = vpop.eup %2837  ;;  %v1314_v19 = vmul.f32 1.442695, %v3395_v38  ;;  %1332 = vadd.xlane.f32.xlu1 %v3397_v15 }
 0x2c6   : > { %v1316_v20 = vmul.f32 1.442695, %v3400_v41  ;;  %v1279_v25 = vpop.xlane.xlu0 %1278  ;;  %1342 = vadd.xlane.f32.xlu0 %v3402_v18  ;;  %v3411_v13 = vpop.eup %2839 }
 0x2c7   : > { %2849 = vpow2.f32 %v1314_v19  ;;  %v3409_v43 = vsub.f32 %v3301_v52, %v1279_v25  ;;  %v1281_v11 = vpop.xlane.xlu1 %1280  ;;  %v3458_v19 = vld [vmem:[%s3202_s14 + $0x78] sm:$0xff] }
 0x2c8   : > { %2851 = vpow2.f32 %v1316_v20  ;;  %v3430_v42 = vsub.f32 %v3303_v55, %v1281_v11  ;;  %4077 = vst [vmem:[#allocation26_spill] sm:$0xff] %v3458_v19  ;;  %v3461_v20 = vld [vmem:[%s3202_s14 + $0x70] sm:$0xff] }
 0x2c9   : > { %v3413_v47 = vpop.eup %2841  ;;  %1344 = vadd.xlane.f32.xlu1 %v3411_v13  ;;  %v1326_v28 = vmul.f32 1.442695, %v3409_v43  ;;  %4078 = vst [vmem:[#allocation27_spill] sm:$0xff] %v3461_v20 }
 0x2ca   : > { %1338 = vadd.xlane.f32.xlu0 %v3413_v47  ;;  %v1275_v31 = vpop.xlane.xlu0 %1274  ;;  %v3421_v35 = vpop.eup %2843 }
 0x2cb   : > { %v3419_v14 = vsub.f32 %v3307_v56, %v1275_v31  ;;  %v1277_v16 = vpop.xlane.xlu1 %1276  ;;  %2853 = vpow2.f32 %v1326_v28 }
 0x2cc   : > { %v3424_v52 = vsub.f32 %v3309_v57, %v1277_v16  ;;  %v1328_v57 = vmul.f32 1.442695, %v3430_v42 }
 0x2cd   : > { %v3426_v39 = vpop.eup %2845  ;;  %1340 = vadd.xlane.f32.xlu1 %v3421_v35  ;;  %v1322_v27 = vmul.f32 1.442695, %v3419_v14 }
 0x2ce   : > { %v1324_v44 = vmul.f32 1.442695, %v3424_v52  ;;  %1350 = vadd.xlane.f32.xlu0 %v3426_v39  ;;  %v3435_v56 = vpop.eup %2847 }
 0x2cf   : > { %v3467_v11 = vpop.permute.xlu1 %1472 }
 0x2d0   : > { %2855 = vpow2.f32 %v1324_v44 }
 0x2d1   : > { %v3437_v49 = vpop.eup %2849  ;;  %1352 = vadd.xlane.f32.xlu1 %v3435_v56  ;;  %2857 = vpow2.f32 %v1322_v27 }
 0x2d2   : > { %1346 = vadd.xlane.f32.xlu0 %v3437_v49  ;;  %v3442_v55 = vpop.eup %2851  ;;  %2859 = vpow2.f32 %v1328_v57  ;;  %v3465_v25 = vpop.permute.xlu0 %1477 }
 0x2d3   : > { %4079 = vst [vmem:[#allocation28_spill] sm:$0xff] %v3465_v25 }
 0x2d5   : > { %1348 = vadd.xlane.f32.xlu1 %v3442_v55  ;;  %v3445_v51 = vpop.eup %2853 }
 0x2d9   : > { %1358 = vadd.xlane.f32.xlu1 %v3445_v51 }
 0x2da   : > { %v3448_v53 = vpop.eup %2855 }
 0x2db   : > { %1356 = vadd.xlane.f32.xlu0 %v3448_v53  ;;  %v3451_v54 = vpop.eup %2857 }
 0x2dc   : > { %v3454_v10 = vpop.eup %2859 }
 0x2dd   : > { %1354 = vadd.xlane.f32.xlu1 %v3451_v54 }
 0x2e1   : > { %1360 = vadd.xlane.f32.xlu1 %v3454_v10 }
 0x2f1   : > { %1487 = vperm.xlu0 %2787, %v3458_v19  }
 0x2f2   : > { %1482 = vperm.xlu1 %2788, %v3461_v20  }
 0x34a   : > { %v3469_v28 = vpop.xlane.xlu0 %1334 }
 0x34b   : > { %2861 = vrcp.f32 %v3469_v28 }
 0x34e   : > { %v3472_v31 = vpop.xlane.xlu0 %1330  ;;  %v3474_v16 = vpop.xlane.xlu1 %1336 }
 0x34f   : > { %2863 = vrcp.f32 %v3472_v31 }
 0x350   : > { %2865 = vrcp.f32 %v3474_v16 }
 0x352   : > { %v3478_v27 = vpop.xlane.xlu1 %1332 }
 0x353   : > { %2867 = vrcp.f32 %v3478_v27  ;;  %v3481_v44 = vpop.xlane.xlu0 %1342 }
 0x354   : > { %2869 = vrcp.f32 %v3481_v44 }
 0x355   : > { %v3483_v57 = vpop.eup %2861 }
 0x356   : > { %4080 = vst [vmem:[#allocation29_spill] sm:$0xff] %v3483_v57  ;;  %v3486_v60 = vpop.xlane.xlu1 %1344  ;;  %v1396_v58 = vmul.f32 %v3483_v57, %v3372_v40 }
 0x357   : > { %4081 = vst [vmem:[#allocation30_spill] sm:$0xff] %v3486_v60  ;;  %2871 = vrcp.f32 %v3486_v60  ;;  %v3497_v48 = vpop.xlane.xlu0 %1338 }
 0x358   : > { %v1492_v46 = vmul.f32 %v3323_v63, %v1396_v58  ;;  %2873 = vrcp.f32 %v3497_v48 }
 0x359   : > { %v3500_v36 = vpop.eup %2863 }
 0x35a   : > { %4082 = vst [vmem:[#allocation31_spill] sm:$0xff] %v3500_v36  ;;  %1508 = vst [vmem:[%s3494_s21 + $0x10] sm:$0xff] %v1492_v46  ;;  %1671 = vadd.xlane.f32.xlu0 %v1492_v46  ;;  %v3504_v34 = vpop.xlane.xlu1 %1340  ;;  %v1394_v24 = vmul.f32 %v3500_v36, %v3380_v45  ;;  %v3508_v22 = vpop.eup %2865 }
 0x35b   : > { %4083 = vst [vmem:[#allocation32_spill] sm:$0xff] %v3508_v22  ;;  %2875 = vrcp.f32 %v3504_v34  ;;  %v3511_v19 = vpop.xlane.xlu0 %1350  ;;  %v1397_v63 = vmul.f32 %v3508_v22, %v3385_v50 }
 0x35c   : > { %4084 = vst [vmem:[#allocation33_spill] sm:$0xff] %v3511_v19  ;;  %v1490_v58 = vmul.f32 %v3331_v3, %v1394_v24  ;;  %2877 = vrcp.f32 %v3511_v19 }
 0x35d   : > { %v3516_v20 = vpop.eup %2867  ;;  %v1493_v59 = vmul.f32 %v3325_v0, %v1397_v63 }
 0x35e   : > { %4085 = vst [vmem:[#allocation34_spill] sm:$0xff] %v3516_v20  ;;  %1506 = vst [vmem:[%s3494_s21] sm:$0xff] %v1490_v58  ;;  %1667 = vadd.xlane.f32.xlu1 %v1490_v58  ;;  %v3520_v61 = vpop.xlane.xlu1 %1352  ;;  %v1395_v57 = vmul.f32 %v3516_v20, %v3397_v15  ;;  %v3525_v36 = vpop.eup %2869 }
 0x35f   : > { %4086 = vst [vmem:[#allocation35_spill] sm:$0xff] %v3520_v61  ;;  %4087 = vst [vmem:[#allocation36_spill] sm:$0xff] %v3525_v36  ;;  %2879 = vrcp.f32 %v3520_v61  ;;  %v3528_v24 = vpop.xlane.xlu0 %1346  ;;  %v1400_v19 = vmul.f32 %v3525_v36, %v3402_v18 }
 0x360   : > { %4088 = vst [vmem:[#allocation37_spill] sm:$0xff] %v3528_v24  ;;  %1509 = vst [vmem:[%s3494_s21 + $0x18] sm:$0xff] %v1493_v59  ;;  %v1491_v3 = vmul.f32 %v3321_v62, %v1395_v57  ;;  %2881 = vrcp.f32 %v3528_v24  ;;  %v1732_v62 = vpack.c.bf16 %v1493_v59, %v1492_v46 }
 0x361   : > { %v3534_v22 = vpop.eup %2871  ;;  %v1496_v61 = vmul.f32 %v3329_v2, %v1400_v19 }
 0x362   : > { %1673 = vadd.xlane.f32.xlu1 %v1493_v59  ;;  %1669 = vadd.xlane.f32.xlu0 %v1491_v3  ;;  %1507 = vst [vmem:[%s3494_s21 + $0x8] sm:$0xff] %v1491_v3  ;;  %v3538_v63 = vpop.xlane.xlu1 %1348  ;;  %v1731_v0 = vpack.c.bf16 %v1491_v3, %v1490_v58  ;;  %v1401_v20 = vmul.f32 %v3534_v22, %v3411_v13  ;;  %v3543_v57 = vpop.eup %2873 }
 0x363   : > { %2883 = vrcp.f32 %v3538_v63  ;;  %1512 = vst [vmem:[%s3494_s21 + $0x30] sm:$0xff] %v1496_v61  ;;  %v1398_v24 = vmul.f32 %v3543_v57, %v3413_v47 }
 0x364   : > { %2746 = vmatprep.mubr.bf16.mxu0 %v1731_v0  ;;  %v1497_v36 = vmul.f32 %v3333_v4, %v1401_v20 }
 0x365   : > { %v3550_v60 = vpop.eup %2875  ;;  %2747 = vmatmul.mubr.bf16.vlgmr.msra.gmra.mrb[32].mxu0 %v1732_v62  ;;  %v1494_v46 = vmul.f32 %v3327_v1, %v1398_v24 }
 0x366   : > { %1679 = vadd.xlane.f32.xlu0 %v1496_v61  ;;  %1681 = vadd.xlane.f32.xlu1 %v1497_v36  ;;  %1513 = vst [vmem:[%s3494_s21 + $0x38] sm:$0xff] %v1497_v36  ;;  %v3553_v3 = vpop.xlane.xlu1 %1358  ;;  %v1399_v59 = vmul.f32 %v3550_v60, %v3421_v35  ;;  %v3558_v0 = vpop.eup %2877 }
 0x367   : > { %4089 = vst [vmem:[#allocation38_spill] sm:$0xff] %v3553_v3  ;;  %4090 = vst [vmem:[#allocation39_spill] sm:$0xff] %v3558_v0  ;;  %2885 = vrcp.f32 %v3553_v3  ;;  %v1404_v20 = vmul.f32 %v3558_v0, %v3426_v39 }
 0x368   : > { %v3561_v19 = vpop.xlane.xlu0 %1356  ;;  %1510 = vst [vmem:[%s3494_s21 + $0x20] sm:$0xff] %v1494_v46  ;;  %v1495_v62 = vmul.f32 %v3335_v5, %v1399_v59  ;;  %v1734_v5 = vpack.c.bf16 %v1497_v36, %v1496_v61 }
 0x369   : > { %v3567_v58 = vpop.eup %2879  ;;  %2887 = vrcp.f32 %v3561_v19  ;;  %v1500_v4 = vmul.f32 %v3341_v8, %v1404_v20 }
 0x36a   : > { %1675 = vadd.xlane.f32.xlu0 %v1494_v46  ;;  %1677 = vadd.xlane.f32.xlu1 %v1495_v62  ;;  %1511 = vst [vmem:[%s3494_s21 + $0x28] sm:$0xff] %v1495_v62  ;;  %v3571_v24 = vpop.xlane.xlu1 %1354  ;;  %v1733_v1 = vpack.c.bf16 %v1495_v62, %v1494_v46  ;;  %v1405_v2 = vmul.f32 %v3567_v58, %v3435_v56  ;;  %v3576_v59 = vpop.eup %2881 }
 0x36b   : > { %2889 = vrcp.f32 %v3571_v24  ;;  %1516 = vst [vmem:[%s3494_s21 + $0x50] sm:$0xff] %v1500_v4  ;;  %v1402_v3 = vmul.f32 %v3576_v59, %v3437_v49 }
 0x36c   : > { %2750 = vmatprep.mubr.bf16.mxu0 %v1733_v1  ;;  %v1501_v0 = vmul.f32 %v3343_v9, %v1405_v2 }
 0x36d   : > { %v3583_v46 = vpop.eup %2883  ;;  %2751 = vmatmul.mubr.bf16.gmra.mrb[36].mxu0 %v1734_v5  ;;  %v1498_v20 = vmul.f32 %v3337_v6, %v1402_v3 }
 0x36e   : > { %1687 = vadd.xlane.f32.xlu0 %v1500_v4  ;;  %1689 = vadd.xlane.f32.xlu1 %v1501_v0  ;;  %1517 = vst [vmem:[%s3494_s21 + $0x58] sm:$0xff] %v1501_v0  ;;  %v3586_v62 = vpop.xlane.xlu1 %1360  ;;  %v1403_v36 = vmul.f32 %v3583_v46, %v3442_v55  ;;  %v1736_v9 = vpack.c.bf16 %v1501_v0, %v1500_v4 }
 0x36f   : > { %2891 = vrcp.f32 %v3586_v62  ;;  %1514 = vst [vmem:[%s3494_s21 + $0x40] sm:$0xff] %v1498_v20 }
 0x370   : > { %v1499_v61 = vmul.f32 %v3339_v7, %v1403_v36  ;;  %2893 = vlog2.f32 %v3472_v31  ;;  %v4093_v31 = vld [vmem:[#allocation31_spill] sm:$0xff] }
 0x371   : > { %v3594_v1 = vpop.eup %2885  ;;  %2895 = vlog2.f32 %v3478_v27 }
 0x372   : > { %4091 = vst [vmem:[#allocation40_spill] sm:$0xff] %v3594_v1  ;;  %1683 = vadd.xlane.f32.xlu0 %v1498_v20  ;;  %1685 = vadd.xlane.f32.xlu1 %v1499_v61  ;;  %1515 = vst [vmem:[%s3494_s21 + $0x48] sm:$0xff] %v1499_v61  ;;  %v1408_v2 = vmul.f32 %v3594_v1, %v3445_v51  ;;  %v3599_v5 = vpop.permute.xlu1 %1482  ;;  %v1735_v3 = vpack.c.bf16 %v1499_v61, %v1498_v20  ;;  %2897 = vlog2.f32 %v3469_v28 }
 0x373   : > { %v3601_v6 = vpop.eup %2887  ;;  %2899 = vlog2.f32 %v3474_v16  ;;  %v4094_v16 = vld [vmem:[#allocation34_spill] sm:$0xff] }
 0x374   : > { %v1504_v8 = vmul.f32 %v3599_v5, %v1408_v2  ;;  %2754 = vmatprep.mubr.bf16.mxu0 %v1735_v3  ;;  %v1407_v36 = vmul.f32 %v3601_v6, %v3448_v53  ;;  %v3619_v3 = vpop.permute.xlu0 %1487  ;;  %2901 = vlog2.f32 %v3497_v48 }
 0x375   : > { %v3606_v7 = vpop.eup %2889  ;;  %2755 = vmatmul.mubr.bf16.gmra.mrb[40].mxu0 %v1736_v9  ;;  %2903 = vlog2.f32 %v3504_v34 }
 0x376   : > { %1520 = vst [vmem:[%s3494_s21 + $0x70] sm:$0xff] %v1504_v8  ;;  %v1503_v1 = vmul.f32 %v3465_v25, %v1407_v36  ;;  %v1406_v20 = vmul.f32 %v3606_v7, %v3451_v54  ;;  %v1554_v25 = vmul.f32 %v3380_v45, %v3349_v17  ;;  %v1561_v17 = vmul.f32 %v3411_v13, %v3365_v33 }
 0x377   : > { %v1566_v33 = vmul.f32 %v3451_v54, %v3419_v14  ;;  %v1568_v45 = vmul.f32 %v3445_v51, %v3409_v43  ;;  %2905 = vlog2.f32 %v3481_v44  ;;  %v4092_v51 = vld [vmem:[#allocation30_spill] sm:$0xff] }
 0x378   : > { %1519 = vst [vmem:[%s3494_s21 + $0x68] sm:$0xff] %v1503_v1  ;;  %1693 = vadd.xlane.f32.xlu1 %v1503_v1  ;;  %v1502_v4 = vmul.f32 %v3467_v11, %v1406_v20  ;;  %v1555_v20 = vmul.f32 %v3397_v15, %v3357_v26  ;;  %v1560_v26 = vmul.f32 %v3402_v18, %v3362_v30  ;;  %2907 = vlog2.f32 %v4092_v51 }
 0x379   : > { %v3614_v0 = vpop.eup %2891  ;;  %v1567_v30 = vmul.f32 %v3448_v53, %v3424_v52 }
 0x37a   : > { %v1409_v61 = vmul.f32 %v3614_v0, %v3454_v10  ;;  %1691 = vadd.xlane.f32.xlu0 %v1502_v4  ;;  %1518 = vst [vmem:[%s3494_s21 + $0x60] sm:$0xff] %v1502_v4  ;;  %v1737_v2 = vpack.c.bf16 %v1503_v1, %v1502_v4  ;;  %v1557_v1 = vmul.f32 %v3385_v50, %v3354_v21 }
 0x37b   : > { %v1556_v4 = vmul.f32 %v3372_v40, %v3346_v12  ;;  %v1563_v12 = vmul.f32 %v3442_v55, %v3400_v41  ;;  %v1562_v21 = vmul.f32 %v3437_v49, %v3395_v38  ;;  %v1564_v40 = vmul.f32 %v3426_v39, %v3383_v29  ;;  %v2894_v49 = vpop.eup %2893 }
 0x37c   : > { %v1505_v9 = vmul.f32 %v3619_v3, %v1409_v61  ;;  %2758 = vmatprep.mubr.bf16.mxu0 %v1737_v2  ;;  %v1558_v61 = vmul.f32 %v3413_v47, %v3370_v37  ;;  %v1565_v37 = vmul.f32 %v3435_v56, %v3388_v32  ;;  %v2896_v55 = vpop.eup %2895  ;;  %v1523_v28 = vmul.f32 0.6931472, %v2894_v49  ;;  %v4095_v2 = vld [vmem:[#allocation37_spill] sm:$0xff] }
 0x37d   : > { %v2898_v53 = vpop.eup %2897  ;;  %v1525_v34 = vmul.f32 0.6931472, %v2896_v55  ;;  %2909 = vlog2.f32 %v4095_v2 }
 0x37e   : > { %1521 = vst [vmem:[%s3494_s21 + $0x78] sm:$0xff] %v1505_v9  ;;  %1697 = vadd.xlane.f32.xlu1 %v1505_v9  ;;  %1695 = vadd.xlane.f32.xlu0 %v1504_v8  ;;  %v1738_v36 = vpack.c.bf16 %v1505_v9, %v1504_v8  ;;  %v1559_v8 = vmul.f32 %v3421_v35, %v3375_v23  ;;  %2911 = vlog2.f32 %v3538_v63 }
 0x37f   : > { %v1569_v23 = vmul.f32 %v3454_v10, %v3430_v42 }
 0x380   : > { %2759 = vmatmul.mubr.bf16.gmra.mrb[44].mxu0 %v1738_v36 }
 0x382   : > { %1572 = vadd.xlane.f32.xlu1 %v1555_v20  ;;  %1570 = vadd.xlane.f32.xlu0 %v1554_v25  ;;  %v2900_v25 = vpop.eup %2899  ;;  %v1527_v20 = vmul.f32 0.6931472, %v2898_v53 }
 0x383   : > { %v2902_v36 = vpop.eup %2901 }
 0x384   : > { %v1531_v51 = vmul.f32 0.6931472, %v2902_v36 }
 0x386   : > { %1576 = vadd.xlane.f32.xlu1 %v1557_v1  ;;  %1574 = vadd.xlane.f32.xlu0 %v1556_v4  ;;  %v1529_v4 = vmul.f32 0.6931472, %v2900_v25 }
 0x38a   : > { %1580 = vadd.xlane.f32.xlu1 %v1559_v8  ;;  %1578 = vadd.xlane.f32.xlu0 %v1558_v61  ;;  %v2904_v61 = vpop.eup %2903 }
 0x38b   : > { %v2906_v55 = vpop.eup %2905 }
 0x38c   : > { %v2908_v25 = vpop.eup %2907  ;;  %v1535_v36 = vmul.f32 0.6931472, %v2906_v55  ;;  %v2996_v55 = vld [vmem:[%s3202_s14 + $0x38] sm:$0xff] }
 0x38e   : > { %1584 = vadd.xlane.f32.xlu1 %v1561_v17  ;;  %1582 = vadd.xlane.f32.xlu0 %v1560_v26  ;;  %v2989_v17 = vld [vmem:[%s3202_s14] sm:$0xff] }
 0x392   : > { %1588 = vadd.xlane.f32.xlu1 %v1563_v12  ;;  %1586 = vadd.xlane.f32.xlu0 %v1562_v21  ;;  %v2990_v12 = vld [vmem:[%s3202_s14 + $0x8] sm:$0xff] }
 0x393   : > { %v4096_v21 = vld [vmem:[#allocation29_spill] sm:$0xff] }
 0x396   : > { %1592 = vadd.xlane.f32.xlu1 %v1565_v37  ;;  %1590 = vadd.xlane.f32.xlu0 %v1564_v40  ;;  %v4097_v40 = vld [vmem:[#allocation32_spill] sm:$0xff] }
 0x39a   : > { %1596 = vadd.xlane.f32.xlu1 %v1567_v30  ;;  %1594 = vadd.xlane.f32.xlu0 %v1566_v33  ;;  %v4098_v33 = vld [vmem:[#allocation33_spill] sm:$0xff] }
 0x39b   : > { %2913 = vlog2.f32 %v4098_v33 }
 0x39e   : > { %1600 = vadd.xlane.f32.xlu1 %v1569_v23  ;;  %1598 = vadd.xlane.f32.xlu0 %v1568_v45  ;;  %v4099_v23 = vld [vmem:[#allocation35_spill] sm:$0xff] }
 0x39f   : > { %2915 = vlog2.f32 %v4099_v23 }
 0x3a0   : > { %2917 = vlog2.f32 %v3561_v19 }
 0x3a1   : > { %2919 = vlog2.f32 %v3571_v24  ;;  %v4100_v24 = vld [vmem:[#allocation36_spill] sm:$0xff] }
 0x3e7   : > { %v3655_v50 = vpop.xlane.xlu0 %1671 }
 0x3eb   : > { %v3657_v29 = vpop.xlane.xlu1 %1667 }
 0x3ef   : > { %v3659_v32 = vpop.xlane.xlu0 %1669  ;;  %v3661_v38 = vpop.xlane.xlu1 %1673 }
 0x3f3   : > { %v3663_v15 = vpop.xlane.xlu0 %1679  ;;  %v3665_v41 = vpop.xlane.xlu1 %1681 }
 0x3f7   : > { %v3667_v18 = vpop.xlane.xlu0 %1675  ;;  %v3669_v13 = vpop.xlane.xlu1 %1677 }
 0x3fb   : > { %v3671_v47 = vpop.xlane.xlu0 %1687  ;;  %v3673_v43 = vpop.xlane.xlu1 %1689 }
 0x3ff   : > { %v3677_v14 = vpop.xlane.xlu0 %1683  ;;  %v3679_v35 = vpop.xlane.xlu1 %1685 }
 0x405   : > { %v3683_v52 = vpop.xlane.xlu1 %1693 }
 0x407   : > { %v3685_v39 = vpop.xlane.xlu0 %1691 }
 0x40b   : > { %v3689_v42 = vpop.xlane.xlu0 %1695  ;;  %v3691_v56 = vpop.xlane.xlu1 %1697 }
 0x40f   : > { %v1571_v54 = vpop.xlane.xlu0 %1570  ;;  %v1573_v10 = vpop.xlane.xlu1 %1572 }
 0x410   : > { %v1602_v48 = vmul.f32 %v4093_v31, %v1571_v54  ;;  %v1603_v27 = vmul.f32 %v4094_v16, %v1573_v10  ;;  %v1533_v54 = vmul.f32 0.6931472, %v2904_v61  ;;  %v2994_v61 = vld [vmem:[%s3202_s14 + $0x28] sm:$0xff] }
 0x412   : > { %v1618_v9 = vsub.f32 %v1523_v28, %v1602_v48  ;;  %v1619_v44 = vsub.f32 %v1525_v34, %v1603_v27  ;;  %v2991_v28 = vld [vmem:[%s3202_s14 + $0x10] sm:$0xff]  ;;  %v2992_v48 = vld [vmem:[%s3202_s14 + $0x18] sm:$0xff] }
 0x413   : > { %v1575_v1 = vpop.xlane.xlu0 %1574  ;;  %v1577_v8 = vpop.xlane.xlu1 %1576 }
 0x414   : > { %v1634_v26 = vmul.f32 %v2989_v17, %v1618_v9  ;;  %v1635_v63 = vmul.f32 %v2990_v12, %v1619_v44  ;;  %v1604_v37 = vmul.f32 %v4096_v21, %v1575_v1  ;;  %v1605_v30 = vmul.f32 %v4097_v40, %v1577_v8  ;;  %v2910_v44 = vpop.eup %2909  ;;  %v2993_v8 = vld [vmem:[%s3202_s14 + $0x20] sm:$0xff]  ;;  %v4101_v12 = vld [vmem:[#allocation38_spill] sm:$0xff] }
 0x415   : > { %v1537_v1 = vmul.f32 0.6931472, %v2908_v25  ;;  %2921 = vlog2.f32 %v4101_v12  ;;  %v1539_v40 = vmul.f32 0.6931472, %v2910_v44 }
 0x416   : > { %1651 = vst.msk [vmem:[%s3703_s24] sm:$0xff] %vm1650_vm0, %v1634_v26  ;;  %1652 = vst.msk [vmem:[%s3703_s24 + $0x8] sm:$0xff] %vm1650_vm0, %v1635_v63  ;;  %v1620_v45 = vsub.f32 %v1527_v20, %v1604_v37  ;;  %v1621_v49 = vsub.f32 %v1529_v4, %v1605_v30  ;;  %v2912_v4 = vpop.eup %2911  ;;  %2923 = vlog2.f32 %v3586_v62 }
 0x417   : > { %v1579_v53 = vpop.xlane.xlu0 %1578  ;;  %v1581_v10 = vpop.xlane.xlu1 %1580  ;;  %v1541_v33 = vmul.f32 0.6931472, %v2912_v4 }
 0x418   : > { %v1636_v31 = vmul.f32 %v2991_v28, %v1620_v45  ;;  %v1637_v34 = vmul.f32 %v2992_v48, %v1621_v49  ;;  %v1606_v16 = vmul.f32 %v3543_v57, %v1579_v53  ;;  %v1607_v27 = vmul.f32 %v3550_v60, %v1581_v10  ;;  %v2914_v37 = vpop.eup %2913  ;;  %v2995_v49 = vld [vmem:[%s3202_s14 + $0x30] sm:$0xff] }
 0x419   : > { %v2916_v45 = vpop.eup %2915  ;;  %v1543_v28 = vmul.f32 0.6931472, %v2914_v37 }
 0x41a   : > { %1653 = vst.msk [vmem:[%s3703_s24 + $0x10] sm:$0xff] %vm1650_vm0, %v1636_v31  ;;  %1654 = vst.msk [vmem:[%s3703_s24 + $0x18] sm:$0xff] %vm1650_vm0, %v1637_v34  ;;  %v1622_v2 = vsub.f32 %v1531_v51, %v1606_v16  ;;  %v1623_v9 = vsub.f32 %v1533_v54, %v1607_v27  ;;  %v2918_v25 = vpop.eup %2917  ;;  %v1545_v48 = vmul.f32 0.6931472, %v2916_v45  ;;  %v2997_v27 = vld [vmem:[%s3202_s14 + $0x40] sm:$0xff] }
 0x41b   : > { %v1583_v20 = vpop.xlane.xlu0 %1582  ;;  %v1585_v57 = vpop.xlane.xlu1 %1584 }
 0x41c   : > { %v1638_v60 = vmul.f32 %v2993_v8, %v1622_v2  ;;  %v1639_v19 = vmul.f32 %v2994_v61, %v1623_v9  ;;  %v1608_v17 = vmul.f32 %v4100_v24, %v1583_v20  ;;  %v1609_v26 = vmul.f32 %v3534_v22, %v1585_v57  ;;  %v2920_v16 = vpop.eup %2919  ;;  %v4102_v9 = vld [vmem:[#allocation39_spill] sm:$0xff]  ;;  %v2999_v24 = vld [vmem:[%s3202_s14 + $0x50] sm:$0xff] }
 0x41d   : > { %v1547_v4 = vmul.f32 0.6931472, %v2920_v16  ;;  %v4108_v16 = vld [vmem:[#allocation4_spill] sm:$0xff] }
 0x41e   : > { %1655 = vst.msk [vmem:[%s3703_s24 + $0x20] sm:$0xff] %vm1650_vm0, %v1638_v60  ;;  %1656 = vst.msk [vmem:[%s3703_s24 + $0x28] sm:$0xff] %vm1650_vm0, %v1639_v19  ;;  %v1624_v63 = vsub.f32 %v1535_v36, %v1608_v17  ;;  %v1625_v21 = vsub.f32 %v1537_v1, %v1609_v26  ;;  %v1549_v60 = vmul.f32 0.6931472, %v2918_v25  ;;  %v3000_v26 = vld [vmem:[%s3202_s14 + $0x58] sm:$0xff]  ;;  %v1700_v25 = vadd.f32 1.0, %v3659_v32 }
 0x41f   : > { %v1587_v30 = vpop.xlane.xlu0 %1586  ;;  %v1589_v23 = vpop.xlane.xlu1 %1588  ;;  %v1761_v32 = vunpack.c.l.bf16 %v4108_v16 }
 0x420   : > { %v1640_v22 = vmul.f32 %v2995_v49, %v1624_v63  ;;  %v1641_v62 = vmul.f32 %v2996_v55, %v1625_v21  ;;  %v1610_v51 = vmul.f32 %v3576_v59, %v1587_v30  ;;  %v1611_v53 = vmul.f32 %v3583_v46, %v1589_v23  ;;  %v2998_v59 = vld [vmem:[%s3202_s14 + $0x48] sm:$0xff]  ;;  %v2922_v57 = vpop.eup %2921  ;;  %v4103_v49 = vld [vmem:[#allocation12_spill] sm:$0xff] }
 0x421   : > { %v2924_v19 = vpop.eup %2923  ;;  %v1551_v30 = vmul.f32 0.6931472, %v2922_v57  ;;  %v4104_v55 = vld [vmem:[#allocation13_spill] sm:$0xff] }
 0x422   : > { %1657 = vst.msk [vmem:[%s3703_s24 + $0x30] sm:$0xff] %vm1650_vm0, %v1640_v22  ;;  %1658 = vst.msk [vmem:[%s3703_s24 + $0x38] sm:$0xff] %vm1650_vm0, %v1641_v62  ;;  %v1626_v54 = vsub.f32 %v1539_v40, %v1610_v51  ;;  %v1627_v10 = vsub.f32 %v1541_v33, %v1611_v53  ;;  %v1701_v40 = vadd.f32 1.0, %v3655_v50  ;;  %v1553_v23 = vmul.f32 0.6931472, %v2924_v19 }
 0x423   : > { %v1591_v31 = vpop.xlane.xlu0 %1590  ;;  %v1593_v34 = vpop.xlane.xlu1 %1592  ;;  %v1699_v53 = vadd.f32 1.0, %v3657_v29  ;;  %v1706_v29 = vadd.f32 1.0, %v3665_v41 }
 0x424   : > { %v1642_v2 = vmul.f32 %v2997_v27, %v1626_v54  ;;  %v1643_v46 = vmul.f32 %v2998_v59, %v1627_v10  ;;  %v1612_v44 = vmul.f32 %v4102_v9, %v1591_v31  ;;  %v1613_v36 = vmul.f32 %v3567_v58, %v1593_v34  ;;  %v4109_v27 = vld [vmem:[#allocation5_spill] sm:$0xff] }
 0x425   : > { %v1702_v54 = vadd.f32 1.0, %v3661_v38  ;;  %2925 = vrcp.f32 %v1701_v40  ;;  %v1703_v38 = vadd.f32 1.0, %v3667_v18  ;;  %v1704_v59 = vadd.f32 1.0, %v3669_v13  ;;  %v4112_v13 = vld [vmem:[#allocation8_spill] sm:$0xff] }
 0x426   : > { %1659 = vst.msk [vmem:[%s3703_s24 + $0x40] sm:$0xff] %vm1650_vm0, %v1642_v2  ;;  %1660 = vst.msk [vmem:[%s3703_s24 + $0x48] sm:$0xff] %vm1650_vm0, %v1643_v46  ;;  %v1628_v20 = vsub.f32 %v1543_v28, %v1612_v44  ;;  %v1629_v1 = vsub.f32 %v1545_v48, %v1613_v36  ;;  %v4106_v28 = vld [vmem:[#allocation27_spill] sm:$0xff]  ;;  %v4107_v48 = vld [vmem:[#allocation26_spill] sm:$0xff]  ;;  %2927 = vrcp.f32 %v1699_v53  ;;  %v1759_v2 = vunpack.c.l.bf16 %v4109_v27 }
 0x427   : > { %v1595_v8 = vpop.xlane.xlu0 %1594  ;;  %v1597_v61 = vpop.xlane.xlu1 %1596  ;;  %2929 = vrcp.f32 %v1702_v54  ;;  %v1762_v46 = vunpack.c.h.bf16 %v4108_v16  ;;  %v1760_v9 = vunpack.c.h.bf16 %v4109_v27  ;;  %v4110_v44 = vld [vmem:[#allocation6_spill] sm:$0xff]  ;;  %v1710_v18 = vadd.f32 1.0, %v3673_v43  ;;  %v3798_v43 = vld [vmem:[%s4004_s3] ss:$0 sm:$0xff]  ;;  %v4115_v54 = vld [vmem:[#allocation11_spill] sm:$0xff] }
 0x428   : > { %v1644_v17 = vmul.f32 %v2999_v24, %v1628_v20  ;;  %v1645_v12 = vmul.f32 %v3000_v26, %v1629_v1  ;;  %v1614_v58 = vmul.f32 %v3606_v7, %v1595_v8  ;;  %v1615_v63 = vmul.f32 %v3601_v6, %v1597_v61  ;;  %v4105_v6 = vld [vmem:[#allocation40_spill] sm:$0xff]  ;;  %v4113_v24 = vld [vmem:[#allocation9_spill] sm:$0xff] }
 0x429   : > { %2931 = vrcp.f32 %v1700_v25  ;;  %v1765_v36 = vunpack.c.l.bf16 %v4110_v44  ;;  %v1709_v20 = vadd.f32 1.0, %v3671_v47  ;;  %v1766_v41 = vunpack.c.h.bf16 %v4110_v44 }
 0x42a   : > { %1661 = vst.msk [vmem:[%s3703_s24 + $0x50] sm:$0xff] %vm1650_vm0, %v1644_v17  ;;  %1662 = vst.msk [vmem:[%s3703_s24 + $0x58] sm:$0xff] %vm1650_vm0, %v1645_v12  ;;  %v1630_v21 = vsub.f32 %v1547_v4, %v1614_v58  ;;  %v1631_v37 = vsub.f32 %v1549_v60, %v1615_v63  ;;  %v1769_v8 = vunpack.c.l.bf16 %v4112_v13  ;;  %v1707_v60 = vadd.f32 1.0, %v3677_v14 }
 0x42b   : > { %v1599_v33 = vpop.xlane.xlu0 %1598  ;;  %v1601_v45 = vpop.xlane.xlu1 %1600  ;;  %v1767_v17 = vunpack.c.l.bf16 %v4113_v24  ;;  %v1708_v26 = vadd.f32 1.0, %v3679_v35  ;;  %v1770_v63 = vunpack.c.h.bf16 %v4112_v13  ;;  %v1712_v14 = vadd.f32 1.0, %v3683_v52 }
 0x42c   : > { %v1646_v22 = vmul.f32 %v1630_v21, %v4103_v49  ;;  %v1647_v7 = vmul.f32 %v1631_v37, %v4104_v55  ;;  %v1616_v62 = vmul.f32 %v4105_v6, %v1599_v33  ;;  %v1617_v51 = vmul.f32 %v3614_v0, %v1601_v45 }
 0x42d   : > { %v1705_v0 = vadd.f32 1.0, %v3663_v15  ;;  %v4111_v15 = vld [vmem:[#allocation7_spill] sm:$0xff]  ;;  %v1711_v35 = vadd.f32 1.0, %v3685_v39  ;;  %v1714_v27 = vadd.f32 1.0, %v3691_v56 }
 0x42e   : > { %1663 = vst.msk [vmem:[%s3703_s24 + $0x60] sm:$0xff] %vm1650_vm0, %v1646_v22  ;;  %1664 = vst.msk [vmem:[%s3703_s24 + $0x68] sm:$0xff] %vm1650_vm0, %v1647_v7  ;;  %v1632_v50 = vsub.f32 %v1551_v30, %v1616_v62  ;;  %v1633_v10 = vsub.f32 %v1553_v23, %v1617_v51  ;;  %v1763_v1 = vunpack.c.l.bf16 %v4111_v15  ;;  %v1764_v4 = vunpack.c.h.bf16 %v4111_v15  ;;  %v4114_v62 = vld [vmem:[#allocation10_spill] sm:$0xff] }
 0x42f   : > { %2933 = vrcp.f32 %v1705_v0  ;;  %v2926_v47 = vpop.eup %2925  ;;  %v1768_v7 = vunpack.c.h.bf16 %v4113_v24  ;;  %v1773_v51 = vunpack.c.l.bf16 %v4114_v62 }
 0x430   : > { %v1648_v31 = vmul.f32 %v1632_v50, %v4106_v28  ;;  %v1649_v34 = vmul.f32 %v1633_v10, %v4107_v48  ;;  %2935 = vrcp.f32 %v1706_v29  ;;  %v2928_v21 = vpop.eup %2927  ;;  %v1771_v50 = vunpack.c.l.bf16 %v4115_v54 }
 0x431   : > { %2937 = vrcp.f32 %v1703_v38  ;;  %v2930_v33 = vpop.eup %2929 }
 0x432   : > { %1665 = vst.msk [vmem:[%s3703_s24 + $0x70] sm:$0xff] %vm1650_vm0, %v1648_v31  ;;  %1666 = vst.msk [vmem:[%s3703_s24 + $0x78] sm:$0xff] %vm1650_vm0, %v1649_v34  ;;  %2939 = vrcp.f32 %v1704_v59  ;;  %v1774_v31 = vunpack.c.h.bf16 %v4114_v62  ;;  %v1713_v34 = vadd.f32 1.0, %v3689_v42 }
 0x433   : > { %2941 = vrcp.f32 %v1709_v20  ;;  %v2932_v49 = vpop.eup %2931 }
 0x434   : > { %2943 = vrcp.f32 %v1710_v18 }
 0x435   : > { %2945 = vrcp.f32 %v1707_v60 }
 0x436   : > { %2947 = vrcp.f32 %v1708_v26 }
 0x437   : > { %2949 = vrcp.f32 %v1712_v14 }
 0x438   : > { %v2748_v57 = vpop.f32.mrb[32].mxu0  ;;  %2951 = vrcp.f32 %v1711_v35 }
 0x439   : > { %v1818_v61 = vadd.f32 %v2748_v57, %v1761_v32  ;;  %v1809_v19 = vpop.f32.mrb[33].mxu0  ;;  %v2934_v48 = vpop.eup %2933  ;;  %2953 = vrcp.f32 %v1713_v34 }
 0x43a   : > { %v1810_v12 = vadd.f32 %v1809_v19, %v1759_v2  ;;  %v2749_v58 = vpop.f32.mrb[34].mxu0  ;;  %v2936_v32 = vpop.eup %2935  ;;  %2955 = vrcp.f32 %v1714_v27 }
 0x43b   : > { %v1874_v37 = vmul.f32 %v2926_v47, %v1818_v61  ;;  %v1821_v40 = vadd.f32 %v2749_v58, %v1762_v46  ;;  %v1812_v30 = vpop.f32.mrb[35].mxu0  ;;  %v2938_v20 = vpop.eup %2937 }
 0x43c   : > { %v1872_v23 = vmul.f32 %v2928_v21, %v1810_v12  ;;  %v1813_v45 = vadd.f32 %v1812_v30, %v1760_v9  ;;  %v2940_v61 = vpop.eup %2939 }
 0x43d   : > { %v3804_v22 = vadd.f32 %v3798_v43, %v1874_v37  ;;  %v1875_v55 = vmul.f32 %v2930_v33, %v1821_v40  ;;  %v2942_v26 = vpop.eup %2941 }
 0x43e   : > { %v3808_v52 = vadd.f32 %v3798_v43, %v1872_v23  ;;  %v1873_v6 = vmul.f32 %v2932_v49, %v1813_v45 }
 0x43f   : > { %v1929_v39 = vmul.f32 0.044715, %v3804_v22  ;;  %v3813_v53 = vadd.f32 %v3798_v43, %v1875_v55  ;;  %v1913_v27 = vmul.f32 0.5, %v3804_v22 }
 0x440   : > { %v1927_v10 = vmul.f32 0.044715, %v3808_v52  ;;  %v3818_v25 = vadd.f32 %v3798_v43, %v1873_v6  ;;  %v2752_v28 = vpop.f32.mrb[36].mxu0 }
 0x441   : > { %v1945_v0 = vmul.f32 %v1929_v39, %v3804_v22  ;;  %v1930_v29 = vmul.f32 0.044715, %v3813_v53  ;;  %v1834_v38 = vadd.f32 %v2752_v28, %v1765_v36  ;;  %v1825_v16 = vpop.f32.mrb[37].mxu0 }
 0x442   : > { %v1943_v2 = vmul.f32 %v1927_v10, %v3808_v52  ;;  %v1928_v59 = vmul.f32 0.044715, %v3818_v25  ;;  %v1826_v46 = vadd.f32 %v1825_v16, %v1763_v1  ;;  %v2753_v9 = vpop.f32.mrb[38].mxu0 }
 0x443   : > { %v1961_v18 = vmul.f32 %v1945_v0, %v3804_v22  ;;  %v1946_v42 = vmul.f32 %v1930_v29, %v3813_v53  ;;  %v1878_v57 = vmul.f32 %v2934_v48, %v1834_v38  ;;  %v1837_v60 = vadd.f32 %v2753_v9, %v1766_v41  ;;  %v1828_v36 = vpop.f32.mrb[39].mxu0  ;;  %v2944_v41 = vpop.eup %2943 }
 0x444   : > { %v1959_v19 = vmul.f32 %v1943_v2, %v3808_v52  ;;  %v1944_v56 = vmul.f32 %v1928_v59, %v3818_v25  ;;  %v1876_v47 = vmul.f32 %v2938_v20, %v1826_v46  ;;  %v1829_v1 = vadd.f32 %v1828_v36, %v1764_v4  ;;  %v2946_v15 = vpop.eup %2945 }
 0x445   : > { %v1977_v12 = vadd.f32 %v1961_v18, %v3804_v22  ;;  %v1962_v58 = vmul.f32 %v1946_v42, %v3813_v53  ;;  %v3838_v21 = vadd.f32 %v3798_v43, %v1878_v57  ;;  %v1879_v44 = vmul.f32 %v2936_v32, %v1837_v60  ;;  %v2948_v23 = vpop.eup %2947 }
 0x446   : > { %v1975_v14 = vadd.f32 %v1959_v19, %v3808_v52  ;;  %v1960_v37 = vmul.f32 %v1944_v56, %v3818_v25  ;;  %v3843_v40 = vadd.f32 %v3798_v43, %v1876_v47  ;;  %v1877_v30 = vmul.f32 %v2940_v61, %v1829_v1  ;;  %v3849_v39 = vpop.eup %2949 }
 0x447   : > { %v1993_v4 = vmul.f32 0.7978846, %v1977_v12  ;;  %v1978_v33 = vadd.f32 %v1962_v58, %v3813_v53  ;;  %v1933_v35 = vmul.f32 0.044715, %v3838_v21  ;;  %v3853_v48 = vadd.f32 %v3798_v43, %v1879_v44  ;;  %v3855_v0 = vpop.eup %2951 }
 0x448   : > { %v1991_v45 = vmul.f32 0.7978846, %v1975_v14  ;;  %v1976_v49 = vadd.f32 %v1960_v37, %v3818_v25  ;;  %v1931_v55 = vmul.f32 0.044715, %v3843_v40  ;;  %v2756_v6 = vpop.f32.mrb[40].mxu0  ;;  %v3859_v16 = vadd.f32 %v3798_v43, %v1877_v30  ;;  %v3881_v14 = vpop.eup %2953 }
 0x449   : > { %2957 = vtanh.f32 %v1993_v4  ;;  %v1994_v10 = vmul.f32 0.7978846, %v1978_v33  ;;  %v1949_v28 = vmul.f32 %v1933_v35, %v3838_v21  ;;  %v1841_v34 = vpop.f32.mrb[41].mxu0  ;;  %v1934_v59 = vmul.f32 0.044715, %v3853_v48 }
 0x44a   : > { %2959 = vtanh.f32 %v1991_v45  ;;  %v1992_v29 = vmul.f32 0.7978846, %v1976_v49  ;;  %v1947_v38 = vmul.f32 %v1931_v55, %v3843_v40  ;;  %v2757_v32 = vpop.f32.mrb[42].mxu0  ;;  %v1911_v9 = vmul.f32 0.5, %v3808_v52 }
 0x44b   : > { %2961 = vtanh.f32 %v1994_v10  ;;  %v1965_v2 = vmul.f32 %v1949_v28, %v3838_v21  ;;  %v1844_v46 = vpop.f32.mrb[43].mxu0  ;;  %v1932_v18 = vmul.f32 0.044715, %v3859_v16  ;;  %v1950_v57 = vmul.f32 %v1934_v59, %v3853_v48 }
 0x44c   : > { %2963 = vtanh.f32 %v1992_v29  ;;  %v1963_v20 = vmul.f32 %v1947_v38, %v3843_v40  ;;  %v1850_v22 = vadd.f32 %v2756_v6, %v1769_v8  ;;  %v1842_v60 = vadd.f32 %v1841_v34, %v1767_v17 }
 0x44d   : > { %v1981_v42 = vadd.f32 %v1965_v2, %v3838_v21  ;;  %v1948_v61 = vmul.f32 %v1932_v18, %v3859_v16  ;;  %v1853_v52 = vadd.f32 %v2757_v32, %v1770_v63  ;;  %v1845_v19 = vadd.f32 %v1844_v46, %v1768_v7  ;;  %v3890_v63 = vpop.eup %2955 }
 0x44e   : > { %v1979_v36 = vadd.f32 %v1963_v20, %v3843_v40  ;;  %v1966_v47 = vmul.f32 %v1950_v57, %v3853_v48  ;;  %v1882_v1 = vmul.f32 %v2942_v26, %v1850_v22  ;;  %v1880_v12 = vmul.f32 %v2946_v15, %v1842_v60  ;;  %v4116_v57 = vld [vmem:[#allocation15_spill] sm:$0xff] }
 0x44f   : > { %v1997_v56 = vmul.f32 0.7978846, %v1981_v42  ;;  %v1964_v8 = vmul.f32 %v1948_v61, %v3859_v16  ;;  %v1883_v44 = vmul.f32 %v2944_v41, %v1853_v52  ;;  %v1881_v17 = vmul.f32 %v2948_v23, %v1845_v19  ;;  %v4117_v52 = vld [vmem:[#allocation19_spill] sm:$0xff] }
 0x450   : > { %v1995_v58 = vmul.f32 0.7978846, %v1979_v36  ;;  %v1982_v37 = vadd.f32 %v1966_v47, %v3853_v48  ;;  %v3885_v13 = vadd.f32 %v3798_v43, %v1882_v1  ;;  %v3888_v24 = vadd.f32 %v3798_v43, %v1880_v12  ;;  %v4118_v1 = vld [vmem:[#allocation16_spill] sm:$0xff] }
 0x451   : > { %2965 = vtanh.f32 %v1997_v56  ;;  %v1914_v7 = vmul.f32 0.5, %v3813_v53  ;;  %v1980_v26 = vadd.f32 %v1964_v8, %v3859_v16  ;;  %v3895_v41 = vadd.f32 %v3798_v43, %v1883_v44 }
 0x452   : > { %2967 = vtanh.f32 %v1995_v58  ;;  %v1912_v15 = vmul.f32 0.5, %v3818_v25  ;;  %v1917_v4 = vmul.f32 0.5, %v3838_v21  ;;  %v1998_v33 = vmul.f32 0.7978846, %v1982_v37 }
 0x453   : > { %v2958_v30 = vpop.eup %2957  ;;  %v1937_v35 = vmul.f32 0.044715, %v3885_v13  ;;  %v1996_v49 = vmul.f32 0.7978846, %v1980_v26  ;;  %v1935_v55 = vmul.f32 0.044715, %v3888_v24  ;;  %v3902_v53 = vadd.f32 %v3798_v43, %v1881_v17 }
 0x454   : > { %v2960_v23 = vpop.eup %2959  ;;  %v2025_v45 = vadd.f32 1.0, %v2958_v30  ;;  %2969 = vtanh.f32 %v1998_v33  ;;  %v1938_v25 = vmul.f32 0.044715, %v3895_v41  ;;  %v2760_v34 = vpop.f32.mrb[44].mxu0  ;;  %v1915_v36 = vmul.f32 0.5, %v3843_v40  ;;  %v4119_v17 = vld [vmem:[#allocation14_spill] sm:$0xff] }
 0x455   : > { %v2962_v6 = vpop.eup %2961  ;;  %v2023_v10 = vadd.f32 1.0, %v2960_v23  ;;  %v1953_v28 = vmul.f32 %v1937_v35, %v3885_v13  ;;  %2971 = vtanh.f32 %v1996_v49  ;;  %v1951_v32 = vmul.f32 %v1935_v55, %v3888_v24  ;;  %v1857_v2 = vpop.f32.mrb[45].mxu0 }
 0x456   : > { %v2964_v21 = vpop.eup %2963  ;;  %v2041_v29 = vmul.f32 %v2025_v45, %v1913_v27  ;;  %v2026_v38 = vadd.f32 1.0, %v2962_v6  ;;  %v1954_v18 = vmul.f32 %v1938_v25, %v3895_v41  ;;  %v2761_v42 = vpop.f32.mrb[46].mxu0  ;;  %v1936_v8 = vmul.f32 0.044715, %v3902_v53 }
 0x457   : > { %v2039_v59 = vmul.f32 %v2023_v10, %v1911_v9  ;;  %v2024_v46 = vadd.f32 1.0, %v2964_v21  ;;  %v1969_v20 = vmul.f32 %v1953_v28, %v3885_v13  ;;  %v1967_v27 = vmul.f32 %v1951_v32, %v3888_v24  ;;  %v1860_v61 = vpop.f32.mrb[47].mxu0 }
 0x458   : > { %v2057_v22 = vmul.f32 %v2041_v29, %v4116_v57  ;;  %v2042_v60 = vmul.f32 %v2026_v38, %v1914_v7  ;;  %v1970_v47 = vmul.f32 %v1954_v18, %v3895_v41  ;;  %v1866_v44 = vadd.f32 %v2760_v34, %v1773_v51  ;;  %v4120_v18 = vld [vmem:[#allocation18_spill] sm:$0xff] }
 0x459   : > { %v2055_v19 = vmul.f32 %v2039_v59, %v4117_v52  ;;  %v2040_v56 = vmul.f32 %v2024_v46, %v1912_v15  ;;  %v1985_v9 = vadd.f32 %v1969_v20, %v3885_v13  ;;  %v1983_v58 = vadd.f32 %v1967_v27, %v3888_v24  ;;  %v4122_v52 = vld [vmem:[#allocation17_spill] sm:$0xff] }
 0x45a   : > { %v2058_v12 = vmul.f32 %v2042_v60, %v4118_v1  ;;  %v1986_v26 = vadd.f32 %v1970_v47, %v3895_v41  ;;  %v1858_v30 = vadd.f32 %v1857_v2, %v1771_v50  ;;  %v1952_v23 = vmul.f32 %v1936_v8, %v3902_v53  ;;  %v4121_v60 = vld [vmem:[#allocation20_spill] sm:$0xff] }
 0x45b   : > { %v2966_v40 = vpop.eup %2965  ;;  %v2056_v37 = vmul.f32 %v2040_v56, %v4119_v17  ;;  %v2001_v7 = vmul.f32 0.7978846, %v1985_v9  ;;  %v1999_v35 = vmul.f32 0.7978846, %v1983_v58  ;;  %v1918_v6 = vmul.f32 0.5, %v3853_v48  ;;  %v4123_v56 = vld [vmem:[#allocation21_spill] sm:$0xff] }
 0x45c   : > { %v2968_v15 = vpop.eup %2967  ;;  %v2483_v33 = vpack.c.bf16 %v2058_v12, %v2057_v22  ;;  %v2029_v51 = vadd.f32 1.0, %v2966_v40  ;;  %v2002_v55 = vmul.f32 0.7978846, %v1986_v26  ;;  %v1968_v10 = vmul.f32 %v1952_v23, %v3902_v53 }
 0x45d   : > { %v2478_v45 = vpack.c.bf16 %v2056_v37, %v2055_v19  ;;  %v2027_v49 = vadd.f32 1.0, %v2968_v15  ;;  %2973 = vtanh.f32 %v2001_v7  ;;  %v1886_v28 = vmul.f32 %v3881_v14, %v1866_v44 }
 0x45e   : > { %2515 = vst [vmem:[%s3925_s11 + $0x8] sm:$0xff] %v2483_v33   ;;  %2975 = vtanh.f32 %v1999_v35  ;;  %v2970_v50 = vpop.eup %2969  ;;  %v2045_v25 = vmul.f32 %v2029_v51, %v1917_v4  ;;  %v1884_v34 = vmul.f32 %v3855_v0, %v1858_v30  ;;  %v1869_v21 = vadd.f32 %v2761_v42, %v1774_v31 }
 0x45f   : > { %2479 = vst [vmem:[%s3925_s11] sm:$0xff] %v2478_v45   ;;  %2977 = vtanh.f32 %v2002_v55  ;;  %v2972_v29 = vpop.eup %2971  ;;  %v2030_v38 = vadd.f32 1.0, %v2970_v50  ;;  %v1916_v32 = vmul.f32 0.5, %v3859_v16  ;;  %v1984_v48 = vadd.f32 %v1968_v10, %v3902_v53 }
 0x460   : > { %v3943_v2 = vadd.f32 %v3798_v43, %v1886_v28  ;;  %v2043_v59 = vmul.f32 %v2027_v49, %v1915_v36  ;;  %v2028_v14 = vadd.f32 1.0, %v2972_v29  ;;  %v3946_v46 = vadd.f32 %v3798_v43, %v1884_v34  ;;  %v4124_v34 = vld [vmem:[#allocation24_spill] sm:$0xff]  ;;  %v4125_v29 = vld [vmem:[#allocation25_spill] sm:$0xff] }
 0x461   : > { %v1887_v4 = vmul.f32 %v3890_v63, %v1869_v21  ;;  %v2046_v0 = vmul.f32 %v2030_v38, %v1918_v6  ;;  %v2000_v20 = vmul.f32 0.7978846, %v1984_v48  ;;  %v1772_v31 = vunpack.c.h.bf16 %v4115_v54 }
 0x462   : > { %v1941_v62 = vmul.f32 0.044715, %v3943_v2  ;;  %v2061_v16 = vmul.f32 %v2045_v25, %v4120_v18  ;;  %v2044_v42 = vmul.f32 %v2028_v14, %v1916_v32  ;;  %v1939_v57 = vmul.f32 0.044715, %v3946_v46 }
 0x463   : > { %v3954_v22 = vadd.f32 %v3798_v43, %v1887_v4  ;;  %v2062_v36 = vmul.f32 %v2046_v0, %v4121_v60  ;;  %2979 = vtanh.f32 %v2000_v20  ;;  %v1861_v27 = vadd.f32 %v1860_v61, %v1772_v31 }
 0x464   : > { %v1957_v63 = vmul.f32 %v1941_v62, %v3943_v2  ;;  %v2059_v19 = vmul.f32 %v2043_v59, %v4122_v52  ;;  %v2060_v9 = vmul.f32 %v2044_v42, %v4123_v56  ;;  %v1955_v54 = vmul.f32 %v1939_v57, %v3946_v46  ;;  %v4127_v62 = vld [vmem:[#allocation23_spill] sm:$0xff] }
 0x465   : > { %v1942_v47 = vmul.f32 0.044715, %v3954_v22  ;;  %v2493_v1 = vpack.c.bf16 %v2062_v36, %v2061_v16  ;;  %v1885_v58 = vmul.f32 %v3849_v39, %v1861_v27  ;;  %v1921_v37 = vmul.f32 0.5, %v3885_v13 }
 0x466   : > { %v1973_v12 = vmul.f32 %v1957_v63, %v3943_v2  ;;  %v2488_v44 = vpack.c.bf16 %v2060_v9, %v2059_v19  ;;  %v1971_v40 = vmul.f32 %v1955_v54, %v3946_v46  ;;  %v1922_v35 = vmul.f32 0.5, %v3895_v41 }
 0x467   : > { %v2974_v8 = vpop.eup %2973  ;;  %v1958_v61 = vmul.f32 %v1942_v47, %v3954_v22  ;;  %2517 = vst [vmem:[%s3925_s11 + $0x18] sm:$0xff] %v2493_v1   ;;  %v1908_v30 = vadd.f32 %v3798_v43, %v1885_v58  ;;  %v1919_v43 = vmul.f32 0.5, %v3888_v24  ;;  %v1920_v41 = vmul.f32 0.5, %v3902_v53  ;;  %v4126_v24 = vld [vmem:[#allocation22_spill] sm:$0xff] }
 0x468   : > { %v2976_v17 = vpop.eup %2975  ;;  %v2033_v7 = vadd.f32 1.0, %v2974_v8  ;;  %v1989_v26 = vadd.f32 %v1973_v12, %v3943_v2  ;;  %2516 = vst [vmem:[%s3925_s11 + $0x10] sm:$0xff] %v2488_v44   ;;  %v1987_v33 = vadd.f32 %v1971_v40, %v3946_v46  ;;  %v1925_v60 = vmul.f32 0.5, %v3943_v2 }
 0x469   : > { %v2978_v15 = vpop.eup %2977  ;;  %v1974_v39 = vmul.f32 %v1958_v61, %v3954_v22  ;;  %v2031_v49 = vadd.f32 1.0, %v2976_v17  ;;  %v1940_v6 = vmul.f32 0.044715, %v1908_v30  ;;  %v1926_v27 = vmul.f32 0.5, %v3954_v22 }
 0x46a   : > { %v2049_v51 = vmul.f32 %v2033_v7, %v1921_v37  ;;  %v2034_v23 = vadd.f32 1.0, %v2978_v15  ;;  %v2005_v45 = vmul.f32 0.7978846, %v1989_v26  ;;  %v2003_v55 = vmul.f32 0.7978846, %v1987_v33 }
 0x46b   : > { %v1990_v13 = vadd.f32 %v1974_v39, %v3954_v22  ;;  %v1956_v50 = vmul.f32 %v1940_v6, %v1908_v30  ;;  %v2047_v32 = vmul.f32 %v2031_v49, %v1919_v43  ;;  %v1923_v54 = vmul.f32 0.5, %v3946_v46  ;;  %v4128_v22 = vld [vmem:[#allocation28_spill] sm:$0xff] }
 0x46c   : > { %v2050_v10 = vmul.f32 %v2034_v23, %v1922_v35  ;;  %2981 = vtanh.f32 %v2005_v45  ;;  %v2065_v21 = vmul.f32 %v2049_v51, %v4124_v34  ;;  %v1924_v8 = vmul.f32 0.5, %v1908_v30 }
 0x46d   : > { %v2006_v28 = vmul.f32 0.7978846, %v1990_v13  ;;  %v2980_v25 = vpop.eup %2979  ;;  %2983 = vtanh.f32 %v2003_v55  ;;  %v1972_v59 = vmul.f32 %v1956_v50, %v1908_v30  ;;  %v2063_v20 = vmul.f32 %v2047_v32, %v4126_v24 }
 0x46e   : > { %v2066_v38 = vmul.f32 %v2050_v10, %v4125_v29  ;;  %v2032_v48 = vadd.f32 1.0, %v2980_v25 }
 0x46f   : > { %2985 = vtanh.f32 %v2006_v28  ;;  %v1988_v0 = vadd.f32 %v1972_v59, %v1908_v30 }
 0x470   : > { %v2503_v14 = vpack.c.bf16 %v2066_v38, %v2065_v21  ;;  %v2048_v4 = vmul.f32 %v2032_v48, %v1920_v41 }
 0x471   : > { %v2004_v18 = vmul.f32 0.7978846, %v1988_v0 }
 0x472   : > { %2519 = vst [vmem:[%s3925_s11 + $0x28] sm:$0xff] %v2503_v14   ;;  %v2064_v31 = vmul.f32 %v2048_v4, %v4127_v62 }
 0x473   : > { %2987 = vtanh.f32 %v2004_v18 }
 0x474   : > { %v2498_v16 = vpack.c.bf16 %v2064_v31, %v2063_v20 }
 0x476   : > { %v2982_v42 = vpop.eup %2981  ;;  %2518 = vst [vmem:[%s3925_s11 + $0x20] sm:$0xff] %v2498_v16  }
 0x477   : > { %v2037_v53 = vadd.f32 1.0, %v2982_v42  ;;  %v2984_v57 = vpop.eup %2983 }
 0x478   : > { %v2035_v19 = vadd.f32 1.0, %v2984_v57 }
 0x479   : > { %v2986_v36 = vpop.eup %2985  ;;  %v2053_v63 = vmul.f32 %v2037_v53, %v1925_v60 }
 0x47a   : > { %v2038_v52 = vadd.f32 1.0, %v2986_v36  ;;  %v2051_v12 = vmul.f32 %v2035_v19, %v1923_v54 }
 0x47b   : > { %v2069_v9 = vmul.f32 %v2053_v63, %v3599_v5 }
 0x47c   : > { %v2054_v56 = vmul.f32 %v2038_v52, %v1926_v27  ;;  %v2067_v40 = vmul.f32 %v2051_v12, %v3467_v11 }
 0x47d   : > { %v2988_v1 = vpop.eup %2987 }
 0x47e   : > { %v2070_v47 = vmul.f32 %v2054_v56, %v3619_v3  ;;  %v2036_v44 = vadd.f32 1.0, %v2988_v1 }
 0x480   : > { %v2513_v58 = vpack.c.bf16 %v2070_v47, %v2069_v9  ;;  %v2052_v2 = vmul.f32 %v2036_v44, %v1924_v8 }
 0x482   : > { %2521 = vst [vmem:[%s3925_s11 + $0x38] sm:$0xff] %v2513_v58   ;;  %v2068_v61 = vmul.f32 %v2052_v2, %v4128_v22 }
 0x484   : > { %v2508_v17 = vpack.c.bf16 %v2068_v61, %v2067_v40 }
 0x486   : > { %2520 = vst [vmem:[%s3925_s11 + $0x30] sm:$0xff] %v2508_v17  }
 0x487 PF: > { %s19_s29 = sadd.s32 1, %s3023_s29   ;;  %s4129_s27 = smov %s3019_s28 }
 0x488   : > { %p16_p5 = scmp.ge.s32.totalorder %s19_s29, 4   ;;  %s4130_s28 = smov %s4132_s30 }
 0x48a   :  { %18 = sbr.rel (!%p16_p5) target bundleno = 2 (0x2), region = 111 }

</bundles_post_ra>
